<compile_context>
chip_gen: v6e
topology: v6e:2x2x1
jax: 0.10.0
libtpu: 0.0.40
codegen_flags: <defaults>
</compile_context>

<pallas_src>
import functools

import jax
import jax.numpy as jnp
from jax.experimental import pallas as pl
from jax.experimental.pallas import tpu as pltpu

FC_OUT = 200          # nn.Linear(hidden, 200)
FC_PAD = 256          # FC output padded to a lane-dense width
LANE = 128
EPS = 1e-12           # torch.nn.functional.normalize default eps

# Memory-space enum (new name, with fallback to the legacy one).
_MEM = getattr(pltpu, "MemorySpace", None) or getattr(pltpu, "TPUMemorySpace")


def _round_up(x, m):
    return (x + m - 1) // m * m


def _pad_axis(a, axis, new):
    pad = [(0, 0)] * a.ndim
    pad[axis] = (0, new - a.shape[axis])
    return jnp.pad(a, pad)


def _vmem_capacity_bytes():
    try:
        cap = int(getattr(pltpu.get_tpu_info(), "vmem_capacity_bytes", 0))
        if cap > 0:
            return cap
    except Exception:
        pass
    return 128 * 1024 * 1024   # v5e / v6e default


# -----------------------------------------------------------------------------
# Pallas kernel
# -----------------------------------------------------------------------------
def _lstm_kernel(x_ref,              # (t_blk, Bs, Din)       current time chunk
                 h0_ref, c0_ref,     # (L, Bs, Hp)            initial state shard
                 wih0_ref,           # (Din, 4Hp)             layer-0 input weights
                 wihr_ref,           # (max(L-1,1), Hp, 4Hp)  layer>0 input weights
                 whh_ref,            # (L, Hp, 4Hp)           hidden weights
                 b_ref,              # (L, 1, 4Hp)            fused biases (b_ih+b_hh)
                 wfc_ref, bfc_ref,   # (Hp, FC_PAD), (1, FC_PAD)
                 out_ref,            # (Bs, FC_PAD)
                 h_scr, c_scr,       # (L, Bs, Hp) persistent VMEM state
                 *, total_t, needs_mask):
    L, Bs, Hp = h_scr.shape
    t_blk = x_ref.shape[0]
    t_chunk = pl.program_id(1)
    wdt = whh_ref.dtype            # matmul input dtype (f32 or bf16)

    # Load the initial state into the persistent scratch at each batch shard's
    # first time chunk (batch-shard grid axis is outermost, time innermost).
    @pl.when(t_chunk == 0)
    def _init():
        h_scr[...] = h0_ref[...]
        c_scr[...] = c0_ref[...]

    def norm_sigmoid(g):
        # sigmoid(L1-normalize(g, eps=1e-12)); one XLU lane reduction + EUP
        # approx reciprocal keeps the division off the VPU critical path.
        n = jnp.sum(jnp.abs(g), axis=-1, keepdims=True)
        inv = pl.reciprocal(jnp.maximum(n, EPS), approx=True)
        return jax.nn.sigmoid(g * inv)

    # Hoisted per-chunk loads / broadcasts (JAX does not CSE broadcast_in_dim;
    # doing these inside the unrolled loops re-materializes them every step).
    bias = [jnp.broadcast_to(b_ref[l], (Bs, 4 * Hp)) for l in range(L)]
    w_hh = [whh_ref[l] for l in range(L)]
    w_ih = [None] + [wihr_ref[l - 1] for l in range(1, L)]
    w_ih0 = wih0_ref[...]

    # Layer-0 input projection (+ bias) for the whole chunk: independent of the
    # recurrence, so it stays off the serial h critical path.
    xg = [jnp.dot(x_ref[t].astype(wdt), w_ih0,
                  preferred_element_type=jnp.float32) + bias[0]
          for t in range(t_blk)]

    # Chunk-local state in unrolled locals; scratch written back once per chunk
    # (removes 2*L*(t_blk-1) masked sub-sublane store/load round trips).
    h = [h_scr[l] for l in range(L)]
    c = [c_scr[l] for l in range(L)]

    for t in range(t_blk):            # static, fully unrolled
        prev = None
        for l in range(L):            # static layer loop
            if l == 0:
                gates = xg[t] + jnp.dot(h[0].astype(wdt), w_hh[0],
                                        preferred_element_type=jnp.float32)
            else:
                # Two K=Hp dots instead of concatenate + one fused dot: same
                # MXU work, no per-step (Bs, 2Hp) copy on the critical path.
                gates = (jnp.dot(prev.astype(wdt), w_ih[l],
                                 preferred_element_type=jnp.float32)
                         + jnp.dot(h[l].astype(wdt), w_hh[l],
                                   preferred_element_type=jnp.float32)
                         + bias[l])
            # Lane-aligned gate slices (Hp is a multiple of 128).
            i_g = norm_sigmoid(gates[:, 0 * Hp:1 * Hp])
            f_g = norm_sigmoid(gates[:, 1 * Hp:2 * Hp])
            c_g = gates[:, 2 * Hp:3 * Hp]          # raw cell gate (no tanh)
            o_g = norm_sigmoid(gates[:, 3 * Hp:4 * Hp])
            nc = f_g * c[l] + i_g * c_g
            nh = o_g * jnp.maximum(nc, 0.0)        # ReLU cell activation
            if needs_mask:
                # Ragged tail: padded timesteps must not advance the state.
                valid = (t_chunk * t_blk + t) < total_t
                nc = jnp.where(valid, nc, c[l])
                nh = jnp.where(valid, nh, h[l])
            c[l] = nc
            h[l] = nh
            prev = nh                              # feeds the next layer

    for l in range(L):
        h_scr[l] = h[l]
        c_scr[l] = c[l]

    # Final FC on the top layer's last-timestep hidden, last chunk only.
    @pl.when(t_chunk == pl.num_programs(1) - 1)
    def _finalize():
        out_ref[...] = (jnp.dot(h[L - 1].astype(wdt), wfc_ref[...],
                                preferred_element_type=jnp.float32)
                        + bfc_ref[...])


# -----------------------------------------------------------------------------
# Wrapper-side weight repacking (padding + layout)
# -----------------------------------------------------------------------------
def pack_params(params, weight_dtype=jnp.float32):
    """Pad + repack per-layer Linear weights into the kernel layout.

    All padded rows/columns are zero (see the header invariant note); biases
    stay f32, weights are optionally cast to bf16 for the MXU.
    """
    H = params["hidden"]
    L = params["nlayers"]
    Hp = _round_up(H, LANE)

    def gate_cols(w):
        # (..., 4H) -> (..., 4Hp): zero-pad each of the 4 gate column blocks.
        lead = w.shape[:-1]
        w4 = w.reshape(*lead, 4, H)
        return _pad_axis(w4, -1, Hp).reshape(*lead, 4 * Hp)

    wih0 = gate_cols(params["_w_ih_list"][0]).astype(weight_dtype)   # (Din, 4Hp)
    whh = jnp.stack([_pad_axis(gate_cols(w), 0, Hp)
                     for w in params["_w_hh_list"]]).astype(weight_dtype)
    if L > 1:
        wihr = jnp.stack([_pad_axis(gate_cols(w), 0, Hp)
                          for w in params["_w_ih_list"][1:]]).astype(weight_dtype)
    else:
        wihr = jnp.zeros((1, Hp, 4 * Hp), weight_dtype)   # unused dummy
    b = jnp.stack([gate_cols(bi + bh)
                   for bi, bh in zip(params["_b_ih_list"],
                                     params["_b_hh_list"])])         # (L, 1, 4Hp)
    wfc = _pad_axis(_pad_axis(params["wfc"], -1, FC_PAD), 0, Hp).astype(weight_dtype)
    bfc = _pad_axis(params["bfc"], -1, FC_PAD)
    return {"Hp": Hp, "wih0": wih0, "wihr": wihr, "whh": whh, "b": b,
            "wfc": wfc, "bfc": bfc}


def lstm_forward(x, h0, c0, params, *, max_t_block=16, batch_shards=1,
                 weight_dtype=jnp.float32):
    """x: (B, T, Din); h0, c0: (B, L, H).  Returns (B, FC_OUT) float32."""
    B, T, Din = x.shape
    L = params["nlayers"]
    H = params["hidden"]
    assert h0.shape == (B, L, H) and c0.shape == (B, L, H)
    assert B % batch_shards == 0
    Bs = B // batch_shards
    if batch_shards > 1:
        # v7x dual-TensorCore path: per-shard batch must stay sublane aligned.
        assert Bs % 8 == 0, "batch_shards > 1 needs B / batch_shards % 8 == 0"

    packed = pack_params(params, weight_dtype)
    Hp = packed["Hp"]

    # Time chunking: round T up and mask the tail in the kernel (prime T no
    # longer degenerates to t_block = 1).
    t_block = min(T, max_t_block)
    num_blocks = -(-T // t_block)
    t_pad = num_blocks * t_block
    needs_mask = t_pad != T

    x_k = jnp.transpose(x, (1, 0, 2))                        # (T, B, Din)
    if needs_mask:
        x_k = jnp.pad(x_k, ((0, t_pad - T), (0, 0), (0, 0)))
    h0_k = _pad_axis(jnp.transpose(h0, (1, 0, 2)), -1, Hp)   # (L, B, Hp)
    c0_k = _pad_axis(jnp.transpose(c0, (1, 0, 2)), -1, Hp)

    # Grid-invariant operands (weights / biases) are unblocked, whole-array
    # VMEM residents (single copy, no per-step windowing); x streams over T.
    resident = lambda: pl.BlockSpec(memory_space=_MEM.VMEM)
    in_specs = [
        pl.BlockSpec((t_block, Bs, Din), lambda b, t: (t, b, 0)),   # x chunk
        pl.BlockSpec((L, Bs, Hp), lambda b, t: (0, b, 0)),          # h0 shard
        pl.BlockSpec((L, Bs, Hp), lambda b, t: (0, b, 0)),          # c0 shard
        resident(), resident(), resident(), resident(), resident(), resident(),
    ]
    out_specs = pl.BlockSpec((Bs, FC_PAD), lambda b, t: (b, 0))

    # VMEM budget: resident weights (x1) + pipelined blocks (x2) + scratch,
    # capped by the actual device VMEM capacity (v5e/v6e 128 MiB, v7x 64 MiB).
    f32 = 4
    wbytes = sum(int(packed[k].size) * packed[k].dtype.itemsize
                 for k in ("wih0", "wihr", "whh", "b", "wfc", "bfc"))
    x_bytes = t_block * Bs * Din * f32
    st_bytes = 2 * L * Bs * Hp * f32
    out_bytes = Bs * FC_PAD * f32
    scratch_bytes = 2 * L * Bs * Hp * f32
    needed = (wbytes + 2 * (x_bytes + st_bytes + out_bytes)
              + scratch_bytes + (4 << 20))
    cap = _vmem_capacity_bytes()
    vmem_limit = int(max(32 << 20, min(needed, cap - (8 << 20))))

    flops = 2 * T * B * (Din * 4 * Hp + Hp * 4 * Hp)             # layer 0
    flops += 2 * T * B * max(L - 1, 0) * 2 * Hp * 4 * Hp         # layers >= 1
    flops += 2 * B * Hp * FC_PAD                                 # final FC
    cost = pl.CostEstimate(
        flops=int(flops),
        transcendentals=int(T * L * B * 3 * Hp),
        bytes_accessed=int(T * B * Din * f32 + wbytes + st_bytes + out_bytes))

    kernel = functools.partial(_lstm_kernel, total_t=T, needs_mask=needs_mask)
    out = pl.pallas_call(
        kernel,
        grid=(batch_shards, num_blocks),
        in_specs=in_specs,
        out_specs=out_specs,
        out_shape=jax.ShapeDtypeStruct((B, FC_PAD), jnp.float32),
        scratch_shapes=[pltpu.VMEM((L, Bs, Hp), jnp.float32),    # h state
                        pltpu.VMEM((L, Bs, Hp), jnp.float32)],   # c state
        compiler_params=pltpu.CompilerParams(
            dimension_semantics=("parallel", "arbitrary"),
            vmem_limit_bytes=vmem_limit),
        cost_estimate=cost,
    )(x_k, h0_k, c0_k, packed["wih0"], packed["wihr"], packed["whh"],
      packed["b"], packed["wfc"], packed["bfc"])
    return out[:, :FC_OUT]


# -----------------------------------------------------------------------------
# Deterministic parameter init (PyTorch nn.Linear-style uniform init).
# -----------------------------------------------------------------------------
def init_params(key, input_size, hidden, nlayers):
    def linear(k, fan_in, fan_out):
        k1, k2 = jax.random.split(k)
        bound = 1.0 / float(fan_in) ** 0.5
        w = jax.random.uniform(k1, (fan_in, fan_out), jnp.float32, -bound, bound)
        b = jax.random.uniform(k2, (1, fan_out), jnp.float32, -bound, bound)
        return w, b

    keys = jax.random.split(key, 2 * nlayers + 1)
    w_ih, b_ih, w_hh, b_hh = [], [], [], []
    size = input_size
    for i in range(nlayers):
        wi, bi = linear(keys[2 * i], size, 4 * hidden)
        wh, bh = linear(keys[2 * i + 1], hidden, 4 * hidden)
        w_ih.append(wi); b_ih.append(bi); w_hh.append(wh); b_hh.append(bh)
        size = hidden
    wfc, bfc = linear(keys[-1], hidden, FC_OUT)
    return {"nlayers": nlayers, "hidden": hidden,
            "_w_ih_list": w_ih, "_b_ih_list": b_ih,
            "_w_hh_list": w_hh, "_b_hh_list": b_hh,
            "wfc": wfc, "bfc": bfc}


# -----------------------------------------------------------------------------
# Pure-JAX reference (mirrors the PyTorch module exactly) for validation.
# -----------------------------------------------------------------------------
def reference_forward(x, h0, c0, params):
    B, T, _ = x.shape
    L = params["nlayers"]

    def nrm(g):
        return g / jnp.maximum(jnp.sum(jnp.abs(g), -1, keepdims=True), EPS)

    pre_h = [None] * T
    for i in range(L):
        h = h0[:, i, :]
        c = c0[:, i, :]
        w_ih, b_ih = params["_w_ih_list"][i], params["_b_ih_list"][i]
        w_hh, b_hh = params["_w_hh_list"][i], params["_b_hh_list"][i]
        for t in range(T):
            inp = x[:, t, :] if i == 0 else pre_h[t]
            gates = inp @ w_ih + b_ih + h @ w_hh + b_hh
            ig, fg, cg, og = jnp.split(gates, 4, axis=-1)
            ig = jax.nn.sigmoid(nrm(ig))
            fg = jax.nn.sigmoid(nrm(fg))
            og = jax.nn.sigmoid(nrm(og))
            c = fg * c + ig * cg
            h = og * jnp.maximum(c, 0.0)
            pre_h[t] = h
    return pre_h[-1] @ params["wfc"] + params["bfc"]


if __name__ == "__main__":
    B, T, Din, H, L = 2, 8, 16, 32, 2

    key = jax.random.PRNGKey(0)
    kx, kh, kc, kp = jax.random.split(key, 4)
    x = jax.random.normal(kx, (B, T, Din), jnp.float32)
    h0 = jax.random.normal(kh, (B, L, H), jnp.float32)
    c0 = jax.random.normal(kc, (B, L, H), jnp.float32)
    params = init_params(kp, Din, H, L)

    ref = reference_forward(x, h0, c0, params)

    # (1) f32, two time chunks: exercises the cross-chunk state carry.
    out = jax.block_until_ready(lstm_forward(x, h0, c0, params, max_t_block=4))
    assert out.shape == (B, FC_OUT), out.shape
    err = float(jnp.max(jnp.abs(out - ref)))
    # 5e-3 bound covers the EUP approx-reciprocal in the gate L1-norm.
    assert jnp.allclose(out, ref, rtol=5e-3, atol=5e-3), err

    # (2) f32, 3-step chunks over T=8: exercises the masked ragged tail.
    out2 = jax.block_until_ready(lstm_forward(x, h0, c0, params, max_t_block=3))
    err2 = float(jnp.max(jnp.abs(out2 - ref)))
    assert jnp.allclose(out2, ref, rtol=5e-3, atol=5e-3), err2

    # (3) bf16 weights / matmul LHS (state and gate math stay f32).
    out3 = jax.block_until_ready(
        lstm_forward(x, h0, c0, params, max_t_block=8,
                     weight_dtype=jnp.bfloat16))
    err3 = float(jnp.max(jnp.abs(out3 - ref)))
    assert jnp.allclose(out3, ref, rtol=5e-2, atol=5e-2), err3

    print("KERNEL_OK")
</pallas_src>

<mosaic_0001>
module attributes {stable_mosaic.version = 11 : i64} {
  func.func @_lstm_kernel(%arg0: i32, %arg1: i32, %arg2: memref<4x2x16xf32, #tpu.memory_space<vmem>>, %arg3: memref<2x2x128xf32, #tpu.memory_space<vmem>>, %arg4: memref<2x2x128xf32, #tpu.memory_space<vmem>>, %arg5: memref<16x512xf32, #tpu.memory_space<vmem>>, %arg6: memref<1x128x512xf32, #tpu.memory_space<vmem>>, %arg7: memref<2x128x512xf32, #tpu.memory_space<vmem>>, %arg8: memref<2x1x512xf32, #tpu.memory_space<vmem>>, %arg9: memref<128x256xf32, #tpu.memory_space<vmem>>, %arg10: memref<1x256xf32, #tpu.memory_space<vmem>>, %arg11: memref<2x256xf32, #tpu.memory_space<vmem>>, %arg12: memref<2x2x128xf32, #tpu.memory_space<vmem>>, %arg13: memref<2x2x128xf32, #tpu.memory_space<vmem>>) attributes {dimension_semantics = [#tpu.dimension_semantics<parallel>, #tpu.dimension_semantics<arbitrary>], iteration_bounds = array<i64: 1, 2>, scalar_prefetch = 0 : i64, scratch_operands = 2 : i64, tpu.core_type = #tpu.core_type<tc>, window_params = [{transform_indices = @transform_0, window_bounds = array<i64: 4, 2, 16>}, {transform_indices = @transform_1, window_bounds = array<i64: 2, 2, 128>}, {transform_indices = @transform_2, window_bounds = array<i64: 2, 2, 128>}, {pipeline_mode = #tpu.pipeline_mode<synchronous>, transform_indices = @transform_3, window_bounds = array<i64: 16, 512>}, {pipeline_mode = #tpu.pipeline_mode<synchronous>, transform_indices = @transform_4, window_bounds = array<i64: 1, 128, 512>}, {pipeline_mode = #tpu.pipeline_mode<synchronous>, transform_indices = @transform_5, window_bounds = array<i64: 2, 128, 512>}, {pipeline_mode = #tpu.pipeline_mode<synchronous>, transform_indices = @transform_6, window_bounds = array<i64: 2, 1, 512>}, {pipeline_mode = #tpu.pipeline_mode<synchronous>, transform_indices = @transform_7, window_bounds = array<i64: 128, 256>}, {pipeline_mode = #tpu.pipeline_mode<synchronous>, transform_indices = @transform_8, window_bounds = array<i64: 1, 256>}, {transform_indices = @transform_9, window_bounds = array<i64: 2, 256>}]} {
    %c0_i32 = arith.constant 0 : i32
    %0 = arith.cmpi eq, %arg1, %c0_i32 : i32
    %1 = arith.extui %0 : i1 to i32
    %c0_i32_0 = arith.constant 0 : i32
    %2 = arith.cmpi ne, %1, %c0_i32_0 : i32
    scf.if %2 {
      %c0_146 = arith.constant 0 : index
      %c0_147 = arith.constant 0 : index
      %c0_148 = arith.constant 0 : index
      %473 = vector.load %arg3[%c0_146, %c0_147, %c0_148] : memref<2x2x128xf32, #tpu.memory_space<vmem>>, vector<2x2x128xf32>
      %c0_149 = arith.constant 0 : index
      %c0_150 = arith.constant 0 : index
      %c0_151 = arith.constant 0 : index
      %474 = vector.load %arg12[%c0_149, %c0_150, %c0_151] : memref<2x2x128xf32, #tpu.memory_space<vmem>>, vector<2x2x128xf32>
      tpu.vector_store %arg12[%c0_149, %c0_150, %c0_151], %473 {strides = array<i32>} : memref<2x2x128xf32, #tpu.memory_space<vmem>>, vector<2x2x128xf32>,
      %c0_152 = arith.constant 0 : index
      %c0_153 = arith.constant 0 : index
      %c0_154 = arith.constant 0 : index
      %475 = vector.load %arg4[%c0_152, %c0_153, %c0_154] : memref<2x2x128xf32, #tpu.memory_space<vmem>>, vector<2x2x128xf32>
      %c0_155 = arith.constant 0 : index
      %c0_156 = arith.constant 0 : index
      %c0_157 = arith.constant 0 : index
      %476 = vector.load %arg13[%c0_155, %c0_156, %c0_157] : memref<2x2x128xf32, #tpu.memory_space<vmem>>, vector<2x2x128xf32>
      tpu.vector_store %arg13[%c0_155, %c0_156, %c0_157], %475 {strides = array<i32>} : memref<2x2x128xf32, #tpu.memory_space<vmem>>, vector<2x2x128xf32>,
    } else {
    }
    %c0 = arith.constant 0 : index
    %c0_1 = arith.constant 0 : index
    %c0_2 = arith.constant 0 : index
    %3 = vector.load %arg8[%c0, %c0_1, %c0_2] : memref<2x1x512xf32, #tpu.memory_space<vmem>>, vector<1x1x512xf32>
    %4 = vector.shape_cast %3 : vector<1x1x512xf32> to vector<1x512xf32>
    %5 = vector.shape_cast %4 : vector<1x512xf32> to vector<1x512xf32>
    %6 = vector.broadcast %5 : vector<1x512xf32> to vector<2x512xf32>
    %c1 = arith.constant 1 : index
    %c0_3 = arith.constant 0 : index
    %c0_4 = arith.constant 0 : index
    %7 = vector.load %arg8[%c1, %c0_3, %c0_4] : memref<2x1x512xf32, #tpu.memory_space<vmem>>, vector<1x1x512xf32>
    %8 = vector.shape_cast %7 : vector<1x1x512xf32> to vector<1x512xf32>
    %9 = vector.shape_cast %8 : vector<1x512xf32> to vector<1x512xf32>
    %10 = vector.broadcast %9 : vector<1x512xf32> to vector<2x512xf32>
    %c0_5 = arith.constant 0 : index
    %c0_6 = arith.constant 0 : index
    %c0_7 = arith.constant 0 : index
    %11 = vector.load %arg7[%c0_5, %c0_6, %c0_7] : memref<2x128x512xf32, #tpu.memory_space<vmem>>, vector<1x128x512xf32>
    %12 = vector.shape_cast %11 : vector<1x128x512xf32> to vector<128x512xf32>
    %c1_8 = arith.constant 1 : index
    %c0_9 = arith.constant 0 : index
    %c0_10 = arith.constant 0 : index
    %13 = vector.load %arg7[%c1_8, %c0_9, %c0_10] : memref<2x128x512xf32, #tpu.memory_space<vmem>>, vector<1x128x512xf32>
    %14 = vector.shape_cast %13 : vector<1x128x512xf32> to vector<128x512xf32>
    %c0_11 = arith.constant 0 : index
    %c0_12 = arith.constant 0 : index
    %c0_13 = arith.constant 0 : index
    %15 = vector.load %arg6[%c0_11, %c0_12, %c0_13] : memref<1x128x512xf32, #tpu.memory_space<vmem>>, vector<1x128x512xf32>
    %16 = vector.shape_cast %15 : vector<1x128x512xf32> to vector<128x512xf32>
    %c0_14 = arith.constant 0 : index
    %c0_15 = arith.constant 0 : index
    %17 = vector.load %arg5[%c0_14, %c0_15] : memref<16x512xf32, #tpu.memory_space<vmem>>, vector<16x512xf32>
    %c0_16 = arith.constant 0 : index
    %c0_17 = arith.constant 0 : index
    %c0_18 = arith.constant 0 : index
    %18 = vector.load %arg2[%c0_16, %c0_17, %c0_18] : memref<4x2x16xf32, #tpu.memory_space<vmem>>, vector<1x2x16xf32>
    %19 = vector.shape_cast %18 : vector<1x2x16xf32> to vector<2x16xf32>
    %cst = arith.constant dense<0.000000e+00> : vector<2x512xf32>
    %20 = tpu.matmul %19, %17, %cst {dimension_numbers = #tpu.dot_dimension_numbers<[1], [0], [0], [1], [0, 0, 1, 1], [], []>} : vector<2x16xf32>, vector<16x512xf32>, vector<2x512xf32> -> vector<2x512xf32>
    %21 = arith.addf %20, %6 : vector<2x512xf32>
    %c1_19 = arith.constant 1 : index
    %c0_20 = arith.constant 0 : index
    %c0_21 = arith.constant 0 : index
    %22 = vector.load %arg2[%c1_19, %c0_20, %c0_21] : memref<4x2x16xf32, #tpu.memory_space<vmem>>, vector<1x2x16xf32>
    %23 = vector.shape_cast %22 : vector<1x2x16xf32> to vector<2x16xf32>
    %cst_22 = arith.constant dense<0.000000e+00> : vector<2x512xf32>
    %24 = tpu.matmul %23, %17, %cst_22 {dimension_numbers = #tpu.dot_dimension_numbers<[1], [0], [0], [1], [0, 0, 1, 1], [], []>} : vector<2x16xf32>, vector<16x512xf32>, vector<2x512xf32> -> vector<2x512xf32>
    %25 = arith.addf %24, %6 : vector<2x512xf32>
    %c2 = arith.constant 2 : index
    %c0_23 = arith.constant 0 : index
    %c0_24 = arith.constant 0 : index
    %26 = vector.load %arg2[%c2, %c0_23, %c0_24] : memref<4x2x16xf32, #tpu.memory_space<vmem>>, vector<1x2x16xf32>
    %27 = vector.shape_cast %26 : vector<1x2x16xf32> to vector<2x16xf32>
    %cst_25 = arith.constant dense<0.000000e+00> : vector<2x512xf32>
    %28 = tpu.matmul %27, %17, %cst_25 {dimension_numbers = #tpu.dot_dimension_numbers<[1], [0], [0], [1], [0, 0, 1, 1], [], []>} : vector<2x16xf32>, vector<16x512xf32>, vector<2x512xf32> -> vector<2x512xf32>
    %29 = arith.addf %28, %6 : vector<2x512xf32>
    %c3 = arith.constant 3 : index
    %c0_26 = arith.constant 0 : index
    %c0_27 = arith.constant 0 : index
    %30 = vector.load %arg2[%c3, %c0_26, %c0_27] : memref<4x2x16xf32, #tpu.memory_space<vmem>>, vector<1x2x16xf32>
    %31 = vector.shape_cast %30 : vector<1x2x16xf32> to vector<2x16xf32>
    %cst_28 = arith.constant dense<0.000000e+00> : vector<2x512xf32>
    %32 = tpu.matmul %31, %17, %cst_28 {dimension_numbers = #tpu.dot_dimension_numbers<[1], [0], [0], [1], [0, 0, 1, 1], [], []>} : vector<2x16xf32>, vector<16x512xf32>, vector<2x512xf32> -> vector<2x512xf32>
    %33 = arith.addf %32, %6 : vector<2x512xf32>
    %c0_29 = arith.constant 0 : index
    %c0_30 = arith.constant 0 : index
    %c0_31 = arith.constant 0 : index
    %34 = vector.load %arg12[%c0_29, %c0_30, %c0_31] : memref<2x2x128xf32, #tpu.memory_space<vmem>>, vector<1x2x128xf32>
    %35 = vector.shape_cast %34 : vector<1x2x128xf32> to vector<2x128xf32>
    %c1_32 = arith.constant 1 : index
    %c0_33 = arith.constant 0 : index
    %c0_34 = arith.constant 0 : index
    %36 = vector.load %arg12[%c1_32, %c0_33, %c0_34] : memref<2x2x128xf32, #tpu.memory_space<vmem>>, vector<1x2x128xf32>
    %37 = vector.shape_cast %36 : vector<1x2x128xf32> to vector<2x128xf32>
    %c0_35 = arith.constant 0 : index
    %c0_36 = arith.constant 0 : index
    %c0_37 = arith.constant 0 : index
    %38 = vector.load %arg13[%c0_35, %c0_36, %c0_37] : memref<2x2x128xf32, #tpu.memory_space<vmem>>, vector<1x2x128xf32>
    %39 = vector.shape_cast %38 : vector<1x2x128xf32> to vector<2x128xf32>
    %c1_38 = arith.constant 1 : index
    %c0_39 = arith.constant 0 : index
    %c0_40 = arith.constant 0 : index
    %40 = vector.load %arg13[%c1_38, %c0_39, %c0_40] : memref<2x2x128xf32, #tpu.memory_space<vmem>>, vector<1x2x128xf32>
    %41 = vector.shape_cast %40 : vector<1x2x128xf32> to vector<2x128xf32>
    %cst_41 = arith.constant dense<0.000000e+00> : vector<2x512xf32>
    %42 = tpu.matmul %35, %12, %cst_41 {dimension_numbers = #tpu.dot_dimension_numbers<[1], [0], [0], [1], [0, 0, 1, 1], [], []>} : vector<2x128xf32>, vector<128x512xf32>, vector<2x512xf32> -> vector<2x512xf32>
    %43 = arith.addf %21, %42 : vector<2x512xf32>
    %44 = vector.extract_strided_slice %43 {offsets = [0, 0], sizes = [2, 128], strides = [1, 1]} : vector<2x512xf32> to vector<2x128xf32>
    %45 = math.absf %44 : vector<2x128xf32>
    %cst_42 = arith.constant dense<0.000000e+00> : vector<2xf32>
    %46 = vector.multi_reduction <add>, %45, %cst_42 [1] : vector<2x128xf32> to vector<2xf32>
    %47 = vector.shape_cast %46 : vector<2xf32> to vector<2x1xf32>
    %cst_43 = arith.constant 9.99999996E-13 : f32
    %48 = vector.broadcast %cst_43 : f32 to vector<2x1xf32>
    %49 = arith.maximumf %47, %48 : vector<2x1xf32>
    %50 = tpu.reciprocal %49 {approx = true} : vector<2x1xf32> -> vector<2x1xf32>
    %51 = vector.broadcast %50 : vector<2x1xf32> to vector<2x128xf32>
    %52 = arith.mulf %44, %51 : vector<2x128xf32>
    %53 = arith.negf %52 : vector<2x128xf32>
    %54 = math.exp %53 : vector<2x128xf32>
    %cst_44 = arith.constant 1.000000e+00 : f32
    %55 = vector.broadcast %cst_44 : f32 to vector<2x128xf32>
    %56 = arith.addf %55, %54 : vector<2x128xf32>
    %57 = arith.divf %55, %56 : vector<2x128xf32>
    %58 = vector.extract_strided_slice %43 {offsets = [0, 128], sizes = [2, 128], strides = [1, 1]} : vector<2x512xf32> to vector<2x128xf32>
    %59 = math.absf %58 : vector<2x128xf32>
    %cst_45 = arith.constant dense<0.000000e+00> : vector<2xf32>
    %60 = vector.multi_reduction <add>, %59, %cst_45 [1] : vector<2x128xf32> to vector<2xf32>
    %61 = vector.shape_cast %60 : vector<2xf32> to vector<2x1xf32>
    %cst_46 = arith.constant 9.99999996E-13 : f32
    %62 = vector.broadcast %cst_46 : f32 to vector<2x1xf32>
    %63 = arith.maximumf %61, %62 : vector<2x1xf32>
    %64 = tpu.reciprocal %63 {approx = true} : vector<2x1xf32> -> vector<2x1xf32>
    %65 = vector.broadcast %64 : vector<2x1xf32> to vector<2x128xf32>
    %66 = arith.mulf %58, %65 : vector<2x128xf32>
    %67 = arith.negf %66 : vector<2x128xf32>
    %68 = math.exp %67 : vector<2x128xf32>
    %cst_47 = arith.constant 1.000000e+00 : f32
    %69 = vector.broadcast %cst_47 : f32 to vector<2x128xf32>
    %70 = arith.addf %69, %68 : vector<2x128xf32>
    %71 = arith.divf %69, %70 : vector<2x128xf32>
    %72 = vector.extract_strided_slice %43 {offsets = [0, 256], sizes = [2, 128], strides = [1, 1]} : vector<2x512xf32> to vector<2x128xf32>
    %73 = vector.extract_strided_slice %43 {offsets = [0, 384], sizes = [2, 128], strides = [1, 1]} : vector<2x512xf32> to vector<2x128xf32>
    %74 = math.absf %73 : vector<2x128xf32>
    %cst_48 = arith.constant dense<0.000000e+00> : vector<2xf32>
    %75 = vector.multi_reduction <add>, %74, %cst_48 [1] : vector<2x128xf32> to vector<2xf32>
    %76 = vector.shape_cast %75 : vector<2xf32> to vector<2x1xf32>
    %cst_49 = arith.constant 9.99999996E-13 : f32
    %77 = vector.broadcast %cst_49 : f32 to vector<2x1xf32>
    %78 = arith.maximumf %76, %77 : vector<2x1xf32>
    %79 = tpu.reciprocal %78 {approx = true} : vector<2x1xf32> -> vector<2x1xf32>
    %80 = vector.broadcast %79 : vector<2x1xf32> to vector<2x128xf32>
    %81 = arith.mulf %73, %80 : vector<2x128xf32>
    %82 = arith.negf %81 : vector<2x128xf32>
    %83 = math.exp %82 : vector<2x128xf32>
    %cst_50 = arith.constant 1.000000e+00 : f32
    %84 = vector.broadcast %cst_50 : f32 to vector<2x128xf32>
    %85 = arith.addf %84, %83 : vector<2x128xf32>
    %86 = arith.divf %84, %85 : vector<2x128xf32>
    %87 = arith.mulf %71, %39 : vector<2x128xf32>
    %88 = arith.mulf %57, %72 : vector<2x128xf32>
    %89 = arith.addf %87, %88 : vector<2x128xf32>
    %cst_51 = arith.constant 0.000000e+00 : f32
    %90 = vector.broadcast %cst_51 : f32 to vector<2x128xf32>
    %91 = arith.maximumf %89, %90 : vector<2x128xf32>
    %92 = arith.mulf %86, %91 : vector<2x128xf32>
    %cst_52 = arith.constant dense<0.000000e+00> : vector<2x512xf32>
    %93 = tpu.matmul %92, %16, %cst_52 {dimension_numbers = #tpu.dot_dimension_numbers<[1], [0], [0], [1], [0, 0, 1, 1], [], []>} : vector<2x128xf32>, vector<128x512xf32>, vector<2x512xf32> -> vector<2x512xf32>
    %cst_53 = arith.constant dense<0.000000e+00> : vector<2x512xf32>
    %94 = tpu.matmul %37, %14, %cst_53 {dimension_numbers = #tpu.dot_dimension_numbers<[1], [0], [0], [1], [0, 0, 1, 1], [], []>} : vector<2x128xf32>, vector<128x512xf32>, vector<2x512xf32> -> vector<2x512xf32>
    %95 = arith.addf %93, %94 : vector<2x512xf32>
    %96 = arith.addf %95, %10 : vector<2x512xf32>
    %97 = vector.extract_strided_slice %96 {offsets = [0, 0], sizes = [2, 128], strides = [1, 1]} : vector<2x512xf32> to vector<2x128xf32>
    %98 = math.absf %97 : vector<2x128xf32>
    %cst_54 = arith.constant dense<0.000000e+00> : vector<2xf32>
    %99 = vector.multi_reduction <add>, %98, %cst_54 [1] : vector<2x128xf32> to vector<2xf32>
    %100 = vector.shape_cast %99 : vector<2xf32> to vector<2x1xf32>
    %cst_55 = arith.constant 9.99999996E-13 : f32
    %101 = vector.broadcast %cst_55 : f32 to vector<2x1xf32>
    %102 = arith.maximumf %100, %101 : vector<2x1xf32>
    %103 = tpu.reciprocal %102 {approx = true} : vector<2x1xf32> -> vector<2x1xf32>
    %104 = vector.broadcast %103 : vector<2x1xf32> to vector<2x128xf32>
    %105 = arith.mulf %97, %104 : vector<2x128xf32>
    %106 = arith.negf %105 : vector<2x128xf32>
    %107 = math.exp %106 : vector<2x128xf32>
    %cst_56 = arith.constant 1.000000e+00 : f32
    %108 = vector.broadcast %cst_56 : f32 to vector<2x128xf32>
    %109 = arith.addf %108, %107 : vector<2x128xf32>
    %110 = arith.divf %108, %109 : vector<2x128xf32>
    %111 = vector.extract_strided_slice %96 {offsets = [0, 128], sizes = [2, 128], strides = [1, 1]} : vector<2x512xf32> to vector<2x128xf32>
    %112 = math.absf %111 : vector<2x128xf32>
    %cst_57 = arith.constant dense<0.000000e+00> : vector<2xf32>
    %113 = vector.multi_reduction <add>, %112, %cst_57 [1] : vector<2x128xf32> to vector<2xf32>
    %114 = vector.shape_cast %113 : vector<2xf32> to vector<2x1xf32>
    %cst_58 = arith.constant 9.99999996E-13 : f32
    %115 = vector.broadcast %cst_58 : f32 to vector<2x1xf32>
    %116 = arith.maximumf %114, %115 : vector<2x1xf32>
    %117 = tpu.reciprocal %116 {approx = true} : vector<2x1xf32> -> vector<2x1xf32>
    %118 = vector.broadcast %117 : vector<2x1xf32> to vector<2x128xf32>
    %119 = arith.mulf %111, %118 : vector<2x128xf32>
    %120 = arith.negf %119 : vector<2x128xf32>
    %121 = math.exp %120 : vector<2x128xf32>
    %cst_59 = arith.constant 1.000000e+00 : f32
    %122 = vector.broadcast %cst_59 : f32 to vector<2x128xf32>
    %123 = arith.addf %122, %121 : vector<2x128xf32>
    %124 = arith.divf %122, %123 : vector<2x128xf32>
    %125 = vector.extract_strided_slice %96 {offsets = [0, 256], sizes = [2, 128], strides = [1, 1]} : vector<2x512xf32> to vector<2x128xf32>
    %126 = vector.extract_strided_slice %96 {offsets = [0, 384], sizes = [2, 128], strides = [1, 1]} : vector<2x512xf32> to vector<2x128xf32>
    %127 = math.absf %126 : vector<2x128xf32>
    %cst_60 = arith.constant dense<0.000000e+00> : vector<2xf32>
    %128 = vector.multi_reduction <add>, %127, %cst_60 [1] : vector<2x128xf32> to vector<2xf32>
    %129 = vector.shape_cast %128 : vector<2xf32> to vector<2x1xf32>
    %cst_61 = arith.constant 9.99999996E-13 : f32
    %130 = vector.broadcast %cst_61 : f32 to vector<2x1xf32>
    %131 = arith.maximumf %129, %130 : vector<2x1xf32>
    %132 = tpu.reciprocal %131 {approx = true} : vector<2x1xf32> -> vector<2x1xf32>
    %133 = vector.broadcast %132 : vector<2x1xf32> to vector<2x128xf32>
    %134 = arith.mulf %126, %133 : vector<2x128xf32>
    %135 = arith.negf %134 : vector<2x128xf32>
    %136 = math.exp %135 : vector<2x128xf32>
    %cst_62 = arith.constant 1.000000e+00 : f32
    %137 = vector.broadcast %cst_62 : f32 to vector<2x128xf32>
    %138 = arith.addf %137, %136 : vector<2x128xf32>
    %139 = arith.divf %137, %138 : vector<2x128xf32>
    %140 = arith.mulf %124, %41 : vector<2x128xf32>
    %141 = arith.mulf %110, %125 : vector<2x128xf32>
    %142 = arith.addf %140, %141 : vector<2x128xf32>
    %cst_63 = arith.constant 0.000000e+00 : f32
    %143 = vector.broadcast %cst_63 : f32 to vector<2x128xf32>
    %144 = arith.maximumf %142, %143 : vector<2x128xf32>
    %145 = arith.mulf %139, %144 : vector<2x128xf32>
    %cst_64 = arith.constant dense<0.000000e+00> : vector<2x512xf32>
    %146 = tpu.matmul %92, %12, %cst_64 {dimension_numbers = #tpu.dot_dimension_numbers<[1], [0], [0], [1], [0, 0, 1, 1], [], []>} : vector<2x128xf32>, vector<128x512xf32>, vector<2x512xf32> -> vector<2x512xf32>
    %147 = arith.addf %25, %146 : vector<2x512xf32>
    %148 = vector.extract_strided_slice %147 {offsets = [0, 0], sizes = [2, 128], strides = [1, 1]} : vector<2x512xf32> to vector<2x128xf32>
    %149 = math.absf %148 : vector<2x128xf32>
    %cst_65 = arith.constant dense<0.000000e+00> : vector<2xf32>
    %150 = vector.multi_reduction <add>, %149, %cst_65 [1] : vector<2x128xf32> to vector<2xf32>
    %151 = vector.shape_cast %150 : vector<2xf32> to vector<2x1xf32>
    %cst_66 = arith.constant 9.99999996E-13 : f32
    %152 = vector.broadcast %cst_66 : f32 to vector<2x1xf32>
    %153 = arith.maximumf %151, %152 : vector<2x1xf32>
    %154 = tpu.reciprocal %153 {approx = true} : vector<2x1xf32> -> vector<2x1xf32>
    %155 = vector.broadcast %154 : vector<2x1xf32> to vector<2x128xf32>
    %156 = arith.mulf %148, %155 : vector<2x128xf32>
    %157 = arith.negf %156 : vector<2x128xf32>
    %158 = math.exp %157 : vector<2x128xf32>
    %cst_67 = arith.constant 1.000000e+00 : f32
    %159 = vector.broadcast %cst_67 : f32 to vector<2x128xf32>
    %160 = arith.addf %159, %158 : vector<2x128xf32>
    %161 = arith.divf %159, %160 : vector<2x128xf32>
    %162 = vector.extract_strided_slice %147 {offsets = [0, 128], sizes = [2, 128], strides = [1, 1]} : vector<2x512xf32> to vector<2x128xf32>
    %163 = math.absf %162 : vector<2x128xf32>
    %cst_68 = arith.constant dense<0.000000e+00> : vector<2xf32>
    %164 = vector.multi_reduction <add>, %163, %cst_68 [1] : vector<2x128xf32> to vector<2xf32>
    %165 = vector.shape_cast %164 : vector<2xf32> to vector<2x1xf32>
    %cst_69 = arith.constant 9.99999996E-13 : f32
    %166 = vector.broadcast %cst_69 : f32 to vector<2x1xf32>
    %167 = arith.maximumf %165, %166 : vector<2x1xf32>
    %168 = tpu.reciprocal %167 {approx = true} : vector<2x1xf32> -> vector<2x1xf32>
    %169 = vector.broadcast %168 : vector<2x1xf32> to vector<2x128xf32>
    %170 = arith.mulf %162, %169 : vector<2x128xf32>
    %171 = arith.negf %170 : vector<2x128xf32>
    %172 = math.exp %171 : vector<2x128xf32>
    %cst_70 = arith.constant 1.000000e+00 : f32
    %173 = vector.broadcast %cst_70 : f32 to vector<2x128xf32>
    %174 = arith.addf %173, %172 : vector<2x128xf32>
    %175 = arith.divf %173, %174 : vector<2x128xf32>
    %176 = vector.extract_strided_slice %147 {offsets = [0, 256], sizes = [2, 128], strides = [1, 1]} : vector<2x512xf32> to vector<2x128xf32>
    %177 = vector.extract_strided_slice %147 {offsets = [0, 384], sizes = [2, 128], strides = [1, 1]} : vector<2x512xf32> to vector<2x128xf32>
    %178 = math.absf %177 : vector<2x128xf32>
    %cst_71 = arith.constant dense<0.000000e+00> : vector<2xf32>
    %179 = vector.multi_reduction <add>, %178, %cst_71 [1] : vector<2x128xf32> to vector<2xf32>
    %180 = vector.shape_cast %179 : vector<2xf32> to vector<2x1xf32>
    %cst_72 = arith.constant 9.99999996E-13 : f32
    %181 = vector.broadcast %cst_72 : f32 to vector<2x1xf32>
    %182 = arith.maximumf %180, %181 : vector<2x1xf32>
    %183 = tpu.reciprocal %182 {approx = true} : vector<2x1xf32> -> vector<2x1xf32>
    %184 = vector.broadcast %183 : vector<2x1xf32> to vector<2x128xf32>
    %185 = arith.mulf %177, %184 : vector<2x128xf32>
    %186 = arith.negf %185 : vector<2x128xf32>
    %187 = math.exp %186 : vector<2x128xf32>
    %cst_73 = arith.constant 1.000000e+00 : f32
    %188 = vector.broadcast %cst_73 : f32 to vector<2x128xf32>
    %189 = arith.addf %188, %187 : vector<2x128xf32>
    %190 = arith.divf %188, %189 : vector<2x128xf32>
    %191 = arith.mulf %175, %89 : vector<2x128xf32>
    %192 = arith.mulf %161, %176 : vector<2x128xf32>
    %193 = arith.addf %191, %192 : vector<2x128xf32>
    %cst_74 = arith.constant 0.000000e+00 : f32
    %194 = vector.broadcast %cst_74 : f32 to vector<2x128xf32>
    %195 = arith.maximumf %193, %194 : vector<2x128xf32>
    %196 = arith.mulf %190, %195 : vector<2x128xf32>
    %cst_75 = arith.constant dense<0.000000e+00> : vector<2x512xf32>
    %197 = tpu.matmul %196, %16, %cst_75 {dimension_numbers = #tpu.dot_dimension_numbers<[1], [0], [0], [1], [0, 0, 1, 1], [], []>} : vector<2x128xf32>, vector<128x512xf32>, vector<2x512xf32> -> vector<2x512xf32>
    %cst_76 = arith.constant dense<0.000000e+00> : vector<2x512xf32>
    %198 = tpu.matmul %145, %14, %cst_76 {dimension_numbers = #tpu.dot_dimension_numbers<[1], [0], [0], [1], [0, 0, 1, 1], [], []>} : vector<2x128xf32>, vector<128x512xf32>, vector<2x512xf32> -> vector<2x512xf32>
    %199 = arith.addf %197, %198 : vector<2x512xf32>
    %200 = arith.addf %199, %10 : vector<2x512xf32>
    %201 = vector.extract_strided_slice %200 {offsets = [0, 0], sizes = [2, 128], strides = [1, 1]} : vector<2x512xf32> to vector<2x128xf32>
    %202 = math.absf %201 : vector<2x128xf32>
    %cst_77 = arith.constant dense<0.000000e+00> : vector<2xf32>
    %203 = vector.multi_reduction <add>, %202, %cst_77 [1] : vector<2x128xf32> to vector<2xf32>
    %204 = vector.shape_cast %203 : vector<2xf32> to vector<2x1xf32>
    %cst_78 = arith.constant 9.99999996E-13 : f32
    %205 = vector.broadcast %cst_78 : f32 to vector<2x1xf32>
    %206 = arith.maximumf %204, %205 : vector<2x1xf32>
    %207 = tpu.reciprocal %206 {approx = true} : vector<2x1xf32> -> vector<2x1xf32>
    %208 = vector.broadcast %207 : vector<2x1xf32> to vector<2x128xf32>
    %209 = arith.mulf %201, %208 : vector<2x128xf32>
    %210 = arith.negf %209 : vector<2x128xf32>
    %211 = math.exp %210 : vector<2x128xf32>
    %cst_79 = arith.constant 1.000000e+00 : f32
    %212 = vector.broadcast %cst_79 : f32 to vector<2x128xf32>
    %213 = arith.addf %212, %211 : vector<2x128xf32>
    %214 = arith.divf %212, %213 : vector<2x128xf32>
    %215 = vector.extract_strided_slice %200 {offsets = [0, 128], sizes = [2, 128], strides = [1, 1]} : vector<2x512xf32> to vector<2x128xf32>
    %216 = math.absf %215 : vector<2x128xf32>
    %cst_80 = arith.constant dense<0.000000e+00> : vector<2xf32>
    %217 = vector.multi_reduction <add>, %216, %cst_80 [1] : vector<2x128xf32> to vector<2xf32>
    %218 = vector.shape_cast %217 : vector<2xf32> to vector<2x1xf32>
    %cst_81 = arith.constant 9.99999996E-13 : f32
    %219 = vector.broadcast %cst_81 : f32 to vector<2x1xf32>
    %220 = arith.maximumf %218, %219 : vector<2x1xf32>
    %221 = tpu.reciprocal %220 {approx = true} : vector<2x1xf32> -> vector<2x1xf32>
    %222 = vector.broadcast %221 : vector<2x1xf32> to vector<2x128xf32>
    %223 = arith.mulf %215, %222 : vector<2x128xf32>
    %224 = arith.negf %223 : vector<2x128xf32>
    %225 = math.exp %224 : vector<2x128xf32>
    %cst_82 = arith.constant 1.000000e+00 : f32
    %226 = vector.broadcast %cst_82 : f32 to vector<2x128xf32>
    %227 = arith.addf %226, %225 : vector<2x128xf32>
    %228 = arith.divf %226, %227 : vector<2x128xf32>
    %229 = vector.extract_strided_slice %200 {offsets = [0, 256], sizes = [2, 128], strides = [1, 1]} : vector<2x512xf32> to vector<2x128xf32>
    %230 = vector.extract_strided_slice %200 {offsets = [0, 384], sizes = [2, 128], strides = [1, 1]} : vector<2x512xf32> to vector<2x128xf32>
    %231 = math.absf %230 : vector<2x128xf32>
    %cst_83 = arith.constant dense<0.000000e+00> : vector<2xf32>
    %232 = vector.multi_reduction <add>, %231, %cst_83 [1] : vector<2x128xf32> to vector<2xf32>
    %233 = vector.shape_cast %232 : vector<2xf32> to vector<2x1xf32>
    %cst_84 = arith.constant 9.99999996E-13 : f32
    %234 = vector.broadcast %cst_84 : f32 to vector<2x1xf32>
    %235 = arith.maximumf %233, %234 : vector<2x1xf32>
    %236 = tpu.reciprocal %235 {approx = true} : vector<2x1xf32> -> vector<2x1xf32>
    %237 = vector.broadcast %236 : vector<2x1xf32> to vector<2x128xf32>
    %238 = arith.mulf %230, %237 : vector<2x128xf32>
    %239 = arith.negf %238 : vector<2x128xf32>
    %240 = math.exp %239 : vector<2x128xf32>
    %cst_85 = arith.constant 1.000000e+00 : f32
    %241 = vector.broadcast %cst_85 : f32 to vector<2x128xf32>
    %242 = arith.addf %241, %240 : vector<2x128xf32>
    %243 = arith.divf %241, %242 : vector<2x128xf32>
    %244 = arith.mulf %228, %142 : vector<2x128xf32>
    %245 = arith.mulf %214, %229 : vector<2x128xf32>
    %246 = arith.addf %244, %245 : vector<2x128xf32>
    %cst_86 = arith.constant 0.000000e+00 : f32
    %247 = vector.broadcast %cst_86 : f32 to vector<2x128xf32>
    %248 = arith.maximumf %246, %247 : vector<2x128xf32>
    %249 = arith.mulf %243, %248 : vector<2x128xf32>
    %cst_87 = arith.constant dense<0.000000e+00> : vector<2x512xf32>
    %250 = tpu.matmul %196, %12, %cst_87 {dimension_numbers = #tpu.dot_dimension_numbers<[1], [0], [0], [1], [0, 0, 1, 1], [], []>} : vector<2x128xf32>, vector<128x512xf32>, vector<2x512xf32> -> vector<2x512xf32>
    %251 = arith.addf %29, %250 : vector<2x512xf32>
    %252 = vector.extract_strided_slice %251 {offsets = [0, 0], sizes = [2, 128], strides = [1, 1]} : vector<2x512xf32> to vector<2x128xf32>
    %253 = math.absf %252 : vector<2x128xf32>
    %cst_88 = arith.constant dense<0.000000e+00> : vector<2xf32>
    %254 = vector.multi_reduction <add>, %253, %cst_88 [1] : vector<2x128xf32> to vector<2xf32>
    %255 = vector.shape_cast %254 : vector<2xf32> to vector<2x1xf32>
    %cst_89 = arith.constant 9.99999996E-13 : f32
    %256 = vector.broadcast %cst_89 : f32 to vector<2x1xf32>
    %257 = arith.maximumf %255, %256 : vector<2x1xf32>
    %258 = tpu.reciprocal %257 {approx = true} : vector<2x1xf32> -> vector<2x1xf32>
    %259 = vector.broadcast %258 : vector<2x1xf32> to vector<2x128xf32>
    %260 = arith.mulf %252, %259 : vector<2x128xf32>
    %261 = arith.negf %260 : vector<2x128xf32>
    %262 = math.exp %261 : vector<2x128xf32>
    %cst_90 = arith.constant 1.000000e+00 : f32
    %263 = vector.broadcast %cst_90 : f32 to vector<2x128xf32>
    %264 = arith.addf %263, %262 : vector<2x128xf32>
    %265 = arith.divf %263, %264 : vector<2x128xf32>
    %266 = vector.extract_strided_slice %251 {offsets = [0, 128], sizes = [2, 128], strides = [1, 1]} : vector<2x512xf32> to vector<2x128xf32>
    %267 = math.absf %266 : vector<2x128xf32>
    %cst_91 = arith.constant dense<0.000000e+00> : vector<2xf32>
    %268 = vector.multi_reduction <add>, %267, %cst_91 [1] : vector<2x128xf32> to vector<2xf32>
    %269 = vector.shape_cast %268 : vector<2xf32> to vector<2x1xf32>
    %cst_92 = arith.constant 9.99999996E-13 : f32
    %270 = vector.broadcast %cst_92 : f32 to vector<2x1xf32>
    %271 = arith.maximumf %269, %270 : vector<2x1xf32>
    %272 = tpu.reciprocal %271 {approx = true} : vector<2x1xf32> -> vector<2x1xf32>
    %273 = vector.broadcast %272 : vector<2x1xf32> to vector<2x128xf32>
    %274 = arith.mulf %266, %273 : vector<2x128xf32>
    %275 = arith.negf %274 : vector<2x128xf32>
    %276 = math.exp %275 : vector<2x128xf32>
    %cst_93 = arith.constant 1.000000e+00 : f32
    %277 = vector.broadcast %cst_93 : f32 to vector<2x128xf32>
    %278 = arith.addf %277, %276 : vector<2x128xf32>
    %279 = arith.divf %277, %278 : vector<2x128xf32>
    %280 = vector.extract_strided_slice %251 {offsets = [0, 256], sizes = [2, 128], strides = [1, 1]} : vector<2x512xf32> to vector<2x128xf32>
    %281 = vector.extract_strided_slice %251 {offsets = [0, 384], sizes = [2, 128], strides = [1, 1]} : vector<2x512xf32> to vector<2x128xf32>
    %282 = math.absf %281 : vector<2x128xf32>
    %cst_94 = arith.constant dense<0.000000e+00> : vector<2xf32>
    %283 = vector.multi_reduction <add>, %282, %cst_94 [1] : vector<2x128xf32> to vector<2xf32>
    %284 = vector.shape_cast %283 : vector<2xf32> to vector<2x1xf32>
    %cst_95 = arith.constant 9.99999996E-13 : f32
    %285 = vector.broadcast %cst_95 : f32 to vector<2x1xf32>
    %286 = arith.maximumf %284, %285 : vector<2x1xf32>
    %287 = tpu.reciprocal %286 {approx = true} : vector<2x1xf32> -> vector<2x1xf32>
    %288 = vector.broadcast %287 : vector<2x1xf32> to vector<2x128xf32>
    %289 = arith.mulf %281, %288 : vector<2x128xf32>
    %290 = arith.negf %289 : vector<2x128xf32>
    %291 = math.exp %290 : vector<2x128xf32>
    %cst_96 = arith.constant 1.000000e+00 : f32
    %292 = vector.broadcast %cst_96 : f32 to vector<2x128xf32>
    %293 = arith.addf %292, %291 : vector<2x128xf32>
    %294 = arith.divf %292, %293 : vector<2x128xf32>
    %295 = arith.mulf %279, %193 : vector<2x128xf32>
    %296 = arith.mulf %265, %280 : vector<2x128xf32>
    %297 = arith.addf %295, %296 : vector<2x128xf32>
    %cst_97 = arith.constant 0.000000e+00 : f32
    %298 = vector.broadcast %cst_97 : f32 to vector<2x128xf32>
    %299 = arith.maximumf %297, %298 : vector<2x128xf32>
    %300 = arith.mulf %294, %299 : vector<2x128xf32>
    %cst_98 = arith.constant dense<0.000000e+00> : vector<2x512xf32>
    %301 = tpu.matmul %300, %16, %cst_98 {dimension_numbers = #tpu.dot_dimension_numbers<[1], [0], [0], [1], [0, 0, 1, 1], [], []>} : vector<2x128xf32>, vector<128x512xf32>, vector<2x512xf32> -> vector<2x512xf32>
    %cst_99 = arith.constant dense<0.000000e+00> : vector<2x512xf32>
    %302 = tpu.matmul %249, %14, %cst_99 {dimension_numbers = #tpu.dot_dimension_numbers<[1], [0], [0], [1], [0, 0, 1, 1], [], []>} : vector<2x128xf32>, vector<128x512xf32>, vector<2x512xf32> -> vector<2x512xf32>
    %303 = arith.addf %301, %302 : vector<2x512xf32>
    %304 = arith.addf %303, %10 : vector<2x512xf32>
    %305 = vector.extract_strided_slice %304 {offsets = [0, 0], sizes = [2, 128], strides = [1, 1]} : vector<2x512xf32> to vector<2x128xf32>
    %306 = math.absf %305 : vector<2x128xf32>
    %cst_100 = arith.constant dense<0.000000e+00> : vector<2xf32>
    %307 = vector.multi_reduction <add>, %306, %cst_100 [1] : vector<2x128xf32> to vector<2xf32>
    %308 = vector.shape_cast %307 : vector<2xf32> to vector<2x1xf32>
    %cst_101 = arith.constant 9.99999996E-13 : f32
    %309 = vector.broadcast %cst_101 : f32 to vector<2x1xf32>
    %310 = arith.maximumf %308, %309 : vector<2x1xf32>
    %311 = tpu.reciprocal %310 {approx = true} : vector<2x1xf32> -> vector<2x1xf32>
    %312 = vector.broadcast %311 : vector<2x1xf32> to vector<2x128xf32>
    %313 = arith.mulf %305, %312 : vector<2x128xf32>
    %314 = arith.negf %313 : vector<2x128xf32>
    %315 = math.exp %314 : vector<2x128xf32>
    %cst_102 = arith.constant 1.000000e+00 : f32
    %316 = vector.broadcast %cst_102 : f32 to vector<2x128xf32>
    %317 = arith.addf %316, %315 : vector<2x128xf32>
    %318 = arith.divf %316, %317 : vector<2x128xf32>
    %319 = vector.extract_strided_slice %304 {offsets = [0, 128], sizes = [2, 128], strides = [1, 1]} : vector<2x512xf32> to vector<2x128xf32>
    %320 = math.absf %319 : vector<2x128xf32>
    %cst_103 = arith.constant dense<0.000000e+00> : vector<2xf32>
    %321 = vector.multi_reduction <add>, %320, %cst_103 [1] : vector<2x128xf32> to vector<2xf32>
    %322 = vector.shape_cast %321 : vector<2xf32> to vector<2x1xf32>
    %cst_104 = arith.constant 9.99999996E-13 : f32
    %323 = vector.broadcast %cst_104 : f32 to vector<2x1xf32>
    %324 = arith.maximumf %322, %323 : vector<2x1xf32>
    %325 = tpu.reciprocal %324 {approx = true} : vector<2x1xf32> -> vector<2x1xf32>
    %326 = vector.broadcast %325 : vector<2x1xf32> to vector<2x128xf32>
    %327 = arith.mulf %319, %326 : vector<2x128xf32>
    %328 = arith.negf %327 : vector<2x128xf32>
    %329 = math.exp %328 : vector<2x128xf32>
    %cst_105 = arith.constant 1.000000e+00 : f32
    %330 = vector.broadcast %cst_105 : f32 to vector<2x128xf32>
    %331 = arith.addf %330, %329 : vector<2x128xf32>
    %332 = arith.divf %330, %331 : vector<2x128xf32>
    %333 = vector.extract_strided_slice %304 {offsets = [0, 256], sizes = [2, 128], strides = [1, 1]} : vector<2x512xf32> to vector<2x128xf32>
    %334 = vector.extract_strided_slice %304 {offsets = [0, 384], sizes = [2, 128], strides = [1, 1]} : vector<2x512xf32> to vector<2x128xf32>
    %335 = math.absf %334 : vector<2x128xf32>
    %cst_106 = arith.constant dense<0.000000e+00> : vector<2xf32>
    %336 = vector.multi_reduction <add>, %335, %cst_106 [1] : vector<2x128xf32> to vector<2xf32>
    %337 = vector.shape_cast %336 : vector<2xf32> to vector<2x1xf32>
    %cst_107 = arith.constant 9.99999996E-13 : f32
    %338 = vector.broadcast %cst_107 : f32 to vector<2x1xf32>
    %339 = arith.maximumf %337, %338 : vector<2x1xf32>
    %340 = tpu.reciprocal %339 {approx = true} : vector<2x1xf32> -> vector<2x1xf32>
    %341 = vector.broadcast %340 : vector<2x1xf32> to vector<2x128xf32>
    %342 = arith.mulf %334, %341 : vector<2x128xf32>
    %343 = arith.negf %342 : vector<2x128xf32>
    %344 = math.exp %343 : vector<2x128xf32>
    %cst_108 = arith.constant 1.000000e+00 : f32
    %345 = vector.broadcast %cst_108 : f32 to vector<2x128xf32>
    %346 = arith.addf %345, %344 : vector<2x128xf32>
    %347 = arith.divf %345, %346 : vector<2x128xf32>
    %348 = arith.mulf %332, %246 : vector<2x128xf32>
    %349 = arith.mulf %318, %333 : vector<2x128xf32>
    %350 = arith.addf %348, %349 : vector<2x128xf32>
    %cst_109 = arith.constant 0.000000e+00 : f32
    %351 = vector.broadcast %cst_109 : f32 to vector<2x128xf32>
    %352 = arith.maximumf %350, %351 : vector<2x128xf32>
    %353 = arith.mulf %347, %352 : vector<2x128xf32>
    %cst_110 = arith.constant dense<0.000000e+00> : vector<2x512xf32>
    %354 = tpu.matmul %300, %12, %cst_110 {dimension_numbers = #tpu.dot_dimension_numbers<[1], [0], [0], [1], [0, 0, 1, 1], [], []>} : vector<2x128xf32>, vector<128x512xf32>, vector<2x512xf32> -> vector<2x512xf32>
    %355 = arith.addf %33, %354 : vector<2x512xf32>
    %356 = vector.extract_strided_slice %355 {offsets = [0, 0], sizes = [2, 128], strides = [1, 1]} : vector<2x512xf32> to vector<2x128xf32>
    %357 = math.absf %356 : vector<2x128xf32>
    %cst_111 = arith.constant dense<0.000000e+00> : vector<2xf32>
    %358 = vector.multi_reduction <add>, %357, %cst_111 [1] : vector<2x128xf32> to vector<2xf32>
    %359 = vector.shape_cast %358 : vector<2xf32> to vector<2x1xf32>
    %cst_112 = arith.constant 9.99999996E-13 : f32
    %360 = vector.broadcast %cst_112 : f32 to vector<2x1xf32>
    %361 = arith.maximumf %359, %360 : vector<2x1xf32>
    %362 = tpu.reciprocal %361 {approx = true} : vector<2x1xf32> -> vector<2x1xf32>
    %363 = vector.broadcast %362 : vector<2x1xf32> to vector<2x128xf32>
    %364 = arith.mulf %356, %363 : vector<2x128xf32>
    %365 = arith.negf %364 : vector<2x128xf32>
    %366 = math.exp %365 : vector<2x128xf32>
    %cst_113 = arith.constant 1.000000e+00 : f32
    %367 = vector.broadcast %cst_113 : f32 to vector<2x128xf32>
    %368 = arith.addf %367, %366 : vector<2x128xf32>
    %369 = arith.divf %367, %368 : vector<2x128xf32>
    %370 = vector.extract_strided_slice %355 {offsets = [0, 128], sizes = [2, 128], strides = [1, 1]} : vector<2x512xf32> to vector<2x128xf32>
    %371 = math.absf %370 : vector<2x128xf32>
    %cst_114 = arith.constant dense<0.000000e+00> : vector<2xf32>
    %372 = vector.multi_reduction <add>, %371, %cst_114 [1] : vector<2x128xf32> to vector<2xf32>
    %373 = vector.shape_cast %372 : vector<2xf32> to vector<2x1xf32>
    %cst_115 = arith.constant 9.99999996E-13 : f32
    %374 = vector.broadcast %cst_115 : f32 to vector<2x1xf32>
    %375 = arith.maximumf %373, %374 : vector<2x1xf32>
    %376 = tpu.reciprocal %375 {approx = true} : vector<2x1xf32> -> vector<2x1xf32>
    %377 = vector.broadcast %376 : vector<2x1xf32> to vector<2x128xf32>
    %378 = arith.mulf %370, %377 : vector<2x128xf32>
    %379 = arith.negf %378 : vector<2x128xf32>
    %380 = math.exp %379 : vector<2x128xf32>
    %cst_116 = arith.constant 1.000000e+00 : f32
    %381 = vector.broadcast %cst_116 : f32 to vector<2x128xf32>
    %382 = arith.addf %381, %380 : vector<2x128xf32>
    %383 = arith.divf %381, %382 : vector<2x128xf32>
    %384 = vector.extract_strided_slice %355 {offsets = [0, 256], sizes = [2, 128], strides = [1, 1]} : vector<2x512xf32> to vector<2x128xf32>
    %385 = vector.extract_strided_slice %355 {offsets = [0, 384], sizes = [2, 128], strides = [1, 1]} : vector<2x512xf32> to vector<2x128xf32>
    %386 = math.absf %385 : vector<2x128xf32>
    %cst_117 = arith.constant dense<0.000000e+00> : vector<2xf32>
    %387 = vector.multi_reduction <add>, %386, %cst_117 [1] : vector<2x128xf32> to vector<2xf32>
    %388 = vector.shape_cast %387 : vector<2xf32> to vector<2x1xf32>
    %cst_118 = arith.constant 9.99999996E-13 : f32
    %389 = vector.broadcast %cst_118 : f32 to vector<2x1xf32>
    %390 = arith.maximumf %388, %389 : vector<2x1xf32>
    %391 = tpu.reciprocal %390 {approx = true} : vector<2x1xf32> -> vector<2x1xf32>
    %392 = vector.broadcast %391 : vector<2x1xf32> to vector<2x128xf32>
    %393 = arith.mulf %385, %392 : vector<2x128xf32>
    %394 = arith.negf %393 : vector<2x128xf32>
    %395 = math.exp %394 : vector<2x128xf32>
    %cst_119 = arith.constant 1.000000e+00 : f32
    %396 = vector.broadcast %cst_119 : f32 to vector<2x128xf32>
    %397 = arith.addf %396, %395 : vector<2x128xf32>
    %398 = arith.divf %396, %397 : vector<2x128xf32>
    %399 = arith.mulf %383, %297 : vector<2x128xf32>
    %400 = arith.mulf %369, %384 : vector<2x128xf32>
    %401 = arith.addf %399, %400 : vector<2x128xf32>
    %cst_120 = arith.constant 0.000000e+00 : f32
    %402 = vector.broadcast %cst_120 : f32 to vector<2x128xf32>
    %403 = arith.maximumf %401, %402 : vector<2x128xf32>
    %404 = arith.mulf %398, %403 : vector<2x128xf32>
    %cst_121 = arith.constant dense<0.000000e+00> : vector<2x512xf32>
    %405 = tpu.matmul %404, %16, %cst_121 {dimension_numbers = #tpu.dot_dimension_numbers<[1], [0], [0], [1], [0, 0, 1, 1], [], []>} : vector<2x128xf32>, vector<128x512xf32>, vector<2x512xf32> -> vector<2x512xf32>
    %cst_122 = arith.constant dense<0.000000e+00> : vector<2x512xf32>
    %406 = tpu.matmul %353, %14, %cst_122 {dimension_numbers = #tpu.dot_dimension_numbers<[1], [0], [0], [1], [0, 0, 1, 1], [], []>} : vector<2x128xf32>, vector<128x512xf32>, vector<2x512xf32> -> vector<2x512xf32>
    %407 = arith.addf %405, %406 : vector<2x512xf32>
    %408 = arith.addf %407, %10 : vector<2x512xf32>
    %409 = vector.extract_strided_slice %408 {offsets = [0, 0], sizes = [2, 128], strides = [1, 1]} : vector<2x512xf32> to vector<2x128xf32>
    %410 = math.absf %409 : vector<2x128xf32>
    %cst_123 = arith.constant dense<0.000000e+00> : vector<2xf32>
    %411 = vector.multi_reduction <add>, %410, %cst_123 [1] : vector<2x128xf32> to vector<2xf32>
    %412 = vector.shape_cast %411 : vector<2xf32> to vector<2x1xf32>
    %cst_124 = arith.constant 9.99999996E-13 : f32
    %413 = vector.broadcast %cst_124 : f32 to vector<2x1xf32>
    %414 = arith.maximumf %412, %413 : vector<2x1xf32>
    %415 = tpu.reciprocal %414 {approx = true} : vector<2x1xf32> -> vector<2x1xf32>
    %416 = vector.broadcast %415 : vector<2x1xf32> to vector<2x128xf32>
    %417 = arith.mulf %409, %416 : vector<2x128xf32>
    %418 = arith.negf %417 : vector<2x128xf32>
    %419 = math.exp %418 : vector<2x128xf32>
    %cst_125 = arith.constant 1.000000e+00 : f32
    %420 = vector.broadcast %cst_125 : f32 to vector<2x128xf32>
    %421 = arith.addf %420, %419 : vector<2x128xf32>
    %422 = arith.divf %420, %421 : vector<2x128xf32>
    %423 = vector.extract_strided_slice %408 {offsets = [0, 128], sizes = [2, 128], strides = [1, 1]} : vector<2x512xf32> to vector<2x128xf32>
    %424 = math.absf %423 : vector<2x128xf32>
    %cst_126 = arith.constant dense<0.000000e+00> : vector<2xf32>
    %425 = vector.multi_reduction <add>, %424, %cst_126 [1] : vector<2x128xf32> to vector<2xf32>
    %426 = vector.shape_cast %425 : vector<2xf32> to vector<2x1xf32>
    %cst_127 = arith.constant 9.99999996E-13 : f32
    %427 = vector.broadcast %cst_127 : f32 to vector<2x1xf32>
    %428 = arith.maximumf %426, %427 : vector<2x1xf32>
    %429 = tpu.reciprocal %428 {approx = true} : vector<2x1xf32> -> vector<2x1xf32>
    %430 = vector.broadcast %429 : vector<2x1xf32> to vector<2x128xf32>
    %431 = arith.mulf %423, %430 : vector<2x128xf32>
    %432 = arith.negf %431 : vector<2x128xf32>
    %433 = math.exp %432 : vector<2x128xf32>
    %cst_128 = arith.constant 1.000000e+00 : f32
    %434 = vector.broadcast %cst_128 : f32 to vector<2x128xf32>
    %435 = arith.addf %434, %433 : vector<2x128xf32>
    %436 = arith.divf %434, %435 : vector<2x128xf32>
    %437 = vector.extract_strided_slice %408 {offsets = [0, 256], sizes = [2, 128], strides = [1, 1]} : vector<2x512xf32> to vector<2x128xf32>
    %438 = vector.extract_strided_slice %408 {offsets = [0, 384], sizes = [2, 128], strides = [1, 1]} : vector<2x512xf32> to vector<2x128xf32>
    %439 = math.absf %438 : vector<2x128xf32>
    %cst_129 = arith.constant dense<0.000000e+00> : vector<2xf32>
    %440 = vector.multi_reduction <add>, %439, %cst_129 [1] : vector<2x128xf32> to vector<2xf32>
    %441 = vector.shape_cast %440 : vector<2xf32> to vector<2x1xf32>
    %cst_130 = arith.constant 9.99999996E-13 : f32
    %442 = vector.broadcast %cst_130 : f32 to vector<2x1xf32>
    %443 = arith.maximumf %441, %442 : vector<2x1xf32>
    %444 = tpu.reciprocal %443 {approx = true} : vector<2x1xf32> -> vector<2x1xf32>
    %445 = vector.broadcast %444 : vector<2x1xf32> to vector<2x128xf32>
    %446 = arith.mulf %438, %445 : vector<2x128xf32>
    %447 = arith.negf %446 : vector<2x128xf32>
    %448 = math.exp %447 : vector<2x128xf32>
    %cst_131 = arith.constant 1.000000e+00 : f32
    %449 = vector.broadcast %cst_131 : f32 to vector<2x128xf32>
    %450 = arith.addf %449, %448 : vector<2x128xf32>
    %451 = arith.divf %449, %450 : vector<2x128xf32>
    %452 = arith.mulf %436, %350 : vector<2x128xf32>
    %453 = arith.mulf %422, %437 : vector<2x128xf32>
    %454 = arith.addf %452, %453 : vector<2x128xf32>
    %cst_132 = arith.constant 0.000000e+00 : f32
    %455 = vector.broadcast %cst_132 : f32 to vector<2x128xf32>
    %456 = arith.maximumf %454, %455 : vector<2x128xf32>
    %457 = arith.mulf %451, %456 : vector<2x128xf32>
    %c0_133 = arith.constant 0 : index
    %c0_134 = arith.constant 0 : index
    %c0_135 = arith.constant 0 : index
    %458 = vector.load %arg12[%c0_133, %c0_134, %c0_135] : memref<2x2x128xf32, #tpu.memory_space<vmem>>, vector<1x2x128xf32>
    %459 = vector.shape_cast %458 : vector<1x2x128xf32> to vector<2x128xf32>
    %460 = vector.shape_cast %404 : vector<2x128xf32> to vector<1x2x128xf32>
    tpu.vector_store %arg12[%c0_133, %c0_134, %c0_135], %460 {strides = array<i32>} : memref<2x2x128xf32, #tpu.memory_space<vmem>>, vector<1x2x128xf32>,
    %c0_136 = arith.constant 0 : index
    %c0_137 = arith.constant 0 : index
    %c0_138 = arith.constant 0 : index
    %461 = vector.load %arg13[%c0_136, %c0_137, %c0_138] : memref<2x2x128xf32, #tpu.memory_space<vmem>>, vector<1x2x128xf32>
    %462 = vector.shape_cast %461 : vector<1x2x128xf32> to vector<2x128xf32>
    %463 = vector.shape_cast %401 : vector<2x128xf32> to vector<1x2x128xf32>
    tpu.vector_store %arg13[%c0_136, %c0_137, %c0_138], %463 {strides = array<i32>} : memref<2x2x128xf32, #tpu.memory_space<vmem>>, vector<1x2x128xf32>,
    %c1_139 = arith.constant 1 : index
    %c0_140 = arith.constant 0 : index
    %c0_141 = arith.constant 0 : index
    %464 = vector.load %arg12[%c1_139, %c0_140, %c0_141] : memref<2x2x128xf32, #tpu.memory_space<vmem>>, vector<1x2x128xf32>
    %465 = vector.shape_cast %464 : vector<1x2x128xf32> to vector<2x128xf32>
    %466 = vector.shape_cast %457 : vector<2x128xf32> to vector<1x2x128xf32>
    tpu.vector_store %arg12[%c1_139, %c0_140, %c0_141], %466 {strides = array<i32>} : memref<2x2x128xf32, #tpu.memory_space<vmem>>, vector<1x2x128xf32>,
    %c1_142 = arith.constant 1 : index
    %c0_143 = arith.constant 0 : index
    %c0_144 = arith.constant 0 : index
    %467 = vector.load %arg13[%c1_142, %c0_143, %c0_144] : memref<2x2x128xf32, #tpu.memory_space<vmem>>, vector<1x2x128xf32>
    %468 = vector.shape_cast %467 : vector<1x2x128xf32> to vector<2x128xf32>
    %469 = vector.shape_cast %454 : vector<2x128xf32> to vector<1x2x128xf32>
    tpu.vector_store %arg13[%c1_142, %c0_143, %c0_144], %469 {strides = array<i32>} : memref<2x2x128xf32, #tpu.memory_space<vmem>>, vector<1x2x128xf32>,
    %c1_i32 = arith.constant 1 : i32
    %470 = arith.cmpi eq, %arg1, %c1_i32 : i32
    %471 = arith.extui %470 : i1 to i32
    %c0_i32_145 = arith.constant 0 : i32
    %472 = arith.cmpi ne, %471, %c0_i32_145 : i32
    scf.if %472 {
      %c0_146 = arith.constant 0 : index
      %c0_147 = arith.constant 0 : index
      %473 = vector.load %arg9[%c0_146, %c0_147] : memref<128x256xf32, #tpu.memory_space<vmem>>, vector<128x256xf32>
      %cst_148 = arith.constant dense<0.000000e+00> : vector<2x256xf32>
      %474 = tpu.matmul %457, %473, %cst_148 {dimension_numbers = #tpu.dot_dimension_numbers<[1], [0], [0], [1], [0, 0, 1, 1], [], []>} : vector<2x128xf32>, vector<128x256xf32>, vector<2x256xf32> -> vector<2x256xf32>
      %c0_149 = arith.constant 0 : index
      %c0_150 = arith.constant 0 : index
      %475 = vector.load %arg10[%c0_149, %c0_150] : memref<1x256xf32, #tpu.memory_space<vmem>>, vector<1x256xf32>
      %476 = vector.broadcast %475 : vector<1x256xf32> to vector<2x256xf32>
      %477 = arith.addf %474, %476 : vector<2x256xf32>
      %c0_151 = arith.constant 0 : index
      %c0_152 = arith.constant 0 : index
      %478 = vector.load %arg11[%c0_151, %c0_152] : memref<2x256xf32, #tpu.memory_space<vmem>>, vector<2x256xf32>
      tpu.vector_store %arg11[%c0_151, %c0_152], %477 {strides = array<i32>} : memref<2x256xf32, #tpu.memory_space<vmem>>, vector<2x256xf32>,
    } else {
    }
    return
  }
  func.func @transform_0(%arg0: i32, %arg1: i32) -> (i32, i32, i32) {
    %c0_i32 = arith.constant 0 : i32
    %c0_i32_0 = arith.constant 0 : i32
    return %arg1, %arg0, %c0_i32 : i32, i32, i32
  }
  func.func @transform_1(%arg0: i32, %arg1: i32) -> (i32, i32, i32) {
    %c0_i32 = arith.constant 0 : i32
    %c0_i32_0 = arith.constant 0 : i32
    %c0_i32_1 = arith.constant 0 : i32
    return %c0_i32, %arg0, %c0_i32_0 : i32, i32, i32
  }
  func.func @transform_2(%arg0: i32, %arg1: i32) -> (i32, i32, i32) {
    %c0_i32 = arith.constant 0 : i32
    %c0_i32_0 = arith.constant 0 : i32
    %c0_i32_1 = arith.constant 0 : i32
    return %c0_i32, %arg0, %c0_i32_0 : i32, i32, i32
  }
  func.func @transform_3(%arg0: i32, %arg1: i32) -> (i32, i32) {
    %c0_i32 = arith.constant 0 : i32
    %c0_i32_0 = arith.constant 0 : i32
    %c0_i32_1 = arith.constant 0 : i32
    return %c0_i32, %c0_i32_0 : i32, i32
  }
  func.func @transform_4(%arg0: i32, %arg1: i32) -> (i32, i32, i32) {
    %c0_i32 = arith.constant 0 : i32
    %c0_i32_0 = arith.constant 0 : i32
    %c0_i32_1 = arith.constant 0 : i32
    %c0_i32_2 = arith.constant 0 : i32
    return %c0_i32, %c0_i32_0, %c0_i32_1 : i32, i32, i32
  }
  func.func @transform_5(%arg0: i32, %arg1: i32) -> (i32, i32, i32) {
    %c0_i32 = arith.constant 0 : i32
    %c0_i32_0 = arith.constant 0 : i32
    %c0_i32_1 = arith.constant 0 : i32
    %c0_i32_2 = arith.constant 0 : i32
    return %c0_i32, %c0_i32_0, %c0_i32_1 : i32, i32, i32
  }
  func.func @transform_6(%arg0: i32, %arg1: i32) -> (i32, i32, i32) {
    %c0_i32 = arith.constant 0 : i32
    %c0_i32_0 = arith.constant 0 : i32
    %c0_i32_1 = arith.constant 0 : i32
    %c0_i32_2 = arith.constant 0 : i32
    return %c0_i32, %c0_i32_0, %c0_i32_1 : i32, i32, i32
  }
  func.func @transform_7(%arg0: i32, %arg1: i32) -> (i32, i32) {
    %c0_i32 = arith.constant 0 : i32
    %c0_i32_0 = arith.constant 0 : i32
    %c0_i32_1 = arith.constant 0 : i32
    return %c0_i32, %c0_i32_0 : i32, i32
  }
  func.func @transform_8(%arg0: i32, %arg1: i32) -> (i32, i32) {
    %c0_i32 = arith.constant 0 : i32
    %c0_i32_0 = arith.constant 0 : i32
    %c0_i32_1 = arith.constant 0 : i32
    return %c0_i32, %c0_i32_0 : i32, i32
  }
  func.func @transform_9(%arg0: i32, %arg1: i32) -> (i32, i32) {
    %c0_i32 = arith.constant 0 : i32
    %c0_i32_0 = arith.constant 0 : i32
    return %arg0, %c0_i32 : i32, i32
  }
}

</mosaic_0001>

<bundles_post_ra>
// kernel: tpu_custom_call.1
= control target key start
LH: loop header
LB: loop body
LE: loop exit
PB: predicated region body
PF: predicated region fallthrough
CT: control target
= control target key end

     0   :  { %s6546_s0 = inlined_call_operand.hbm [shape: f32[8,2,16], index: 0, kind: input, shape index: {}]   ;;  %s6547_s1 = inlined_call_operand.hbm [shape: f32[2,2,128], index: 1, kind: input, shape index: {}]   ;;  %s6548_s2 = inlined_call_operand.hbm [shape: f32[2,2,128], index: 2, kind: input, shape index: {}]   ;;  %s6549_s3 = inlined_call_operand.hbm [shape: f32[16,512], index: 3, kind: input, shape index: {}]   ;;  %s6550_s4 = inlined_call_operand.hbm [shape: f32[1,128,512], index: 4, kind: input, shape index: {}]   ;;  %s6551_s5 = inlined_call_operand.hbm [shape: f32[2,128,512], index: 5, kind: input, shape index: {}]   ;;  %s6552_s6 = inlined_call_operand.vmem [shape: f32[2,1,512], index: 6, kind: input, shape index: {}]   ;;  %s6553_s7 = inlined_call_operand.hbm [shape: f32[128,256], index: 7, kind: input, shape index: {}]   ;;  %s6554_s8 = inlined_call_operand.vmem [shape: f32[1,256], index: 8, kind: input, shape index: {}]   ;;  %s6555_s9 = inlined_call_operand.hbm [shape: f32[2,256], index: 9, kind: output, shape index: {}]  }
   0x1   :  { %6854 = sst [smem:[#allocation182_spill]] %s6547_s1 }
   0x2   :  { %6855 = sst [smem:[#allocation183_spill]] %s6548_s2 }
   0x3   :  { %6856 = sst [smem:[#allocation184_spill]] %s6549_s3 }
   0x4   :  { %14 = vsyncpa [#allocation5], 0 }
   0x5   :  { %16 = vsyncpa [#allocation5 + $0x1], 0 }
   0x6   :  { %17 = vsyncpa [#allocation8], 0 }
   0x7   :  { %18 = vsyncpa [#allocation11], 0 }
   0x8   :  { %19 = vsyncpa [#allocation14], 0 }
   0x9   :  { %20 = vsyncpa [#allocation6], 0  ;;  %s4542_s30 = smov 0   ;;  %s4544_s10 = smov 0  }
   0xa   :  { %s4546_s11 = smov 0   ;;  %s4548_s12 = smov 0  }
   0xb   :  { %s4550_s13 = smov 0   ;;  %s4552_s14 = smov 0  }
   0xc LB: > { %s6556_s15 = sadd.s32 4294967295, %s4475_s14   ;;  %p3672_p0 = scmp.ge.s32.totalorder %s4475_s14, 1  ;;  %s4475_s14 = sphi %s4552_s14, %s26_s14   ;;  %s4471_s13 = sphi %s4550_s13, %s7477_s13   ;;  %s4467_s12 = sphi %s4548_s12, %s7476_s12   ;;  %s4463_s11 = sphi %s4546_s11, %s7475_s11   ;;  %s4459_s10 = sphi %s4544_s10, %s7474_s10   ;;  %s4455_s30 = sphi %s4542_s30, %s7473_s30  }
   0xd   : > { %p4576_p1 = scmp.eq.s32.totalorder %s6556_s15, 0  ;;  %p275_p2 = scmp.lt.s32.totalorder %s4475_s14, 3 }
   0xe   : > { %s4477_s18 = smov [#allocation7]   ;;  %s4478_s21 = smov [#allocation10]  }
   0xf   : > { %p4581_p3 = pnand %p3672_p0, %p275_p2  ;;  %s289_s19 = sshll.u32 %s4477_s18, 4  ;;  %s290_s19 = int_to_ptr.vmem [resolvable:$true] %s289_s19 }
  0x10   : > { %s317_s22 = sshll.u32 %s4478_s21, 4  ;;  %s4212_s24 = scalar_lea.vmem %s290_s19, 64  ;;  %s318_s22 = int_to_ptr.vmem [resolvable:$true] %s317_s22 }
  0x11   : > { %p3765_p4 = pneg %p4581_p3  ;;  %p4213_p7 = scmp.ne.s32.totalorder %s290_s19, %s4212_s24 }
  0x12   : > { %p4220_p10 = scmp.lt.s32.totalorder %s290_s19, %s290_s19  ;;  %p4221_p11 = scmp.lt.s32.totalorder %s4212_s24, %s4212_s24 }
  0x13   : > { %p4589_p5 = pnand %p3765_p4, %p4576_p1 }
  0x14   : > { %p4222_p12 = por %p4221_p11, %p4220_p10 }
  0x15   : > { %p4595_p6 = pneg %p4589_p5 }
  0x17   : > { %p4215_p8 = pnand %p4213_p7, %p4595_p6 }
  0x19   : > { %p4216_p9 = pneg %p4215_p8 }
  0x1b   : > { %p4223_p13 = pnand %p4222_p12, %p4216_p9 }
  0x1d   : > { %4226 = shalt.err (!%p4223_p13)
}
  0x1e   : > { %s6558_s25 = smov 32   ;;  %s6559_s26 = smov 2  }
  0x1f   : > { %s6861_s1 = sld [smem:[#allocation182_spill]]  ;;  %s4238_s29 = scalar_lea.vmem %s318_s22, 1024 }
  0x20   : > { %p4239_p0 = scmp.ne.s32.totalorder %s318_s22, %s4238_s29  ;;  %p4246_p7 = scmp.lt.s32.totalorder %s318_s22, %s318_s22 }
  0x21   : > { %p4247_p8 = scmp.lt.s32.totalorder %s4238_s29, %s4238_s29 }
  0x22   : > { %p4241_p2 = pnand %p4239_p0, %p4595_p6 }
  0x23   : > { %p4248_p9 = por %p4247_p8, %p4246_p7 }
  0x24   : > { %p4242_p4 = pneg %p4241_p2 }
  0x25   : > { %3768 = dma.hbm_to_vmem [thread:$0]  (!%p4589_p5), %s6861_s1, 64, %s290_s19, [#allocation8], %s6558_s25, %s6558_s25, %s6559_s26  }
  0x26   : > { %p4249_p10 = pnand %p4248_p9, %p4242_p4 }
  0x28   : > { %4252 = shalt.err (!%p4249_p10)
}
  0x29   : > { %s6557_s18 = smov 512   ;;  %s6862_s3 = sld [smem:[#allocation184_spill]] }
  0x2a   : > { %s4482_s19 = smov [#allocation13]   ;;  %s4483_s28 = smov [#allocation9]  }
  0x2b   : > { %s343_s27 = sshll.u32 %s4482_s19, 4  ;;  %s304_s15 = sshll.u32 %s4483_s28, 4  ;;  %s344_s27 = int_to_ptr.vmem [resolvable:$true] %s343_s27  ;;  %s305_s15 = int_to_ptr.vmem [resolvable:$true] %s304_s15 }
  0x2c   : > { %s4264_s29 = scalar_lea.vmem %s344_s27, 16384  ;;  %p4272_p0 = scmp.lt.s32.totalorder %s344_s27, %s344_s27 }
  0x2d   : > { %p4265_p11 = scmp.ne.s32.totalorder %s344_s27, %s4264_s29  ;;  %p4273_p2 = scmp.lt.s32.totalorder %s4264_s29, %s4264_s29 }
  0x2f   : > { %3774 = dma.hbm_to_vmem [thread:$0]  (!%p4589_p5), %s6862_s3, 1024, %s318_s22, [#allocation11], %s6557_s18, %s6557_s18, %s6558_s25  }
  0x30   : > { %p4267_p12 = pnand %p4265_p11, %p4595_p6  ;;  %p4274_p4 = por %p4273_p2, %p4272_p0 }
  0x32   : > { %p4268_p13 = pneg %p4267_p12 }
  0x34   : > { %p4275_p7 = pnand %p4274_p4, %p4268_p13 }
  0x36   : > { %4278 = shalt.err (!%p4275_p7)
}
  0x37   : > { %3780 = dma.hbm_to_vmem [thread:$0]  (!%p4589_p5), %s6551_s5, 16384, %s344_s27, [#allocation14], %s6557_s18, %s6557_s18, %s6558_s25  }
  0x38   : > { %s4290_s24 = scalar_lea.vmem %s305_s15, 64  ;;  %p4298_p11 = scmp.lt.s32.totalorder %s305_s15, %s305_s15 }
  0x39   : > { %p4291_p8 = scmp.ne.s32.totalorder %s305_s15, %s4290_s24  ;;  %p4299_p12 = scmp.lt.s32.totalorder %s4290_s24, %s4290_s24 }
  0x3b   : > { %p4293_p9 = pnand %p4291_p8, %p4595_p6  ;;  %p4300_p13 = por %p4299_p12, %p4298_p11 }
  0x3d   : > { %p4294_p10 = pneg %p4293_p9 }
  0x3f   : > { %p4301_p0 = pnand %p4300_p13, %p4294_p10 }
  0x41   : > { %4304 = shalt.err (!%p4301_p0)
}
  0x42   : > { %s6863_s2 = sld [smem:[#allocation183_spill]]  ;;  %s4484_s27 = smov [#allocation12]  }
  0x43   : > { %s330_s29 = sshll.u32 %s4484_s27, 4  ;;  %s4485_s22 = smov [#allocation15]   ;;  %s331_s29 = int_to_ptr.vmem [resolvable:$true] %s330_s29 }
  0x44   : > { %s359_s21 = sshll.u32 %s4485_s22, 4  ;;  %s4316_s18 = scalar_lea.vmem %s331_s29, 8192  ;;  %s360_s21 = int_to_ptr.vmem [resolvable:$true] %s359_s21 }
  0x45   : > { %p4317_p2 = scmp.ne.s32.totalorder %s331_s29, %s4316_s18  ;;  %p4324_p8 = scmp.lt.s32.totalorder %s331_s29, %s331_s29 }
  0x46   : > { %p4325_p9 = scmp.lt.s32.totalorder %s4316_s18, %s4316_s18 }
  0x47   : > { %p4319_p4 = pnand %p4317_p2, %p4595_p6 }
  0x48   : > { %3771 = dma.hbm_to_vmem [thread:$0]  (!%p4589_p5), %s6863_s2, 64, %s305_s15, [#allocation8], %s6558_s25, %s6558_s25, %s6559_s26  }
  0x49   : > { %p4320_p7 = pneg %p4319_p4  ;;  %p4326_p10 = por %p4325_p9, %p4324_p8 }
  0x4b   : > { %p4327_p11 = pnand %p4326_p10, %p4320_p7 }
  0x4d   : > { %4330 = shalt.err (!%p4327_p11)
}
  0x4e   : > { %s6864_s24 = smov 512   ;;  %s4342_s28 = scalar_lea.vmem %s360_s21, 4096 }
  0x4f   : > { %3777 = dma.hbm_to_vmem [thread:$0]  (!%p4589_p5), %s6550_s4, 8192, %s331_s29, [#allocation11], %s6864_s24, %s6864_s24, %s6558_s25  }
  0x50   : > { %p4343_p12 = scmp.ne.s32.totalorder %s360_s21, %s4342_s28  ;;  %p4350_p2 = scmp.lt.s32.totalorder %s360_s21, %s360_s21 }
  0x51   : > { %p4351_p4 = scmp.lt.s32.totalorder %s4342_s28, %s4342_s28 }
  0x52   : > { %p4345_p13 = pnand %p4343_p12, %p4595_p6 }
  0x53   : > { %p4352_p7 = por %p4351_p4, %p4350_p2 }
  0x54   : > { %p4346_p0 = pneg %p4345_p13 }
  0x56   : > { %p4353_p8 = pnand %p4352_p7, %p4346_p0 }
  0x58   : > { %4356 = shalt.err (!%p4353_p8)
}
  0x59   : > { %s4486_s18 = smov 256   ;;  %s4487_s23 = smov 16  }
  0x5a   : > { %3783 = dma.hbm_to_vmem [thread:$0]  (!%p4589_p5), %s6553_s7, 4096, %s360_s21, [#allocation14], %s4486_s18, %s4486_s18, %s4487_s23  }
  0x5b   : > { %s35_s22 = sadd.s32 1, %s4471_s13  ;;  %s47_s24 = sadd.s32 1, %s4463_s11 }
  0x5c   : > { %p36_p6 = scmp.ge.s32.totalorder %s35_s22, 2  ;;  %p54_p9 = scmp.ne.s32.totalorder %s4463_s11, %s4459_s10 }
  0x5d   : > { %p55_p10 = scmp.eq.s32.totalorder %s4475_s14, 0  ;;  %p60_p12 = scmp.ne.s32.totalorder %s4459_s10, %s4455_s30 }
  0x5e   : > { %s7479_s22 = smov (%p36_p6, %s35_s22), 0  ;;  %p3794_p13 = scmp.lt.s32.totalorder %s4475_s14, 2 }
  0x5f   : > { %p4663_p11 = por %p55_p10, %p54_p9  ;;  %s42_s20 = ssub.s32 %s4471_s13, %s7479_s22 }
  0x60   : > { %p45_p0 = scmp.eq.s32.totalorder %s42_s20, 0  ;;  %p4674_p2 = por %p4576_p1, %p60_p12 }
  0x61   : > { %s376_s19 = sand.u32 1, %s4463_s11   ;;  %s3734_s28 = sshll.u32 %s4471_s13, 7 }
  0x62   : > { %s4681_s18 = scalar_select %p45_p0, %s4463_s11, %s47_s24  }
  0x63   : > { %s3680_s23 = sshll.u32 %s376_s19, 3  ;;  %s387_s25 = scalar_lea.hbm %s6546_s0, %s3734_s28 }
  0x64   : > { %s380_s26 = scalar_lea.vmem [#allocation4], %s3680_s23  ;;  %p4688_p5 = pnand %p3794_p13, %p4663_p11 }
  0x65   : > { %s388_s1 = sshll.u32 %s380_s26, 4  ;;  %s377_s20 = scalar_lea.sflag [#allocation5], %s376_s19  ;;  %s389_s1 = int_to_ptr.vmem [resolvable:$true] %s388_s1 }
  0x66   : > { %p4359_p4 = pneg %p4688_p5  ;;  %s4370_s2 = scalar_lea.vmem %s389_s1, 128 }
  0x67   : > { %p4371_p7 = scmp.ne.s32.totalorder %s389_s1, %s4370_s2  ;;  %s4488_s24 = smov [#allocation4]  }
  0x68   : > { %s4375_s3 = sshll.u32 %s4488_s24, 4  ;;  %s4376_s3 = int_to_ptr.vmem [resolvable:$false] %s4375_s3 }
  0x69   : > { %p4373_p8 = pnand %p4371_p7, %p4359_p4  ;;  %s4377_s28 = scalar_lea.vmem %s4376_s3, 256 }
  0x6a   : > { %p4378_p9 = scmp.lt.s32.totalorder %s389_s1, %s4376_s3  ;;  %p4379_p10 = scmp.lt.s32.totalorder %s4377_s28, %s4370_s2 }
  0x6b   : > { %p4374_p6 = pneg %p4373_p8 }
  0x6c   : > { %p4380_p12 = por %p4379_p10, %p4378_p9 }
  0x6e   : > { %p4381_p11 = pnand %p4380_p12, %p4374_p6 }
  0x70   : > { %4384 = shalt.err (!%p4381_p11)
}
  0x71   : > { %s6868_s26 = smov 2   ;;  %s6869_s15 = smov 32  }
  0x72   : > { %3787 = dma.hbm_to_vmem [thread:$0]  (!%p4688_p5), %s387_s25, 128, %s389_s1, %s377_s20, %s6869_s15, %s6869_s15, %s6868_s26  }
  0x73   : > { %400 = sbr.rel (%p4581_p3) target bundleno = 2535 (0x9e7), region = 56 }
  0x78   : > { %s402_s19 = sand.u32 1, %s4459_s10  }
  0x79   : > { %s3684_s23 = sshll.u32 %s402_s19, 3  ;;  %s403_s27 = scalar_lea.sflag [#allocation5], %s402_s19 }
  0x7a   : > { %s4702_s29 = scalar_lea.vmem [#allocation4], %s3684_s23 }
  0x7b   : > { %4434 = dma.done.wait (%p4674_p2), %s403_s27, 128  }
  0x7c   : > { %4436 = vsyncadd (%p4674_p2), %s403_s27, 4294967168 }
  0x7d   : > { %4438 = dma.done.wait (%p4576_p1), [#allocation8], 128  }
  0x7e   : > { %4440 = vsyncadd (%p4576_p1), [#allocation8], 4294967168 }
  0x7f   : > { %4442 = dma.done.wait (%p4576_p1), [#allocation11], 9216  }
  0x80   : > { %4444 = vsyncadd (%p4576_p1), [#allocation11], 4294958080 }
  0x81   : > { %4446 = dma.done.wait (%p4576_p1), [#allocation14], 20480  }
  0x82   : > { %4448 = vsyncadd (%p4576_p1), [#allocation14], 4294946816  ;;  %p3691_p3 = scmp.ne.s32.totalorder %s4467_s12, 0 }
  0x84   : > { %464 = sbr.rel (%p3691_p3) target bundleno = 139 (0x8b), region = 88 }
  0x89   : > { %v465_v0 = vld [vmem:[#allocation7] sm:$0xf]   ;;  %v469_v1 = vld [vmem:[#allocation9] sm:$0xf]  }
  0x8a   : > { %467 = vst [vmem:[#allocation2] sm:$0xf] %v465_v0   ;;  %471 = vst [vmem:[#allocation3] sm:$0xf] %v469_v1  }
  0x8b PF: > { %v716_v2 = vld [vmem:[#allocation10 + $0x28] sm:$0xff]  ;;  %v718_v3 = vld [vmem:[#allocation10 + $0x38] sm:$0xff]  ;;  %v715_v4 = vld [vmem:[#allocation10 + $0x20] sm:$0xff]  ;;  %vm720_vm0 = vcmask 130048   ;;  %v6560_v11 = vmov 0.0   ;;  %vm1460_vm1 = vcmask 1041408  }
  0x8c   : > { %752 = vmatprep.subr.mxu0 %v716_v2  ;;  %823 = vmatprep.subr.mxu1 %v718_v3  ;;  %v717_v5 = vld [vmem:[#allocation10 + $0x30] sm:$0xff]  ;;  %v712_v6 = vld [vmem:[#allocation10 + $0x8] sm:$0xff]  ;;  %v714_v7 = vld [vmem:[#allocation10 + $0x18] sm:$0xff]  ;;  %p3728_p1 = scmp.ne.s32.totalorder %s4467_s12, 1 }
  0x8d   : > { %753 = vmatpush1.msra.mxu0 %v715_v4  ;;  %824 = vmatpush1.msra.mxu1 %v717_v5  ;;  %v711_v8 = vld [vmem:[#allocation10] sm:$0xff]  ;;  %v713_v9 = vld [vmem:[#allocation10 + $0x10] sm:$0xff]  ;;  %v4737_v15 = vld [vmem:[#allocation13 + $0x1e8] sm:$0xff] }
  0x8e   : > { %v719_v10 = vld [vmem:[%s4702_s29] sm:$0x3]  ;;  %754 = vmatprep.subr.mxu0 %v712_v6  ;;  %825 = vmatprep.subr.mxu1 %v714_v7  ;;  %v3695_v12 = vld [vmem:[%s4702_s29 + $0x2] sm:$0x3]  ;;  %v3698_v13 = vld [vmem:[%s4702_s29 + $0x4] sm:$0x3] }
  0x8f   : > { %755 = vmatpush1.msra.mxu0 %v711_v8  ;;  %788 = vmatprep.mubr.f32.mxu0 %v6560_v11  ;;  %v3701_v14 = vld [vmem:[%s4702_s29 + $0x6] sm:$0x3]  ;;  %v4740_v16 = vld [vmem:[#allocation13 + $0x1f8] sm:$0xff]  ;;  %v4743_v17 = vld [vmem:[#allocation13 + $0x1e0] sm:$0xff] }
  0x90   : > { %826 = vmatpush1.msra.mxu1 %v713_v9  ;;  %3693 = vmatmul.mubr.msk.f32.vlgmr.msra.gmra.mxu0 %vm720_vm0, %v719_v10  ;;  %v4745_v18 = vld [vmem:[#allocation13 + $0x1f0] sm:$0xff]  ;;  %v4749_v19 = vld [vmem:[#allocation13 + $0x1c8] sm:$0xff]  ;;  %v4751_v20 = vld [vmem:[#allocation13 + $0x1d8] sm:$0xff] }
  0x91   : > { %859 = vmatprep.mubr.f32.mxu1 %v6560_v11  ;;  %899 = vmatprep.subr.mxu0 %v716_v2  ;;  %v4755_v21 = vld [vmem:[#allocation13 + $0x1c0] sm:$0xff]  ;;  %v4757_v22 = vld [vmem:[#allocation13 + $0x1d0] sm:$0xff]  ;;  %v4761_v23 = vld [vmem:[#allocation13 + $0x1a8] sm:$0xff] }
  0x92   : > { %970 = vmatprep.subr.mxu1 %v718_v3  ;;  %3694 = vmatmul.mubr.msk.f32.vlgmr.msra.gmra.mxu1 %vm720_vm0, %v719_v10  ;;  %v4763_v24 = vld [vmem:[#allocation13 + $0x1b8] sm:$0xff]  ;;  %v4767_v25 = vld [vmem:[#allocation13 + $0x1a0] sm:$0xff]  ;;  %v4769_v26 = vld [vmem:[#allocation13 + $0x1b0] sm:$0xff] }
  0x93   : > { %900 = vmatpush1.msra.mxu0 %v715_v4  ;;  %971 = vmatpush1.msra.mxu1 %v717_v5  ;;  %v4773_v27 = vld [vmem:[#allocation13 + $0x188] sm:$0xff]  ;;  %v4775_v28 = vld [vmem:[#allocation13 + $0x198] sm:$0xff]  ;;  %v4779_v29 = vld [vmem:[#allocation13 + $0x180] sm:$0xff] }
  0x94   : > { %901 = vmatprep.subr.mxu0 %v712_v6  ;;  %972 = vmatprep.subr.mxu1 %v714_v7  ;;  %v4781_v30 = vld [vmem:[#allocation13 + $0x190] sm:$0xff]  ;;  %v4785_v31 = vld [vmem:[#allocation13 + $0x168] sm:$0xff]  ;;  %v4787_v32 = vld [vmem:[#allocation13 + $0x178] sm:$0xff] }
  0x95   : > { %902 = vmatpush1.msra.mxu0 %v711_v8  ;;  %935 = vmatprep.mubr.f32.mxu0 %v6560_v11  ;;  %v4791_v33 = vld [vmem:[#allocation13 + $0x160] sm:$0xff]  ;;  %v4793_v34 = vld [vmem:[#allocation13 + $0x170] sm:$0xff]  ;;  %v4797_v35 = vld [vmem:[#allocation13 + $0x148] sm:$0xff] }
  0x96   : > { %973 = vmatpush1.msra.mxu1 %v713_v9  ;;  %3696 = vmatmul.mubr.msk.f32.vlgmr.msra.gmra.mxu0 %vm720_vm0, %v3695_v12  ;;  %v4799_v36 = vld [vmem:[#allocation13 + $0x158] sm:$0xff]  ;;  %v4803_v37 = vld [vmem:[#allocation13 + $0x140] sm:$0xff]  ;;  %v4805_v38 = vld [vmem:[#allocation13 + $0x150] sm:$0xff] }
  0x97   : > { %1006 = vmatprep.mubr.f32.mxu1 %v6560_v11  ;;  %1046 = vmatprep.subr.mxu0 %v716_v2  ;;  %v4809_v39 = vld [vmem:[#allocation13 + $0x128] sm:$0xff]  ;;  %v4811_v40 = vld [vmem:[#allocation13 + $0x138] sm:$0xff]  ;;  %v4815_v41 = vld [vmem:[#allocation13 + $0x120] sm:$0xff] }
  0x98   : > { %1117 = vmatprep.subr.mxu1 %v718_v3  ;;  %3697 = vmatmul.mubr.msk.f32.vlgmr.msra.gmra.mxu1 %vm720_vm0, %v3695_v12  ;;  %v4817_v42 = vld [vmem:[#allocation13 + $0x130] sm:$0xff]  ;;  %v4821_v43 = vld [vmem:[#allocation13 + $0x108] sm:$0xff]  ;;  %v4823_v44 = vld [vmem:[#allocation13 + $0x118] sm:$0xff] }
  0x99   : > { %1047 = vmatpush1.msra.mxu0 %v715_v4  ;;  %1118 = vmatpush1.msra.mxu1 %v717_v5  ;;  %v4827_v45 = vld [vmem:[#allocation13 + $0x100] sm:$0xff]  ;;  %v4829_v46 = vld [vmem:[#allocation13 + $0x110] sm:$0xff]  ;;  %v4833_v47 = vld [vmem:[#allocation13 + $0xe8] sm:$0xff] }
  0x9a   : > { %1048 = vmatprep.subr.mxu0 %v712_v6  ;;  %1119 = vmatprep.subr.mxu1 %v714_v7  ;;  %v4835_v48 = vld [vmem:[#allocation13 + $0xf8] sm:$0xff]  ;;  %v4839_v49 = vld [vmem:[#allocation13 + $0xe0] sm:$0xff]  ;;  %v4841_v50 = vld [vmem:[#allocation13 + $0xf0] sm:$0xff] }
  0x9b   : > { %1049 = vmatpush1.msra.mxu0 %v711_v8  ;;  %1082 = vmatprep.mubr.f32.mxu0 %v6560_v11  ;;  %v4845_v51 = vld [vmem:[#allocation13 + $0xc8] sm:$0xff]  ;;  %v4847_v52 = vld [vmem:[#allocation13 + $0xd8] sm:$0xff]  ;;  %v4851_v53 = vld [vmem:[#allocation13 + $0xc0] sm:$0xff] }
  0x9c   : > { %1120 = vmatpush1.msra.mxu1 %v713_v9  ;;  %3699 = vmatmul.mubr.msk.f32.vlgmr.msra.gmra.mxu0 %vm720_vm0, %v3698_v13  ;;  %v4853_v54 = vld [vmem:[#allocation13 + $0xd0] sm:$0xff]  ;;  %v4857_v55 = vld [vmem:[#allocation13 + $0xa8] sm:$0xff]  ;;  %v4859_v56 = vld [vmem:[#allocation13 + $0xb8] sm:$0xff] }
  0x9d   : > { %1153 = vmatprep.mubr.f32.mxu1 %v6560_v11  ;;  %1193 = vmatprep.subr.mxu0 %v716_v2  ;;  %6870 = vst [vmem:[#allocation22_spill] sm:$0xff] %v4853_v54  ;;  %6871 = vst [vmem:[#allocation23_spill] sm:$0xff] %v4857_v55  ;;  %v4863_v57 = vld [vmem:[#allocation13 + $0xa0] sm:$0xff]  ;;  %v4865_v58 = vld [vmem:[#allocation13 + $0xb0] sm:$0xff] }
  0x9e   : > { %1264 = vmatprep.subr.mxu1 %v718_v3  ;;  %3700 = vmatmul.mubr.msk.f32.vlgmr.msra.gmra.mxu1 %vm720_vm0, %v3698_v13  ;;  %6872 = vst [vmem:[#allocation24_spill] sm:$0xff] %v4859_v56  ;;  %6873 = vst [vmem:[#allocation25_spill] sm:$0xff] %v4863_v57  ;;  %v4869_v59 = vld [vmem:[#allocation13 + $0x88] sm:$0xff]  ;;  %v4871_v60 = vld [vmem:[#allocation13 + $0x98] sm:$0xff] }
  0x9f   : > { %1194 = vmatpush1.msra.mxu0 %v715_v4  ;;  %1265 = vmatpush1.msra.mxu1 %v717_v5  ;;  %6874 = vst [vmem:[#allocation26_spill] sm:$0xff] %v4865_v58  ;;  %6875 = vst [vmem:[#allocation27_spill] sm:$0xff] %v4869_v59  ;;  %v4875_v61 = vld [vmem:[#allocation13 + $0x80] sm:$0xff]  ;;  %v4877_v62 = vld [vmem:[#allocation13 + $0x90] sm:$0xff] }
  0xa0   : > { %1195 = vmatprep.subr.mxu0 %v712_v6  ;;  %1266 = vmatprep.subr.mxu1 %v714_v7  ;;  %6876 = vst [vmem:[#allocation28_spill] sm:$0xff] %v4871_v60  ;;  %6877 = vst [vmem:[#allocation29_spill] sm:$0xff] %v4875_v61  ;;  %v4881_v63 = vld [vmem:[#allocation13 + $0x68] sm:$0xff]  ;;  %v4883_v0 = vld [vmem:[#allocation13 + $0x78] sm:$0xff] }
  0xa1   : > { %1196 = vmatpush1.msra.mxu0 %v711_v8  ;;  %1229 = vmatprep.mubr.f32.mxu0 %v6560_v11  ;;  %6878 = vst [vmem:[#allocation30_spill] sm:$0xff] %v4877_v62  ;;  %6879 = vst [vmem:[#allocation31_spill] sm:$0xff] %v4881_v63  ;;  %v4887_v1 = vld [vmem:[#allocation13 + $0x60] sm:$0xff]  ;;  %v4889_v2 = vld [vmem:[#allocation13 + $0x70] sm:$0xff] }
  0xa2   : > { %1267 = vmatpush1.msra.mxu1 %v713_v9  ;;  %3702 = vmatmul.mubr.msk.f32.vlgmr.msra.gmra.mxu0 %vm720_vm0, %v3701_v14  ;;  %6880 = vst [vmem:[#allocation32_spill] sm:$0xff] %v4883_v0  ;;  %6881 = vst [vmem:[#allocation33_spill] sm:$0xff] %v4887_v1  ;;  %v4893_v3 = vld [vmem:[#allocation13 + $0x48] sm:$0xff]  ;;  %v4895_v4 = vld [vmem:[#allocation13 + $0x58] sm:$0xff] }
  0xa3   : > { %1300 = vmatprep.mubr.f32.mxu1 %v6560_v11  ;;  %1313 = vmatprep.subr.mxu0 %v4737_v15  ;;  %6882 = vst [vmem:[#allocation34_spill] sm:$0xff] %v4889_v2  ;;  %6883 = vst [vmem:[#allocation35_spill] sm:$0xff] %v4893_v3  ;;  %v4899_v5 = vld [vmem:[#allocation13 + $0x40] sm:$0xff]  ;;  %v4901_v6 = vld [vmem:[#allocation13 + $0x50] sm:$0xff] }
  0xa4   : > { %1384 = vmatprep.subr.mxu1 %v4740_v16  ;;  %3703 = vmatmul.mubr.msk.f32.vlgmr.msra.gmra.mxu1 %vm720_vm0, %v3701_v14  ;;  %6884 = vst [vmem:[#allocation36_spill] sm:$0xff] %v4895_v4  ;;  %6885 = vst [vmem:[#allocation37_spill] sm:$0xff] %v4899_v5  ;;  %v4905_v7 = vld [vmem:[#allocation13 + $0x28] sm:$0xff]  ;;  %v4907_v8 = vld [vmem:[#allocation13 + $0x38] sm:$0xff] }
  0xa5   : > { %1314 = vmatpush1.msra.mxu0 %v4743_v17  ;;  %1385 = vmatpush1.msra.mxu1 %v4745_v18  ;;  %6886 = vst [vmem:[#allocation38_spill] sm:$0xff] %v4901_v6  ;;  %6887 = vst [vmem:[#allocation39_spill] sm:$0xff] %v4905_v7  ;;  %v4911_v9 = vld [vmem:[#allocation13 + $0x20] sm:$0xff]  ;;  %v4913_v10 = vld [vmem:[#allocation13 + $0x30] sm:$0xff] }
  0xa6   : > { %1315 = vmatprep.subr.mxu0 %v4749_v19  ;;  %1386 = vmatprep.subr.mxu1 %v4751_v20  ;;  %6888 = vst [vmem:[#allocation40_spill] sm:$0xff] %v4907_v8  ;;  %6889 = vst [vmem:[#allocation41_spill] sm:$0xff] %v4911_v9  ;;  %v4917_v12 = vld [vmem:[#allocation13 + $0x8] sm:$0xff]  ;;  %v4919_v13 = vld [vmem:[#allocation13 + $0x18] sm:$0xff] }
  0xa7   : > { %1316 = vmatpush1.msra.mxu0 %v4755_v21  ;;  %1387 = vmatpush1.msra.mxu1 %v4757_v22  ;;  %6890 = vst [vmem:[#allocation42_spill] sm:$0xff] %v4913_v10  ;;  %6891 = vst [vmem:[#allocation43_spill] sm:$0xff] %v4917_v12  ;;  %v4923_v14 = vld [vmem:[#allocation13] sm:$0xff]  ;;  %v4927_v11 = vld [vmem:[#allocation13 + $0x10] sm:$0xff] }
  0xa8   : > { %1317 = vmatprep.subr.mxu0 %v4761_v23  ;;  %1388 = vmatprep.subr.mxu1 %v4763_v24  ;;  %6892 = vst [vmem:[#allocation44_spill] sm:$0xff] %v4919_v13  ;;  %6893 = vst [vmem:[#allocation45_spill] sm:$0xff] %v4923_v14 }
  0xa9   : > { %1318 = vmatpush1.msra.mxu0 %v4767_v25  ;;  %1389 = vmatpush1.msra.mxu1 %v4769_v26  ;;  %6894 = vst [vmem:[#allocation46_spill] sm:$0xff] %v4927_v11 }
  0xaa   : > { %1319 = vmatprep.subr.mxu0 %v4773_v27  ;;  %1390 = vmatprep.subr.mxu1 %v4775_v28 }
  0xab   : > { %1320 = vmatpush1.msra.mxu0 %v4779_v29  ;;  %1391 = vmatpush1.msra.mxu1 %v4781_v30 }
  0xac   : > { %1321 = vmatprep.subr.mxu0 %v4785_v31  ;;  %1392 = vmatprep.subr.mxu1 %v4787_v32 }
  0xad   : > { %1322 = vmatpush1.msra.mxu0 %v4791_v33  ;;  %1393 = vmatpush1.msra.mxu1 %v4793_v34 }
  0xae   : > { %1323 = vmatprep.subr.mxu0 %v4797_v35  ;;  %1394 = vmatprep.subr.mxu1 %v4799_v36 }
  0xaf   : > { %1324 = vmatpush1.msra.mxu0 %v4803_v37  ;;  %1395 = vmatpush1.msra.mxu1 %v4805_v38 }
  0xb0   : > { %1325 = vmatprep.subr.mxu0 %v4809_v39  ;;  %1396 = vmatprep.subr.mxu1 %v4811_v40 }
  0xb1   : > { %1326 = vmatpush1.msra.mxu0 %v4815_v41  ;;  %1397 = vmatpush1.msra.mxu1 %v4817_v42 }
  0xb2   : > { %1327 = vmatprep.subr.mxu0 %v4821_v43  ;;  %1398 = vmatprep.subr.mxu1 %v4823_v44 }
  0xb3   : > { %1328 = vmatpush1.msra.mxu0 %v4827_v45  ;;  %1399 = vmatpush1.msra.mxu1 %v4829_v46 }
  0xb4   : > { %1329 = vmatprep.subr.mxu0 %v4833_v47  ;;  %1400 = vmatprep.subr.mxu1 %v4835_v48 }
  0xb5   : > { %1330 = vmatpush1.msra.mxu0 %v4839_v49  ;;  %1401 = vmatpush1.msra.mxu1 %v4841_v50 }
  0xb6   : > { %1331 = vmatprep.subr.mxu0 %v4845_v51  ;;  %1402 = vmatprep.subr.mxu1 %v4847_v52 }
  0xb7   : > { %1332 = vmatpush1.msra.mxu0 %v4851_v53  ;;  %1403 = vmatpush1.msra.mxu1 %v4853_v54 }
  0xb8   : > { %1333 = vmatprep.subr.mxu0 %v4857_v55  ;;  %1404 = vmatprep.subr.mxu1 %v4859_v56 }
  0xb9   : > { %1334 = vmatpush1.msra.mxu0 %v4863_v57  ;;  %1405 = vmatpush1.msra.mxu1 %v4865_v58 }
  0xba   : > { %1335 = vmatprep.subr.mxu0 %v4869_v59  ;;  %1406 = vmatprep.subr.mxu1 %v4871_v60 }
  0xbb   : > { %1336 = vmatpush1.msra.mxu0 %v4875_v61  ;;  %1407 = vmatpush1.msra.mxu1 %v4877_v62 }
  0xbc   : > { %1337 = vmatprep.subr.mxu0 %v4881_v63  ;;  %1408 = vmatprep.subr.mxu1 %v4883_v0 }
  0xbd   : > { %1338 = vmatpush1.msra.mxu0 %v4887_v1  ;;  %1409 = vmatpush1.msra.mxu1 %v4889_v2 }
  0xbe   : > { %1339 = vmatprep.subr.mxu0 %v4893_v3  ;;  %1410 = vmatprep.subr.mxu1 %v4895_v4 }
  0xbf   : > { %1340 = vmatpush1.msra.mxu0 %v4899_v5  ;;  %1411 = vmatpush1.msra.mxu1 %v4901_v6  ;;  %v1307_v6 = vld [vmem:[#allocation2] sm:$0x3]  ;;  %v6895_v5 = vmov 0.0  }
  0xc0   : > { %1341 = vmatprep.subr.mxu0 %v4905_v7  ;;  %1412 = vmatprep.subr.mxu1 %v4907_v8 }
  0xc1   : > { %1342 = vmatpush1.msra.mxu0 %v4911_v9  ;;  %1413 = vmatpush1.msra.mxu1 %v4913_v10  ;;  %v4937_v10 = vld [vmem:[#allocation13 + $0x3e8] sm:$0xff]  ;;  %v4949_v9 = vld [vmem:[#allocation13 + $0x3d8] sm:$0xff] }
  0xc2   : > { %1343 = vmatprep.subr.mxu0 %v4917_v12  ;;  %1414 = vmatprep.subr.mxu1 %v4919_v13  ;;  %6896 = vst [vmem:[#allocation47_spill] sm:$0xff] %v4937_v10  ;;  %v4939_v12 = vld [vmem:[#allocation13 + $0x3f8] sm:$0xff]  ;;  %v4941_v13 = vld [vmem:[#allocation13 + $0x3e0] sm:$0xff]  ;;  %6901 = vst [vmem:[#allocation52_spill] sm:$0xff] %v4949_v9 }
  0xc3   : > { %1344 = vmatpush1.msra.mxu0 %v4923_v14  ;;  %1377 = vmatprep.mubr.f32.mxu0 %v6895_v5  ;;  %6897 = vst [vmem:[#allocation48_spill] sm:$0xff] %v4939_v12  ;;  %6898 = vst [vmem:[#allocation49_spill] sm:$0xff] %v4941_v13  ;;  %v4945_v14 = vld [vmem:[#allocation13 + $0x3f0] sm:$0xff] }
  0xc4   : > { %1415 = vmatpush1.msra.mxu1 %v4927_v11  ;;  %1448 = vmatprep.mubr.f32.mxu1 %v6895_v5  ;;  %6899 = vst [vmem:[#allocation50_spill] sm:$0xff] %v4945_v14  ;;  %v4947_v11 = vld [vmem:[#allocation13 + $0x3c8] sm:$0xff] }
  0xc5   : > { %1378 = vmatmul.mubr.f32.vlgmr.msra.gmra.mxu0 %v1307_v6  ;;  %1449 = vmatmul.mubr.f32.vlgmr.msra.gmra.mxu1 %v1307_v6  ;;  %6900 = vst [vmem:[#allocation51_spill] sm:$0xff] %v4947_v11  ;;  %v475_v6 = vlaneseq }
  0xc6   : > { %1568 = vmatprep.mubr.f32.mxu0 %v6895_v5  ;;  %1639 = vmatprep.mubr.f32.mxu1 %v6895_v5 }
  0xc7   : > { %1504 = vmatprep.subr.mxu0 %v4937_v10  ;;  %1575 = vmatprep.subr.mxu1 %v4939_v12  ;;  %v4955_v8 = vshrl.u32 %v475_v6, 7  ;;  %v473_v12 = vld [vmem:[%s6552_s6] sm:$0xf] }
  0xc8   : > { %1505 = vmatpush1.msra.mxu0 %v4941_v13  ;;  %1576 = vmatpush1.msra.mxu1 %v4945_v14 }
  0xc9   : > { %1506 = vmatprep.subr.mxu0 %v4947_v11  ;;  %1577 = vmatprep.subr.mxu1 %v4949_v9  ;;  %6902 = vst [vmem:[#allocation53_spill] sm:$0xff] %v4955_v8  ;;  %v6585_v10 = vsub.s32 2, %v4955_v8  ;;  %v4964_v13 = vsub.s32 0, %v4955_v8  ;;  %v4967_v9 = vsub.s32 1, %v4955_v8  ;;  %v6598_v1 = vsub.s32 3, %v4955_v8 }
  0xcb   : > { %v486_v7 = vrot.slane %v473_v12, %v6585_v10  ;;  %6903 = vst [vmem:[#allocation54_spill] sm:$0xff] %v4964_v13  ;;  %6904 = vst [vmem:[#allocation55_spill] sm:$0xff] %v4967_v9  ;;  %v478_v2 = vrot.slane %v473_v12, %v4964_v13  ;;  %v482_v63 = vrot.slane %v473_v12, %v4967_v9 }
  0xcc   : > { %v490_v59 = vrot.slane %v473_v12, %v6598_v1 }
 0x150   : > { %v790_v4 = vpop.f32.mrf.mxu0 }
 0x152   : > { %v792_v14 = vpop.f32.mrf.mxu0  ;;  %v861_v11 = vpop.f32.mrf.mxu1 }
 0x153   : > { %v862_v6 = vadd.f32 %v861_v11, %v486_v7 }
 0x154   : > { %v863_v3 = vpop.f32.mrf.mxu1 }
 0x156   : > { %v937_v0 = vpop.f32.mrf.mxu0 }
 0x157   : > { %v4972_v62 = vadd.f32 %v937_v0, %v478_v2 }
 0x158   : > { %v939_v10 = vpop.f32.mrf.mxu0  ;;  %v1008_v61 = vpop.f32.mrf.mxu1 }
 0x159   : > { %6905 = vst [vmem:[#allocation56_spill] sm:$0xff] %v4972_v62  ;;  %v4974_v60 = vadd.f32 %v939_v10, %v482_v63  ;;  %v4978_v58 = vadd.f32 %v1008_v61, %v486_v7 }
 0x15a   : > { %v1010_v11 = vpop.f32.mrf.mxu1 }
 0x15b   : > { %6906 = vst [vmem:[#allocation57_spill] sm:$0xff] %v4974_v60  ;;  %6907 = vst [vmem:[#allocation58_spill] sm:$0xff] %v4978_v58  ;;  %v4980_v57 = vadd.f32 %v1010_v11, %v490_v59 }
 0x15c   : > { %v1084_v13 = vpop.f32.mrf.mxu0 }
 0x15d   : > { %6908 = vst [vmem:[#allocation59_spill] sm:$0xff] %v4980_v57  ;;  %v4982_v56 = vadd.f32 %v1084_v13, %v478_v2  ;;  %v791_v57 = vadd.f32 %v790_v4, %v478_v2  ;;  %v5014_v4 = vld [vmem:[#allocation13 + $0x3d0] sm:$0xff] }
 0x15e   : > { %v1086_v55 = vpop.f32.mrf.mxu0  ;;  %v1155_v54 = vpop.f32.mrf.mxu1  ;;  %1578 = vmatpush1.msra.mxu1 %v5014_v4 }
 0x15f   : > { %6909 = vst [vmem:[#allocation60_spill] sm:$0xff] %v4982_v56  ;;  %v4984_v9 = vadd.f32 %v1086_v55, %v482_v63  ;;  %v4986_v0 = vadd.f32 %v1155_v54, %v486_v7  ;;  %v793_v54 = vadd.f32 %v792_v14, %v482_v63  ;;  %v5024_v14 = vld [vmem:[#allocation13 + $0x3a0] sm:$0xff] }
 0x160   : > { %v1157_v62 = vpop.f32.mrf.mxu1 }
 0x161   : > { %6910 = vst [vmem:[#allocation61_spill] sm:$0xff] %v4984_v9  ;;  %6911 = vst [vmem:[#allocation62_spill] sm:$0xff] %v4986_v0  ;;  %v4988_v10 = vadd.f32 %v1157_v62, %v490_v59  ;;  %v864_v0 = vadd.f32 %v863_v3, %v490_v59  ;;  %v5012_v3 = vld [vmem:[#allocation13 + $0x3c0] sm:$0xff] }
 0x162   : > { %v1231_v60 = vpop.f32.mrf.mxu0  ;;  %1507 = vmatpush1.msra.mxu0 %v5012_v3 }
 0x163   : > { %6912 = vst [vmem:[#allocation63_spill] sm:$0xff] %v4988_v10  ;;  %v4990_v8 = vadd.f32 %v1231_v60, %v478_v2 }
 0x164   : > { %v1233_v61 = vpop.f32.mrf.mxu0  ;;  %v1302_v12 = vpop.f32.mrf.mxu1 }
 0x165   : > { %6913 = vst [vmem:[#allocation64_spill] sm:$0xff] %v4990_v8  ;;  %v4992_v1 = vadd.f32 %v1233_v61, %v482_v63  ;;  %v4994_v11 = vadd.f32 %v1302_v12, %v486_v7 }
 0x166   : > { %v1304_v13 = vpop.f32.mrf.mxu1 }
 0x167   : > { %6914 = vst [vmem:[#allocation65_spill] sm:$0xff] %v4992_v1  ;;  %6915 = vst [vmem:[#allocation66_spill] sm:$0xff] %v4994_v11  ;;  %v4996_v56 = vadd.f32 %v1304_v13, %v490_v59  ;;  %v5032_v13 = vld [vmem:[#allocation13 + $0x398] sm:$0xff]  ;;  %v5066_v1 = vld [vmem:[#allocation13 + $0x328] sm:$0xff] }
 0x168   : > { %6927 = vst [vmem:[#allocation78_spill] sm:$0xff] %v5066_v1  ;;  %v5068_v11 = vld [vmem:[#allocation13 + $0x338] sm:$0xff] }
 0x169   : > { %6916 = vst [vmem:[#allocation67_spill] sm:$0xff] %v4996_v56  ;;  %v5062_v56 = vld [vmem:[#allocation13 + $0x350] sm:$0xff]  ;;  %6928 = vst [vmem:[#allocation79_spill] sm:$0xff] %v5068_v11 }
 0x16a   : > { %6926 = vst [vmem:[#allocation77_spill] sm:$0xff] %v5062_v56 }
 0x185   : > { %v1379_v55 = vpop.f32.mrf.mxu0  ;;  %v1450_v9 = vpop.f32.mrf.mxu1 }
 0x186   : > { %v4998_v58 = vadd.f32 %v1379_v55, %v791_v57  ;;  %v5000_v62 = vadd.f32 %v1450_v9, %v862_v6  ;;  %v5020_v9 = vld [vmem:[#allocation13 + $0x3b8] sm:$0xff]  ;;  %v5026_v6 = vld [vmem:[#allocation13 + $0x3b0] sm:$0xff]  ;;  %v5036_v55 = vld [vmem:[#allocation13 + $0x380] sm:$0xff] }
 0x187   : > { %v1381_v60 = vpop.f32.mrf.mxu0  ;;  %v1452_v8 = vpop.f32.mrf.mxu1  ;;  %1579 = vmatprep.subr.mxu1 %v5020_v9  ;;  %6917 = vst [vmem:[#allocation68_spill] sm:$0xff] %v5036_v55 }
 0x188   : > { %v5002_v10 = vadd.f32 %v1381_v60, %v793_v54  ;;  %v5004_v61 = vadd.f32 %v1452_v8, %v864_v0  ;;  %v1459_v7 = vand.u32 2147483647, %v4998_v58  ;;  %v5018_v8 = vld [vmem:[#allocation13 + $0x3a8] sm:$0xff]  ;;  %1580 = vmatpush1.msra.mxu1 %v5026_v6  ;;  %v5038_v54 = vld [vmem:[#allocation13 + $0x390] sm:$0xff] }
 0x189   : > { %1508 = vmatprep.subr.mxu0 %v5018_v8  ;;  %v5030_v0 = vld [vmem:[#allocation13 + $0x388] sm:$0xff]  ;;  %1581 = vmatprep.subr.mxu1 %v5032_v13  ;;  %6918 = vst [vmem:[#allocation69_spill] sm:$0xff] %v5038_v54 }
 0x18a   : > { %v1461_v12 = vsel %vm1460_vm1, %v1459_v7, 0.0  ;;  %v1486_v2 = vand.u32 2147483647, %v5004_v61  ;;  %v1473_v63 = vand.u32 2147483647, %v5002_v10  ;;  %1509 = vmatpush1.msra.mxu0 %v5024_v14  ;;  %1582 = vmatpush1.msra.mxu1 %v5038_v54  ;;  %v5042_v60 = vld [vmem:[#allocation13 + $0x368] sm:$0xff] }
 0x18b   : > { %1462 = vadd.xlane.f32.xlu0 %v1461_v12  ;;  %1510 = vmatprep.subr.mxu0 %v5030_v0  ;;  %6919 = vst [vmem:[#allocation70_spill] sm:$0xff] %v5042_v60  ;;  %v5044_v7 = vld [vmem:[#allocation13 + $0x378] sm:$0xff]  ;;  %v5048_v12 = vld [vmem:[#allocation13 + $0x360] sm:$0xff] }
 0x18c   : > { %v1487_v57 = vsel %vm1460_vm1, %v1486_v2, 0.0  ;;  %v1474_v59 = vsel %vm1460_vm1, %v1473_v63, 0.0  ;;  %1511 = vmatpush1.msra.mxu0 %v5036_v55  ;;  %6920 = vst [vmem:[#allocation71_spill] sm:$0xff] %v5044_v7  ;;  %1583 = vmatprep.subr.mxu1 %v5044_v7  ;;  %6921 = vst [vmem:[#allocation72_spill] sm:$0xff] %v5048_v12  ;;  %v5050_v2 = vld [vmem:[#allocation13 + $0x370] sm:$0xff]  ;;  %v5054_v63 = vld [vmem:[#allocation13 + $0x348] sm:$0xff] }
 0x18d   : > { %1488 = vadd.xlane.f32.xlu1 %v1487_v57  ;;  %1512 = vmatprep.subr.mxu0 %v5042_v60  ;;  %6922 = vst [vmem:[#allocation73_spill] sm:$0xff] %v5050_v2  ;;  %6923 = vst [vmem:[#allocation74_spill] sm:$0xff] %v5054_v63  ;;  %v5056_v57 = vld [vmem:[#allocation13 + $0x358] sm:$0xff]  ;;  %v5204_v7 = vld [vmem:[#allocation12 + $0x1d0] sm:$0xff] }
 0x18e   : > { %1513 = vmatpush1.msra.mxu0 %v5048_v12  ;;  %1584 = vmatpush1.msra.mxu1 %v5050_v2  ;;  %6924 = vst [vmem:[#allocation75_spill] sm:$0xff] %v5056_v57  ;;  %v5072_v2 = vld [vmem:[#allocation13 + $0x320] sm:$0xff]  ;;  %6974 = vst [vmem:[#allocation125_spill] sm:$0xff] %v5204_v7  ;;  %v5268_v60 = vld [vmem:[#allocation12 + $0x118] sm:$0xff] }
 0x18f   : > { %1475 = vadd.xlane.f32.xlu0 %v1474_v59  ;;  %1514 = vmatprep.subr.mxu0 %v5054_v63  ;;  %v5060_v59 = vld [vmem:[#allocation13 + $0x340] sm:$0xff]  ;;  %6929 = vst [vmem:[#allocation80_spill] sm:$0xff] %v5072_v2  ;;  %v5074_v63 = vld [vmem:[#allocation13 + $0x330] sm:$0xff]  ;;  %6996 = vst [vmem:[#allocation147_spill] sm:$0xff] %v5268_v60 }
 0x190   : > { %1585 = vmatprep.subr.mxu1 %v5056_v57  ;;  %6925 = vst [vmem:[#allocation76_spill] sm:$0xff] %v5060_v59  ;;  %1515 = vmatpush1.msra.mxu0 %v5060_v59  ;;  %6930 = vst [vmem:[#allocation81_spill] sm:$0xff] %v5074_v63  ;;  %v5078_v57 = vld [vmem:[#allocation13 + $0x308] sm:$0xff]  ;;  %v5080_v59 = vld [vmem:[#allocation13 + $0x318] sm:$0xff] }
 0x191   : > { %1586 = vmatpush1.msra.mxu1 %v5062_v56  ;;  %1516 = vmatprep.subr.mxu0 %v5066_v1  ;;  %6931 = vst [vmem:[#allocation82_spill] sm:$0xff] %v5078_v57  ;;  %6932 = vst [vmem:[#allocation83_spill] sm:$0xff] %v5080_v59  ;;  %v5084_v56 = vld [vmem:[#allocation13 + $0x300] sm:$0xff]  ;;  %v5086_v1 = vld [vmem:[#allocation13 + $0x310] sm:$0xff] }
 0x192   : > { %1587 = vmatprep.subr.mxu1 %v5068_v11  ;;  %1517 = vmatpush1.msra.mxu0 %v5072_v2  ;;  %6933 = vst [vmem:[#allocation84_spill] sm:$0xff] %v5084_v56  ;;  %6934 = vst [vmem:[#allocation85_spill] sm:$0xff] %v5086_v1  ;;  %v5090_v11 = vld [vmem:[#allocation13 + $0x2e8] sm:$0xff]  ;;  %v5092_v2 = vld [vmem:[#allocation13 + $0x2f8] sm:$0xff] }
 0x193   : > { %1588 = vmatpush1.msra.mxu1 %v5074_v63  ;;  %1518 = vmatprep.subr.mxu0 %v5078_v57  ;;  %6935 = vst [vmem:[#allocation86_spill] sm:$0xff] %v5090_v11  ;;  %6936 = vst [vmem:[#allocation87_spill] sm:$0xff] %v5092_v2  ;;  %v5096_v63 = vld [vmem:[#allocation13 + $0x2e0] sm:$0xff]  ;;  %v5098_v57 = vld [vmem:[#allocation13 + $0x2f0] sm:$0xff] }
 0x194   : > { %1589 = vmatprep.subr.mxu1 %v5080_v59  ;;  %1519 = vmatpush1.msra.mxu0 %v5084_v56  ;;  %6937 = vst [vmem:[#allocation88_spill] sm:$0xff] %v5096_v63  ;;  %6938 = vst [vmem:[#allocation89_spill] sm:$0xff] %v5098_v57  ;;  %v5102_v59 = vld [vmem:[#allocation13 + $0x2c8] sm:$0xff]  ;;  %v5104_v56 = vld [vmem:[#allocation13 + $0x2d8] sm:$0xff] }
 0x195   : > { %1590 = vmatpush1.msra.mxu1 %v5086_v1  ;;  %1520 = vmatprep.subr.mxu0 %v5090_v11  ;;  %6939 = vst [vmem:[#allocation90_spill] sm:$0xff] %v5102_v59  ;;  %6940 = vst [vmem:[#allocation91_spill] sm:$0xff] %v5104_v56  ;;  %v5108_v1 = vld [vmem:[#allocation13 + $0x2c0] sm:$0xff]  ;;  %v5110_v11 = vld [vmem:[#allocation13 + $0x2d0] sm:$0xff] }
 0x196   : > { %1591 = vmatprep.subr.mxu1 %v5092_v2  ;;  %1521 = vmatpush1.msra.mxu0 %v5096_v63  ;;  %6941 = vst [vmem:[#allocation92_spill] sm:$0xff] %v5108_v1  ;;  %6942 = vst [vmem:[#allocation93_spill] sm:$0xff] %v5110_v11  ;;  %v5114_v2 = vld [vmem:[#allocation13 + $0x2a8] sm:$0xff]  ;;  %v5116_v63 = vld [vmem:[#allocation13 + $0x2b8] sm:$0xff] }
 0x197   : > { %1592 = vmatpush1.msra.mxu1 %v5098_v57  ;;  %1522 = vmatprep.subr.mxu0 %v5102_v59  ;;  %6943 = vst [vmem:[#allocation94_spill] sm:$0xff] %v5114_v2  ;;  %6944 = vst [vmem:[#allocation95_spill] sm:$0xff] %v5116_v63  ;;  %v5120_v57 = vld [vmem:[#allocation13 + $0x2a0] sm:$0xff]  ;;  %v5122_v59 = vld [vmem:[#allocation13 + $0x2b0] sm:$0xff] }
 0x198   : > { %1593 = vmatprep.subr.mxu1 %v5104_v56  ;;  %1523 = vmatpush1.msra.mxu0 %v5108_v1  ;;  %6945 = vst [vmem:[#allocation96_spill] sm:$0xff] %v5120_v57  ;;  %6946 = vst [vmem:[#allocation97_spill] sm:$0xff] %v5122_v59  ;;  %v5126_v56 = vld [vmem:[#allocation13 + $0x288] sm:$0xff]  ;;  %v5128_v1 = vld [vmem:[#allocation13 + $0x298] sm:$0xff] }
 0x199   : > { %1594 = vmatpush1.msra.mxu1 %v5110_v11  ;;  %1524 = vmatprep.subr.mxu0 %v5114_v2  ;;  %6947 = vst [vmem:[#allocation98_spill] sm:$0xff] %v5126_v56  ;;  %6948 = vst [vmem:[#allocation99_spill] sm:$0xff] %v5128_v1  ;;  %v5132_v11 = vld [vmem:[#allocation13 + $0x280] sm:$0xff]  ;;  %v5134_v2 = vld [vmem:[#allocation13 + $0x290] sm:$0xff] }
 0x19a   : > { %1595 = vmatprep.subr.mxu1 %v5116_v63  ;;  %1525 = vmatpush1.msra.mxu0 %v5120_v57  ;;  %6949 = vst [vmem:[#allocation100_spill] sm:$0xff] %v5132_v11  ;;  %6950 = vst [vmem:[#allocation101_spill] sm:$0xff] %v5134_v2  ;;  %v5138_v63 = vld [vmem:[#allocation13 + $0x268] sm:$0xff]  ;;  %v5140_v57 = vld [vmem:[#allocation13 + $0x278] sm:$0xff] }
 0x19b   : > { %1596 = vmatpush1.msra.mxu1 %v5122_v59  ;;  %1526 = vmatprep.subr.mxu0 %v5126_v56  ;;  %6951 = vst [vmem:[#allocation102_spill] sm:$0xff] %v5138_v63  ;;  %6952 = vst [vmem:[#allocation103_spill] sm:$0xff] %v5140_v57  ;;  %v5144_v59 = vld [vmem:[#allocation13 + $0x260] sm:$0xff]  ;;  %v5146_v56 = vld [vmem:[#allocation13 + $0x270] sm:$0xff] }
 0x19c   : > { %1597 = vmatprep.subr.mxu1 %v5128_v1  ;;  %1527 = vmatpush1.msra.mxu0 %v5132_v11  ;;  %6953 = vst [vmem:[#allocation104_spill] sm:$0xff] %v5144_v59  ;;  %6954 = vst [vmem:[#allocation105_spill] sm:$0xff] %v5146_v56  ;;  %v5150_v1 = vld [vmem:[#allocation13 + $0x248] sm:$0xff]  ;;  %v5152_v11 = vld [vmem:[#allocation13 + $0x258] sm:$0xff] }
 0x19d   : > { %1598 = vmatpush1.msra.mxu1 %v5134_v2  ;;  %1528 = vmatprep.subr.mxu0 %v5138_v63  ;;  %6955 = vst [vmem:[#allocation106_spill] sm:$0xff] %v5150_v1  ;;  %6956 = vst [vmem:[#allocation107_spill] sm:$0xff] %v5152_v11  ;;  %v5156_v2 = vld [vmem:[#allocation13 + $0x240] sm:$0xff]  ;;  %v5158_v63 = vld [vmem:[#allocation13 + $0x250] sm:$0xff] }
 0x19e   : > { %1599 = vmatprep.subr.mxu1 %v5140_v57  ;;  %1529 = vmatpush1.msra.mxu0 %v5144_v59  ;;  %6957 = vst [vmem:[#allocation108_spill] sm:$0xff] %v5156_v2  ;;  %6958 = vst [vmem:[#allocation109_spill] sm:$0xff] %v5158_v63  ;;  %v5162_v57 = vld [vmem:[#allocation13 + $0x228] sm:$0xff]  ;;  %v5164_v59 = vld [vmem:[#allocation13 + $0x238] sm:$0xff] }
 0x19f   : > { %1600 = vmatpush1.msra.mxu1 %v5146_v56  ;;  %1530 = vmatprep.subr.mxu0 %v5150_v1  ;;  %6959 = vst [vmem:[#allocation110_spill] sm:$0xff] %v5162_v57  ;;  %6960 = vst [vmem:[#allocation111_spill] sm:$0xff] %v5164_v59  ;;  %v5168_v56 = vld [vmem:[#allocation13 + $0x220] sm:$0xff]  ;;  %v5170_v1 = vld [vmem:[#allocation13 + $0x230] sm:$0xff] }
 0x1a0   : > { %1601 = vmatprep.subr.mxu1 %v5152_v11  ;;  %1531 = vmatpush1.msra.mxu0 %v5156_v2  ;;  %6961 = vst [vmem:[#allocation112_spill] sm:$0xff] %v5168_v56  ;;  %6962 = vst [vmem:[#allocation113_spill] sm:$0xff] %v5170_v1  ;;  %v5174_v11 = vld [vmem:[#allocation13 + $0x208] sm:$0xff]  ;;  %v5176_v2 = vld [vmem:[#allocation13 + $0x218] sm:$0xff] }
 0x1a1   : > { %1602 = vmatpush1.msra.mxu1 %v5158_v63  ;;  %1532 = vmatprep.subr.mxu0 %v5162_v57  ;;  %6963 = vst [vmem:[#allocation114_spill] sm:$0xff] %v5174_v11  ;;  %6964 = vst [vmem:[#allocation115_spill] sm:$0xff] %v5176_v2  ;;  %v5180_v63 = vld [vmem:[#allocation13 + $0x200] sm:$0xff]  ;;  %v5182_v57 = vld [vmem:[#allocation13 + $0x210] sm:$0xff] }
 0x1a2   : > { %1603 = vmatprep.subr.mxu1 %v5164_v59  ;;  %1533 = vmatpush1.msra.mxu0 %v5168_v56  ;;  %6965 = vst [vmem:[#allocation116_spill] sm:$0xff] %v5180_v63  ;;  %6966 = vst [vmem:[#allocation117_spill] sm:$0xff] %v5182_v57  ;;  %v1309_v59 = vld [vmem:[#allocation2 + $0x2] sm:$0x3]  ;;  %v5186_v56 = vld [vmem:[#allocation12 + $0x1e8] sm:$0xff] }
 0x1a3   : > { %1604 = vmatpush1.msra.mxu1 %v5170_v1  ;;  %1534 = vmatprep.subr.mxu0 %v5174_v11  ;;  %6967 = vst [vmem:[#allocation118_spill] sm:$0xff] %v5186_v56  ;;  %v5188_v1 = vld [vmem:[#allocation12 + $0x1f8] sm:$0xff]  ;;  %v5191_v12 = vld [vmem:[#allocation12 + $0x1e0] sm:$0xff]  ;;  %v5193_v11 = vld [vmem:[#allocation12 + $0x1f0] sm:$0xff] }
 0x1a4   : > { %1605 = vmatprep.subr.mxu1 %v5176_v2  ;;  %1535 = vmatpush1.msra.mxu0 %v5180_v63  ;;  %6968 = vst [vmem:[#allocation119_spill] sm:$0xff] %v5188_v1  ;;  %6969 = vst [vmem:[#allocation120_spill] sm:$0xff] %v5191_v12  ;;  %v5196_v2 = vld [vmem:[#allocation12 + $0x1c8] sm:$0xff]  ;;  %v5198_v63 = vld [vmem:[#allocation12 + $0x1d8] sm:$0xff] }
 0x1a5   : > { %1606 = vmatpush1.msra.mxu1 %v5182_v57  ;;  %1569 = vmatmul.mubr.f32.vlgmr.msra.gmra.mxu0 %v1309_v59  ;;  %6970 = vst [vmem:[#allocation121_spill] sm:$0xff] %v5193_v11  ;;  %6971 = vst [vmem:[#allocation122_spill] sm:$0xff] %v5196_v2  ;;  %v5202_v57 = vld [vmem:[#allocation12 + $0x1c0] sm:$0xff] }
 0x1a6   : > { %1646 = vmatprep.subr.mxu0 %v5186_v56  ;;  %1717 = vmatprep.subr.mxu1 %v5188_v1  ;;  %6972 = vst [vmem:[#allocation123_spill] sm:$0xff] %v5198_v63  ;;  %6973 = vst [vmem:[#allocation124_spill] sm:$0xff] %v5202_v57  ;;  %v5208_v56 = vld [vmem:[#allocation12 + $0x1a8] sm:$0xff]  ;;  %v5210_v1 = vld [vmem:[#allocation12 + $0x1b8] sm:$0xff] }
 0x1a7   : > { %1640 = vmatmul.mubr.f32.vlgmr.msra.gmra.mxu1 %v1309_v59  ;;  %1647 = vmatpush1.msra.mxu0 %v5191_v12  ;;  %6975 = vst [vmem:[#allocation126_spill] sm:$0xff] %v5208_v56  ;;  %6976 = vst [vmem:[#allocation127_spill] sm:$0xff] %v5210_v1  ;;  %v5214_v59 = vld [vmem:[#allocation12 + $0x1a0] sm:$0xff]  ;;  %v5216_v12 = vld [vmem:[#allocation12 + $0x1b0] sm:$0xff] }
 0x1a8   : > { %1718 = vmatpush1.msra.mxu1 %v5193_v11  ;;  %1648 = vmatprep.subr.mxu0 %v5196_v2  ;;  %6977 = vst [vmem:[#allocation128_spill] sm:$0xff] %v5214_v59  ;;  %6978 = vst [vmem:[#allocation129_spill] sm:$0xff] %v5216_v12  ;;  %v5220_v11 = vld [vmem:[#allocation12 + $0x188] sm:$0xff]  ;;  %v5222_v2 = vld [vmem:[#allocation12 + $0x198] sm:$0xff] }
 0x1a9   : > { %1719 = vmatprep.subr.mxu1 %v5198_v63  ;;  %1649 = vmatpush1.msra.mxu0 %v5202_v57  ;;  %6979 = vst [vmem:[#allocation130_spill] sm:$0xff] %v5220_v11  ;;  %6980 = vst [vmem:[#allocation131_spill] sm:$0xff] %v5222_v2  ;;  %v5226_v63 = vld [vmem:[#allocation12 + $0x180] sm:$0xff]  ;;  %v5228_v57 = vld [vmem:[#allocation12 + $0x190] sm:$0xff] }
 0x1aa   : > { %1720 = vmatpush1.msra.mxu1 %v5204_v7  ;;  %1650 = vmatprep.subr.mxu0 %v5208_v56  ;;  %6981 = vst [vmem:[#allocation132_spill] sm:$0xff] %v5226_v63  ;;  %6982 = vst [vmem:[#allocation133_spill] sm:$0xff] %v5228_v57  ;;  %v5232_v7 = vld [vmem:[#allocation12 + $0x168] sm:$0xff]  ;;  %v5234_v56 = vld [vmem:[#allocation12 + $0x178] sm:$0xff] }
 0x1ab   : > { %1721 = vmatprep.subr.mxu1 %v5210_v1  ;;  %1651 = vmatpush1.msra.mxu0 %v5214_v59  ;;  %6983 = vst [vmem:[#allocation134_spill] sm:$0xff] %v5232_v7  ;;  %6984 = vst [vmem:[#allocation135_spill] sm:$0xff] %v5234_v56  ;;  %v5238_v1 = vld [vmem:[#allocation12 + $0x160] sm:$0xff]  ;;  %v5240_v59 = vld [vmem:[#allocation12 + $0x170] sm:$0xff] }
 0x1ac   : > { %1722 = vmatpush1.msra.mxu1 %v5216_v12  ;;  %1652 = vmatprep.subr.mxu0 %v5220_v11  ;;  %6985 = vst [vmem:[#allocation136_spill] sm:$0xff] %v5238_v1  ;;  %6986 = vst [vmem:[#allocation137_spill] sm:$0xff] %v5240_v59  ;;  %v5244_v12 = vld [vmem:[#allocation12 + $0x148] sm:$0xff]  ;;  %v5246_v11 = vld [vmem:[#allocation12 + $0x158] sm:$0xff] }
 0x1ad   : > { %1723 = vmatprep.subr.mxu1 %v5222_v2  ;;  %1653 = vmatpush1.msra.mxu0 %v5226_v63  ;;  %6987 = vst [vmem:[#allocation138_spill] sm:$0xff] %v5244_v12  ;;  %6988 = vst [vmem:[#allocation139_spill] sm:$0xff] %v5246_v11  ;;  %v5250_v2 = vld [vmem:[#allocation12 + $0x140] sm:$0xff]  ;;  %v5252_v63 = vld [vmem:[#allocation12 + $0x150] sm:$0xff] }
 0x1ae   : > { %1724 = vmatpush1.msra.mxu1 %v5228_v57  ;;  %1654 = vmatprep.subr.mxu0 %v5232_v7  ;;  %6989 = vst [vmem:[#allocation140_spill] sm:$0xff] %v5250_v2  ;;  %6990 = vst [vmem:[#allocation141_spill] sm:$0xff] %v5252_v63  ;;  %v5256_v57 = vld [vmem:[#allocation12 + $0x128] sm:$0xff]  ;;  %v5258_v7 = vld [vmem:[#allocation12 + $0x138] sm:$0xff] }
 0x1af   : > { %1725 = vmatprep.subr.mxu1 %v5234_v56  ;;  %1655 = vmatpush1.msra.mxu0 %v5238_v1  ;;  %6991 = vst [vmem:[#allocation142_spill] sm:$0xff] %v5256_v57  ;;  %6992 = vst [vmem:[#allocation143_spill] sm:$0xff] %v5258_v7  ;;  %v5260_v56 = vld [vmem:[#allocation12 + $0x120] sm:$0xff]  ;;  %v5264_v1 = vld [vmem:[#allocation12 + $0x130] sm:$0xff] }
 0x1b0   : > { %1726 = vmatpush1.msra.mxu1 %v5240_v59  ;;  %1656 = vmatprep.subr.mxu0 %v5244_v12  ;;  %6993 = vst [vmem:[#allocation144_spill] sm:$0xff] %v5260_v56  ;;  %6994 = vst [vmem:[#allocation145_spill] sm:$0xff] %v5264_v1  ;;  %v5266_v59 = vld [vmem:[#allocation12 + $0x108] sm:$0xff]  ;;  %v5274_v12 = vld [vmem:[#allocation12 + $0x110] sm:$0xff] }
 0x1b1   : > { %1727 = vmatprep.subr.mxu1 %v5246_v11  ;;  %1657 = vmatpush1.msra.mxu0 %v5250_v2  ;;  %6995 = vst [vmem:[#allocation146_spill] sm:$0xff] %v5266_v59  ;;  %v5272_v11 = vld [vmem:[#allocation12 + $0x100] sm:$0xff]  ;;  %6998 = vst [vmem:[#allocation149_spill] sm:$0xff] %v5274_v12  ;;  %v5278_v2 = vld [vmem:[#allocation12 + $0xe8] sm:$0xff] }
 0x1b2   : > { %1728 = vmatpush1.msra.mxu1 %v5252_v63  ;;  %1658 = vmatprep.subr.mxu0 %v5256_v57  ;;  %6997 = vst [vmem:[#allocation148_spill] sm:$0xff] %v5272_v11  ;;  %6999 = vst [vmem:[#allocation150_spill] sm:$0xff] %v5278_v2  ;;  %v5280_v63 = vld [vmem:[#allocation12 + $0xf8] sm:$0xff]  ;;  %v5284_v54 = vld [vmem:[#allocation12 + $0xe0] sm:$0xff] }
 0x1b3   : > { %1729 = vmatprep.subr.mxu1 %v5258_v7  ;;  %1659 = vmatpush1.msra.mxu0 %v5260_v56  ;;  %7000 = vst [vmem:[#allocation151_spill] sm:$0xff] %v5280_v63  ;;  %7001 = vst [vmem:[#allocation152_spill] sm:$0xff] %v5284_v54  ;;  %v5286_v57 = vld [vmem:[#allocation12 + $0xf0] sm:$0xff]  ;;  %v5290_v7 = vld [vmem:[#allocation12 + $0xc8] sm:$0xff] }
 0x1b4   : > { %1730 = vmatpush1.msra.mxu1 %v5264_v1  ;;  %1660 = vmatprep.subr.mxu0 %v5266_v59  ;;  %7002 = vst [vmem:[#allocation153_spill] sm:$0xff] %v5286_v57  ;;  %7003 = vst [vmem:[#allocation154_spill] sm:$0xff] %v5290_v7  ;;  %v5292_v56 = vld [vmem:[#allocation12 + $0xd8] sm:$0xff]  ;;  %v5296_v1 = vld [vmem:[#allocation12 + $0xc0] sm:$0xff] }
 0x1b5   : > { %1731 = vmatprep.subr.mxu1 %v5268_v60  ;;  %1661 = vmatpush1.msra.mxu0 %v5272_v11  ;;  %7004 = vst [vmem:[#allocation155_spill] sm:$0xff] %v5292_v56  ;;  %7005 = vst [vmem:[#allocation156_spill] sm:$0xff] %v5296_v1  ;;  %v5298_v59 = vld [vmem:[#allocation12 + $0xd0] sm:$0xff]  ;;  %v5302_v60 = vld [vmem:[#allocation12 + $0xa8] sm:$0xff] }
 0x1b6   : > { %1732 = vmatpush1.msra.mxu1 %v5274_v12  ;;  %1662 = vmatprep.subr.mxu0 %v5278_v2  ;;  %7006 = vst [vmem:[#allocation157_spill] sm:$0xff] %v5298_v59  ;;  %7007 = vst [vmem:[#allocation158_spill] sm:$0xff] %v5302_v60  ;;  %v5304_v11 = vld [vmem:[#allocation12 + $0xb8] sm:$0xff]  ;;  %v5308_v12 = vld [vmem:[#allocation12 + $0xa0] sm:$0xff] }
 0x1b7   : > { %1733 = vmatprep.subr.mxu1 %v5280_v63  ;;  %1663 = vmatpush1.msra.mxu0 %v5284_v54  ;;  %7008 = vst [vmem:[#allocation159_spill] sm:$0xff] %v5304_v11  ;;  %7009 = vst [vmem:[#allocation160_spill] sm:$0xff] %v5308_v12  ;;  %v5310_v2 = vld [vmem:[#allocation12 + $0xb0] sm:$0xff]  ;;  %v5314_v63 = vld [vmem:[#allocation12 + $0x88] sm:$0xff] }
 0x1b8   : > { %1734 = vmatpush1.msra.mxu1 %v5286_v57  ;;  %1664 = vmatprep.subr.mxu0 %v5290_v7  ;;  %7010 = vst [vmem:[#allocation161_spill] sm:$0xff] %v5310_v2  ;;  %7011 = vst [vmem:[#allocation162_spill] sm:$0xff] %v5314_v63  ;;  %v5316_v54 = vld [vmem:[#allocation12 + $0x98] sm:$0xff]  ;;  %v5320_v57 = vld [vmem:[#allocation12 + $0x80] sm:$0xff] }
 0x1b9   : > { %1735 = vmatprep.subr.mxu1 %v5292_v56  ;;  %1665 = vmatpush1.msra.mxu0 %v5296_v1  ;;  %7012 = vst [vmem:[#allocation163_spill] sm:$0xff] %v5316_v54  ;;  %7013 = vst [vmem:[#allocation164_spill] sm:$0xff] %v5320_v57  ;;  %v5322_v7 = vld [vmem:[#allocation12 + $0x90] sm:$0xff]  ;;  %v5326_v56 = vld [vmem:[#allocation12 + $0x68] sm:$0xff] }
 0x1ba   : > { %1736 = vmatpush1.msra.mxu1 %v5298_v59  ;;  %1666 = vmatprep.subr.mxu0 %v5302_v60  ;;  %7014 = vst [vmem:[#allocation165_spill] sm:$0xff] %v5322_v7  ;;  %7015 = vst [vmem:[#allocation166_spill] sm:$0xff] %v5326_v56  ;;  %v5328_v1 = vld [vmem:[#allocation12 + $0x78] sm:$0xff]  ;;  %v5332_v59 = vld [vmem:[#allocation12 + $0x60] sm:$0xff] }
 0x1bb   : > { %1737 = vmatprep.subr.mxu1 %v5304_v11  ;;  %1667 = vmatpush1.msra.mxu0 %v5308_v12  ;;  %7016 = vst [vmem:[#allocation167_spill] sm:$0xff] %v5328_v1  ;;  %7017 = vst [vmem:[#allocation168_spill] sm:$0xff] %v5332_v59  ;;  %v5334_v60 = vld [vmem:[#allocation12 + $0x70] sm:$0xff]  ;;  %v5338_v11 = vld [vmem:[#allocation12 + $0x48] sm:$0xff] }
 0x1bc   : > { %1738 = vmatpush1.msra.mxu1 %v5310_v2  ;;  %1668 = vmatprep.subr.mxu0 %v5314_v63  ;;  %7018 = vst [vmem:[#allocation169_spill] sm:$0xff] %v5334_v60  ;;  %7019 = vst [vmem:[#allocation170_spill] sm:$0xff] %v5338_v11  ;;  %v5340_v12 = vld [vmem:[#allocation12 + $0x58] sm:$0xff]  ;;  %v5344_v2 = vld [vmem:[#allocation12 + $0x40] sm:$0xff] }
 0x1bd   : > { %1739 = vmatprep.subr.mxu1 %v5316_v54  ;;  %1669 = vmatpush1.msra.mxu0 %v5320_v57  ;;  %7020 = vst [vmem:[#allocation171_spill] sm:$0xff] %v5340_v12  ;;  %7021 = vst [vmem:[#allocation172_spill] sm:$0xff] %v5344_v2  ;;  %v5346_v63 = vld [vmem:[#allocation12 + $0x50] sm:$0xff]  ;;  %v5350_v54 = vld [vmem:[#allocation12 + $0x28] sm:$0xff] }
 0x1be   : > { %1740 = vmatpush1.msra.mxu1 %v5322_v7  ;;  %1670 = vmatprep.subr.mxu0 %v5326_v56  ;;  %7022 = vst [vmem:[#allocation173_spill] sm:$0xff] %v5346_v63  ;;  %7023 = vst [vmem:[#allocation174_spill] sm:$0xff] %v5350_v54  ;;  %v5352_v57 = vld [vmem:[#allocation12 + $0x38] sm:$0xff]  ;;  %v5356_v7 = vld [vmem:[#allocation12 + $0x20] sm:$0xff] }
 0x1bf   : > { %1741 = vmatprep.subr.mxu1 %v5328_v1  ;;  %1671 = vmatpush1.msra.mxu0 %v5332_v59  ;;  %7024 = vst [vmem:[#allocation175_spill] sm:$0xff] %v5352_v57  ;;  %7025 = vst [vmem:[#allocation176_spill] sm:$0xff] %v5356_v7  ;;  %v5358_v56 = vld [vmem:[#allocation12 + $0x30] sm:$0xff]  ;;  %v5362_v1 = vld [vmem:[#allocation12 + $0x8] sm:$0xff] }
 0x1c0   : > { %1742 = vmatpush1.msra.mxu1 %v5334_v60  ;;  %1672 = vmatprep.subr.mxu0 %v5338_v11  ;;  %7026 = vst [vmem:[#allocation177_spill] sm:$0xff] %v5358_v56  ;;  %7027 = vst [vmem:[#allocation178_spill] sm:$0xff] %v5362_v1  ;;  %v5364_v59 = vld [vmem:[#allocation12 + $0x18] sm:$0xff]  ;;  %v5368_v60 = vld [vmem:[#allocation12] sm:$0xff] }
 0x1c1   : > { %1743 = vmatprep.subr.mxu1 %v5340_v12  ;;  %1673 = vmatpush1.msra.mxu0 %v5344_v2  ;;  %7028 = vst [vmem:[#allocation179_spill] sm:$0xff] %v5364_v59  ;;  %7029 = vst [vmem:[#allocation180_spill] sm:$0xff] %v5368_v60  ;;  %v5370_v11 = vld [vmem:[#allocation12 + $0x10] sm:$0xff] }
 0x1c2   : > { %1744 = vmatpush1.msra.mxu1 %v5346_v63  ;;  %1674 = vmatprep.subr.mxu0 %v5350_v54  ;;  %7030 = vst [vmem:[#allocation181_spill] sm:$0xff] %v5370_v11 }
 0x1c3   : > { %1745 = vmatprep.subr.mxu1 %v5352_v57  ;;  %1675 = vmatpush1.msra.mxu0 %v5356_v7 }
 0x1c4   : > { %1746 = vmatpush1.msra.mxu1 %v5358_v56  ;;  %1676 = vmatprep.subr.mxu0 %v5362_v1 }
 0x1c5   : > { %1747 = vmatprep.subr.mxu1 %v5364_v59  ;;  %1677 = vmatpush1.msra.mxu0 %v5368_v60 }
 0x1c6   : > { %1748 = vmatpush1.msra.mxu1 %v5370_v11  ;;  %1710 = vmatprep.mubr.f32.mxu0 %v6895_v5 }
 0x1c7   : > { %1781 = vmatprep.mubr.f32.mxu1 %v6895_v5  ;;  %1836 = vmatprep.subr.mxu0 %v4737_v15 }
 0x1c8   : > { %1907 = vmatprep.subr.mxu1 %v4740_v16 }
 0x214   : > { %v1463_v57 = vpop.xlane.xlu0 %1462 }
 0x215   : > { %v1464_v7 = vmax.f32 %v1463_v57, 1e-12 }
 0x216   : > { %v1489_v54 = vpop.xlane.xlu1 %1488 }
 0x217   : > { %3865 = vrcp.f32 %v1464_v7  ;;  %v1490_v56 = vmax.f32 %v1489_v54, 1e-12 }
 0x218   : > { %v1476_v1 = vpop.xlane.xlu0 %1475 }
 0x219   : > { %3867 = vrcp.f32 %v1490_v56  ;;  %v1477_v59 = vmax.f32 %v1476_v1, 1e-12 }
 0x21b   : > { %3869 = vrcp.f32 %v1477_v59 }
 0x224   : > { %v3866_v60 = vpop.eup %3865 }
 0x225   : > { %v1466_v11 = vmul.f32 %v3866_v60, %v4998_v58  ;;  %v1310_v60 = vld [vmem:[#allocation3] sm:$0x3] }
 0x226   : > { %v3868_v63 = vpop.eup %3867 }
 0x227   : > { %v3704_v2 = vmul.f32 -1.442695, %v1466_v11  ;;  %v1492_v12 = vmul.f32 %v3868_v63, %v5004_v61 }
 0x228   : > { %v3870_v55 = vpop.eup %3869 }
 0x229   : > { %3871 = vpow2.f32 %v3704_v2  ;;  %v1479_v15 = vmul.f32 %v3870_v55, %v5002_v10  ;;  %v3706_v16 = vmul.f32 -1.442695, %v1492_v12 }
 0x22b   : > { %v3705_v57 = vmul.f32 -1.442695, %v1479_v15 }
 0x22d   : > { %3873 = vpow2.f32 %v3705_v57  ;;  %v7078_v57 = vld [vmem:[#allocation84_spill] sm:$0xff] }
 0x22e   : > { %3875 = vpow2.f32 %v3706_v16  ;;  %v7077_v16 = vld [vmem:[#allocation83_spill] sm:$0xff] }
 0x236   : > { %v3872_v54 = vpop.eup %3871 }
 0x237   : > { %v1470_v7 = vadd.f32 1.0, %v3872_v54  ;;  %v7079_v54 = vld [vmem:[#allocation85_spill] sm:$0xff] }
 0x239   : > { %3877 = vrcp.f32 %v1470_v7  ;;  %v7080_v7 = vld [vmem:[#allocation86_spill] sm:$0xff] }
 0x23a   : > { %v3874_v56 = vpop.eup %3873 }
 0x23b   : > { %v1483_v1 = vadd.f32 1.0, %v3874_v56  ;;  %v3876_v59 = vpop.eup %3875  ;;  %v7081_v56 = vld [vmem:[#allocation87_spill] sm:$0xff] }
 0x23c   : > { %v1496_v58 = vadd.f32 1.0, %v3876_v59  ;;  %v7083_v59 = vld [vmem:[#allocation89_spill] sm:$0xff] }
 0x23d   : > { %3879 = vrcp.f32 %v1483_v1  ;;  %v7082_v1 = vld [vmem:[#allocation88_spill] sm:$0xff] }
 0x23e   : > { %3881 = vrcp.f32 %v1496_v58  ;;  %v7084_v58 = vld [vmem:[#allocation90_spill] sm:$0xff] }
 0x246   : > { %v3878_v11 = vpop.eup %3877 }
 0x247   : > { %v1500_v2 = vmul.f32 %v3878_v11, %v5000_v62  ;;  %v7068_v62 = vld [vmem:[#allocation74_spill] sm:$0xff]  ;;  %v7085_v11 = vld [vmem:[#allocation91_spill] sm:$0xff] }
 0x24a   : > { %v3880_v61 = vpop.eup %3879 }
 0x24b   : > { %v1499_v63 = vmul.f32 %v3880_v61, %v1310_v60  ;;  %v3882_v12 = vpop.eup %3881  ;;  %v7086_v60 = vld [vmem:[#allocation92_spill] sm:$0xff]  ;;  %v7087_v61 = vld [vmem:[#allocation93_spill] sm:$0xff] }
 0x24d   : > { %v5386_v10 = vadd.f32 %v1500_v2, %v1499_v63  ;;  %v7088_v63 = vld [vmem:[#allocation94_spill] sm:$0xff]  ;;  %v7089_v2 = vld [vmem:[#allocation95_spill] sm:$0xff] }
 0x24f   : > { %v1502_v55 = vmax.f32 %v5386_v10, 0.0 }
 0x251   : > { %v5389_v15 = vmul.f32 %v3882_v12, %v1502_v55  ;;  %v7090_v55 = vld [vmem:[#allocation96_spill] sm:$0xff]  ;;  %v7091_v12 = vld [vmem:[#allocation97_spill] sm:$0xff] }
 0x253   : > { %1711 = vmatmul.mubr.f32.vlgmr.msra.gmra.mxu0 %v5389_v15  ;;  %1782 = vmatmul.mubr.f32.vlgmr.msra.gmra.mxu1 %v5389_v15 }
 0x254   : > { %1837 = vmatpush1.msra.mxu0 %v4743_v17  ;;  %1908 = vmatpush1.msra.mxu1 %v4745_v18  ;;  %v7031_v17 = vld [vmem:[#allocation22_spill] sm:$0xff]  ;;  %v7032_v18 = vld [vmem:[#allocation23_spill] sm:$0xff] }
 0x255   : > { %1838 = vmatprep.subr.mxu0 %v4749_v19  ;;  %1909 = vmatprep.subr.mxu1 %v4751_v20  ;;  %v7033_v19 = vld [vmem:[#allocation24_spill] sm:$0xff]  ;;  %v7034_v20 = vld [vmem:[#allocation25_spill] sm:$0xff] }
 0x256   : > { %1839 = vmatpush1.msra.mxu0 %v4755_v21  ;;  %1910 = vmatpush1.msra.mxu1 %v4757_v22  ;;  %v7035_v21 = vld [vmem:[#allocation26_spill] sm:$0xff]  ;;  %v7036_v22 = vld [vmem:[#allocation27_spill] sm:$0xff] }
 0x257   : > { %1840 = vmatprep.subr.mxu0 %v4761_v23  ;;  %1911 = vmatprep.subr.mxu1 %v4763_v24  ;;  %v7037_v23 = vld [vmem:[#allocation28_spill] sm:$0xff]  ;;  %v7038_v24 = vld [vmem:[#allocation29_spill] sm:$0xff] }
 0x258   : > { %1841 = vmatpush1.msra.mxu0 %v4767_v25  ;;  %1912 = vmatpush1.msra.mxu1 %v4769_v26  ;;  %v7039_v25 = vld [vmem:[#allocation30_spill] sm:$0xff]  ;;  %v7040_v26 = vld [vmem:[#allocation31_spill] sm:$0xff] }
 0x259   : > { %1842 = vmatprep.subr.mxu0 %v4773_v27  ;;  %1913 = vmatprep.subr.mxu1 %v4775_v28  ;;  %v7041_v27 = vld [vmem:[#allocation32_spill] sm:$0xff]  ;;  %v7042_v28 = vld [vmem:[#allocation33_spill] sm:$0xff] }
 0x25a   : > { %1843 = vmatpush1.msra.mxu0 %v4779_v29  ;;  %1914 = vmatpush1.msra.mxu1 %v4781_v30  ;;  %v7043_v29 = vld [vmem:[#allocation34_spill] sm:$0xff]  ;;  %v7044_v30 = vld [vmem:[#allocation35_spill] sm:$0xff] }
 0x25b   : > { %1844 = vmatprep.subr.mxu0 %v4785_v31  ;;  %1915 = vmatprep.subr.mxu1 %v4787_v32  ;;  %v7045_v31 = vld [vmem:[#allocation36_spill] sm:$0xff]  ;;  %v7046_v32 = vld [vmem:[#allocation37_spill] sm:$0xff] }
 0x25c   : > { %1845 = vmatpush1.msra.mxu0 %v4791_v33  ;;  %1916 = vmatpush1.msra.mxu1 %v4793_v34  ;;  %v7047_v33 = vld [vmem:[#allocation38_spill] sm:$0xff]  ;;  %v7048_v34 = vld [vmem:[#allocation39_spill] sm:$0xff] }
 0x25d   : > { %1846 = vmatprep.subr.mxu0 %v4797_v35  ;;  %1917 = vmatprep.subr.mxu1 %v4799_v36  ;;  %v7049_v35 = vld [vmem:[#allocation40_spill] sm:$0xff]  ;;  %v7050_v36 = vld [vmem:[#allocation41_spill] sm:$0xff] }
 0x25e   : > { %1847 = vmatpush1.msra.mxu0 %v4803_v37  ;;  %1918 = vmatpush1.msra.mxu1 %v4805_v38  ;;  %v7051_v37 = vld [vmem:[#allocation42_spill] sm:$0xff]  ;;  %v7052_v38 = vld [vmem:[#allocation43_spill] sm:$0xff] }
 0x25f   : > { %1848 = vmatprep.subr.mxu0 %v4809_v39  ;;  %1919 = vmatprep.subr.mxu1 %v4811_v40  ;;  %v7053_v39 = vld [vmem:[#allocation44_spill] sm:$0xff]  ;;  %v7054_v40 = vld [vmem:[#allocation45_spill] sm:$0xff] }
 0x260   : > { %1849 = vmatpush1.msra.mxu0 %v4815_v41  ;;  %1920 = vmatpush1.msra.mxu1 %v4817_v42  ;;  %v7055_v41 = vld [vmem:[#allocation46_spill] sm:$0xff]  ;;  %v7056_v42 = vld [vmem:[#allocation47_spill] sm:$0xff] }
 0x261   : > { %1850 = vmatprep.subr.mxu0 %v4821_v43  ;;  %1921 = vmatprep.subr.mxu1 %v4823_v44  ;;  %v7057_v43 = vld [vmem:[#allocation48_spill] sm:$0xff]  ;;  %v7058_v44 = vld [vmem:[#allocation49_spill] sm:$0xff] }
 0x262   : > { %1851 = vmatpush1.msra.mxu0 %v4827_v45  ;;  %1922 = vmatpush1.msra.mxu1 %v4829_v46  ;;  %v7059_v45 = vld [vmem:[#allocation50_spill] sm:$0xff]  ;;  %v7060_v46 = vld [vmem:[#allocation51_spill] sm:$0xff] }
 0x263   : > { %1852 = vmatprep.subr.mxu0 %v4833_v47  ;;  %1923 = vmatprep.subr.mxu1 %v4835_v48  ;;  %v7061_v47 = vld [vmem:[#allocation52_spill] sm:$0xff] }
 0x264   : > { %1853 = vmatpush1.msra.mxu0 %v4839_v49  ;;  %1924 = vmatpush1.msra.mxu1 %v4841_v50  ;;  %v7062_v48 = vld [vmem:[#allocation68_spill] sm:$0xff]  ;;  %v7063_v49 = vld [vmem:[#allocation69_spill] sm:$0xff]  ;;  %v7064_v50 = vld [vmem:[#allocation70_spill] sm:$0xff] }
 0x265   : > { %1854 = vmatprep.subr.mxu0 %v4845_v51  ;;  %1925 = vmatprep.subr.mxu1 %v4847_v52  ;;  %v7065_v51 = vld [vmem:[#allocation71_spill] sm:$0xff]  ;;  %v7066_v52 = vld [vmem:[#allocation72_spill] sm:$0xff] }
 0x266   : > { %1855 = vmatpush1.msra.mxu0 %v4851_v53  ;;  %1926 = vmatpush1.msra.mxu1 %v7031_v17  ;;  %v7067_v53 = vld [vmem:[#allocation73_spill] sm:$0xff]  ;;  %v7093_v17 = vld [vmem:[#allocation99_spill] sm:$0xff] }
 0x267   : > { %1856 = vmatprep.subr.mxu0 %v7032_v18  ;;  %1927 = vmatprep.subr.mxu1 %v7033_v19  ;;  %v7094_v18 = vld [vmem:[#allocation100_spill] sm:$0xff]  ;;  %v7095_v19 = vld [vmem:[#allocation101_spill] sm:$0xff] }
 0x268   : > { %1857 = vmatpush1.msra.mxu0 %v7034_v20  ;;  %1928 = vmatpush1.msra.mxu1 %v7035_v21  ;;  %v7096_v20 = vld [vmem:[#allocation102_spill] sm:$0xff]  ;;  %v7097_v21 = vld [vmem:[#allocation103_spill] sm:$0xff] }
 0x269   : > { %1858 = vmatprep.subr.mxu0 %v7036_v22  ;;  %1929 = vmatprep.subr.mxu1 %v7037_v23  ;;  %v7098_v22 = vld [vmem:[#allocation104_spill] sm:$0xff]  ;;  %v7099_v23 = vld [vmem:[#allocation105_spill] sm:$0xff] }
 0x26a   : > { %1859 = vmatpush1.msra.mxu0 %v7038_v24  ;;  %1930 = vmatpush1.msra.mxu1 %v7039_v25  ;;  %v7100_v24 = vld [vmem:[#allocation106_spill] sm:$0xff]  ;;  %v7101_v25 = vld [vmem:[#allocation107_spill] sm:$0xff] }
 0x26b   : > { %1860 = vmatprep.subr.mxu0 %v7040_v26  ;;  %1931 = vmatprep.subr.mxu1 %v7041_v27  ;;  %v7102_v26 = vld [vmem:[#allocation108_spill] sm:$0xff]  ;;  %v7103_v27 = vld [vmem:[#allocation109_spill] sm:$0xff] }
 0x26c   : > { %1861 = vmatpush1.msra.mxu0 %v7042_v28  ;;  %1932 = vmatpush1.msra.mxu1 %v7043_v29  ;;  %v7104_v28 = vld [vmem:[#allocation110_spill] sm:$0xff]  ;;  %v7105_v29 = vld [vmem:[#allocation111_spill] sm:$0xff] }
 0x26d   : > { %1862 = vmatprep.subr.mxu0 %v7044_v30  ;;  %1933 = vmatprep.subr.mxu1 %v7045_v31  ;;  %v7106_v30 = vld [vmem:[#allocation112_spill] sm:$0xff]  ;;  %v7107_v31 = vld [vmem:[#allocation113_spill] sm:$0xff] }
 0x26e   : > { %1863 = vmatpush1.msra.mxu0 %v7046_v32  ;;  %1934 = vmatpush1.msra.mxu1 %v7047_v33  ;;  %v7108_v32 = vld [vmem:[#allocation114_spill] sm:$0xff]  ;;  %v7109_v33 = vld [vmem:[#allocation115_spill] sm:$0xff] }
 0x26f   : > { %1864 = vmatprep.subr.mxu0 %v7048_v34  ;;  %1935 = vmatprep.subr.mxu1 %v7049_v35  ;;  %v7110_v34 = vld [vmem:[#allocation116_spill] sm:$0xff]  ;;  %v7111_v35 = vld [vmem:[#allocation117_spill] sm:$0xff] }
 0x270   : > { %1865 = vmatpush1.msra.mxu0 %v7050_v36  ;;  %1936 = vmatpush1.msra.mxu1 %v7051_v37  ;;  %v7112_v36 = vld [vmem:[#allocation118_spill] sm:$0xff]  ;;  %v7113_v37 = vld [vmem:[#allocation119_spill] sm:$0xff] }
 0x271   : > { %1866 = vmatprep.subr.mxu0 %v7052_v38  ;;  %1937 = vmatprep.subr.mxu1 %v7053_v39  ;;  %v1570_v38 = vpop.f32.mrf.mxu0  ;;  %v5527_v39 = vpop.f32.mrf.mxu1 }
 0x272   : > { %1867 = vmatpush1.msra.mxu0 %v7054_v40  ;;  %1900 = vmatprep.mubr.f32.mxu0 %v6895_v5  ;;  %v5532_v40 = vld [vmem:[%s6552_s6 + $0x4] sm:$0xf] }
 0x273   : > { %1938 = vmatpush1.msra.mxu1 %v7055_v41  ;;  %1971 = vmatprep.mubr.f32.mxu1 %v6895_v5  ;;  %v1572_v41 = vpop.f32.mrf.mxu0 }
 0x274   : > { %1901 = vmatmul.mubr.f32.vlgmr.msra.gmra.mxu0 %v5389_v15  ;;  %1972 = vmatmul.mubr.f32.vlgmr.msra.gmra.mxu1 %v5389_v15  ;;  %v7092_v15 = vld [vmem:[#allocation98_spill] sm:$0xff] }
 0x275   : > { %2026 = vmatprep.subr.mxu0 %v7056_v42  ;;  %2097 = vmatprep.subr.mxu1 %v7057_v43  ;;  %v1643_v42 = vpop.f32.mrf.mxu1  ;;  %v7114_v43 = vld [vmem:[#allocation54_spill] sm:$0xff] }
 0x276   : > { %2027 = vmatpush1.msra.mxu0 %v7058_v44  ;;  %2098 = vmatpush1.msra.mxu1 %v7059_v45  ;;  %v5536_v44 = vrot.slane %v5532_v40, %v7114_v43 }
 0x277   : > { %2028 = vmatprep.subr.mxu0 %v7060_v46  ;;  %2099 = vmatprep.subr.mxu1 %v7061_v47 }
 0x278   : > { %2029 = vmatpush1.msra.mxu0 %v5012_v3  ;;  %2100 = vmatpush1.msra.mxu1 %v5014_v4  ;;  %v7069_v3 = vld [vmem:[#allocation75_spill] sm:$0xff]  ;;  %v7070_v4 = vld [vmem:[#allocation76_spill] sm:$0xff]  ;;  %7115 = vst [vmem:[#allocation22_spill] sm:$0xff] %v5536_v44 }
 0x279   : > { %2030 = vmatprep.subr.mxu0 %v5018_v8  ;;  %2101 = vmatprep.subr.mxu1 %v5020_v9  ;;  %v7071_v8 = vld [vmem:[#allocation77_spill] sm:$0xff]  ;;  %v7072_v9 = vld [vmem:[#allocation78_spill] sm:$0xff] }
 0x27a   : > { %2031 = vmatpush1.msra.mxu0 %v5024_v14  ;;  %2102 = vmatpush1.msra.mxu1 %v5026_v6  ;;  %v7073_v14 = vld [vmem:[#allocation79_spill] sm:$0xff]  ;;  %v7074_v6 = vld [vmem:[#allocation80_spill] sm:$0xff] }
 0x27b   : > { %2032 = vmatprep.subr.mxu0 %v5030_v0  ;;  %2103 = vmatprep.subr.mxu1 %v5032_v13  ;;  %v7075_v0 = vld [vmem:[#allocation81_spill] sm:$0xff]  ;;  %v7076_v13 = vld [vmem:[#allocation82_spill] sm:$0xff] }
 0x27c   : > { %2033 = vmatpush1.msra.mxu0 %v7062_v48  ;;  %2104 = vmatpush1.msra.mxu1 %v7063_v49  ;;  %v7116_v48 = vld [vmem:[#allocation55_spill] sm:$0xff] }
 0x27d   : > { %2034 = vmatprep.subr.mxu0 %v7064_v50  ;;  %2105 = vmatprep.subr.mxu1 %v7065_v51  ;;  %v5542_v49 = vrot.slane %v5532_v40, %v7116_v48  ;;  %v7118_v50 = vld [vmem:[#allocation53_spill] sm:$0xff] }
 0x27e   : > { %2035 = vmatpush1.msra.mxu0 %v7066_v52  ;;  %2106 = vmatpush1.msra.mxu1 %v7067_v53  ;;  %v7119_v51 = vsub.s32 3, %v7118_v50 }
 0x27f   : > { %2036 = vmatprep.subr.mxu0 %v7068_v62  ;;  %2107 = vmatprep.subr.mxu1 %v7069_v3  ;;  %7117 = vst [vmem:[#allocation23_spill] sm:$0xff] %v5542_v49 }
 0x280   : > { %2037 = vmatpush1.msra.mxu0 %v7070_v4  ;;  %2108 = vmatpush1.msra.mxu1 %v7071_v8  ;;  %v5547_v52 = vrot.slane %v5532_v40, %v7119_v51 }
 0x281   : > { %2038 = vmatprep.subr.mxu0 %v7072_v9  ;;  %2109 = vmatprep.subr.mxu1 %v7073_v14 }
 0x282   : > { %2039 = vmatpush1.msra.mxu0 %v7074_v6  ;;  %2110 = vmatpush1.msra.mxu1 %v7075_v0  ;;  %7120 = vst [vmem:[#allocation24_spill] sm:$0xff] %v5547_v52 }
 0x283   : > { %2040 = vmatprep.subr.mxu0 %v7076_v13  ;;  %2111 = vmatprep.subr.mxu1 %v7077_v16 }
 0x284   : > { %2041 = vmatpush1.msra.mxu0 %v7078_v57  ;;  %2112 = vmatpush1.msra.mxu1 %v7079_v54 }
 0x285   : > { %2042 = vmatprep.subr.mxu0 %v7080_v7  ;;  %2113 = vmatprep.subr.mxu1 %v7081_v56 }
 0x286   : > { %2043 = vmatpush1.msra.mxu0 %v7082_v1  ;;  %2114 = vmatpush1.msra.mxu1 %v7083_v59  ;;  %v7121_v1 = vld [vmem:[#allocation56_spill] sm:$0xff] }
 0x287   : > { %2044 = vmatprep.subr.mxu0 %v7084_v58  ;;  %2115 = vmatprep.subr.mxu1 %v7085_v11  ;;  %v7122_v58 = vld [vmem:[#allocation58_spill] sm:$0xff] }
 0x288   : > { %2045 = vmatpush1.msra.mxu0 %v7086_v60  ;;  %2116 = vmatpush1.msra.mxu1 %v7087_v61 }
 0x289   : > { %2046 = vmatprep.subr.mxu0 %v7088_v63  ;;  %2117 = vmatprep.subr.mxu1 %v7089_v2  ;;  %v7123_v63 = vld [vmem:[#allocation57_spill] sm:$0xff] }
 0x28a   : > { %2047 = vmatpush1.msra.mxu0 %v7090_v55  ;;  %2118 = vmatpush1.msra.mxu1 %v7091_v12  ;;  %v7124_v55 = vld [vmem:[#allocation59_spill] sm:$0xff] }
 0x28b   : > { %2048 = vmatprep.subr.mxu0 %v7092_v15  ;;  %2119 = vmatprep.subr.mxu1 %v7093_v17 }
 0x28c   : > { %2049 = vmatpush1.msra.mxu0 %v7094_v18  ;;  %2120 = vmatpush1.msra.mxu1 %v7095_v19 }
 0x28d   : > { %2050 = vmatprep.subr.mxu0 %v7096_v20  ;;  %2121 = vmatprep.subr.mxu1 %v7097_v21 }
 0x28e   : > { %2051 = vmatpush1.msra.mxu0 %v7098_v22  ;;  %2122 = vmatpush1.msra.mxu1 %v7099_v23 }
 0x28f   : > { %2052 = vmatprep.subr.mxu0 %v7100_v24  ;;  %2123 = vmatprep.subr.mxu1 %v7101_v25 }
 0x290   : > { %2053 = vmatpush1.msra.mxu0 %v7102_v26  ;;  %2124 = vmatpush1.msra.mxu1 %v7103_v27 }
 0x291   : > { %2054 = vmatprep.subr.mxu0 %v7104_v28  ;;  %2125 = vmatprep.subr.mxu1 %v7105_v29 }
 0x292   : > { %2055 = vmatpush1.msra.mxu0 %v7106_v30  ;;  %2126 = vmatpush1.msra.mxu1 %v7107_v31 }
 0x293   : > { %2056 = vmatprep.subr.mxu0 %v7108_v32  ;;  %2127 = vmatprep.subr.mxu1 %v7109_v33 }
 0x294   : > { %2057 = vmatpush1.msra.mxu0 %v7110_v34  ;;  %2128 = vmatpush1.msra.mxu1 %v7111_v35 }
 0x295   : > { %2090 = vmatprep.mubr.f32.mxu0 %v6895_v5  ;;  %2161 = vmatprep.mubr.f32.mxu1 %v6895_v5 }
 0x296   : > { %2168 = vmatprep.subr.mxu0 %v7112_v36  ;;  %2239 = vmatprep.subr.mxu1 %v7113_v37 }
 0x313   : > { %v1712_v45 = vpop.f32.mrf.mxu0  ;;  %v5538_v46 = vpop.f32.mrf.mxu1 }
 0x314   : > { %v1713_v47 = vadd.f32 %v1712_v45, %v1570_v38 }
 0x315   : > { %v1714_v53 = vpop.f32.mrf.mxu0  ;;  %v1785_v62 = vpop.f32.mrf.mxu1 }
 0x316   : > { %v1788_v3 = vadd.f32 %v1713_v47, %v5536_v44  ;;  %v1715_v4 = vadd.f32 %v1714_v53, %v1572_v41  ;;  %v1786_v8 = vadd.f32 %v1785_v62, %v1643_v42 }
 0x318   : > { %v1789_v9 = vadd.f32 %v1715_v4, %v5542_v49  ;;  %v1791_v14 = vadd.f32 %v1786_v8, %v5547_v52  ;;  %v1792_v6 = vand.u32 2147483647, %v1788_v3  ;;  %v7125_v8 = vsub.s32 2, %v7118_v50 }
 0x31a   : > { %v1793_v0 = vsel %vm1460_vm1, %v1792_v6, 0.0  ;;  %v1805_v13 = vand.u32 2147483647, %v1789_v9  ;;  %v1818_v16 = vand.u32 2147483647, %v1791_v14 }
 0x31b   : > { %1794 = vadd.xlane.f32.xlu1 %v1793_v0 }
 0x31c   : > { %v1806_v57 = vsel %vm1460_vm1, %v1805_v13, 0.0  ;;  %v1819_v54 = vsel %vm1460_vm1, %v1818_v16, 0.0 }
 0x31d   : > { %1807 = vadd.xlane.f32.xlu0 %v1806_v57 }
 0x31f   : > { %1820 = vadd.xlane.f32.xlu1 %v1819_v54  ;;  %v1312_v54 = vld [vmem:[#allocation3 + $0x2] sm:$0x3] }
 0x334   : > { %v1902_v7 = vpop.f32.mrf.mxu0  ;;  %v1973_v56 = vpop.f32.mrf.mxu1 }
 0x335   : > { %v1978_v59 = vadd.f32 %v1902_v7, %v7121_v1  ;;  %v5557_v11 = vadd.f32 %v1973_v56, %v7122_v58 }
 0x336   : > { %v1904_v60 = vpop.f32.mrf.mxu0  ;;  %v1975_v61 = vpop.f32.mrf.mxu1 }
 0x337   : > { %v1979_v2 = vadd.f32 %v1904_v60, %v7123_v63  ;;  %v5561_v12 = vadd.f32 %v1975_v61, %v7124_v55  ;;  %v1982_v15 = vand.u32 2147483647, %v1978_v59  ;;  %v7127_v55 = vld [vmem:[#allocation121_spill] sm:$0xff] }
 0x339   : > { %v1983_v17 = vsel %vm1460_vm1, %v1982_v15, 0.0  ;;  %v1995_v18 = vand.u32 2147483647, %v1979_v2  ;;  %v2008_v19 = vand.u32 2147483647, %v5561_v12  ;;  %v7128_v15 = vld [vmem:[#allocation122_spill] sm:$0xff] }
 0x33a   : > { %1984 = vadd.xlane.f32.xlu0 %v1983_v17  ;;  %v7130_v17 = vld [vmem:[#allocation124_spill] sm:$0xff] }
 0x33b   : > { %v1996_v20 = vsel %vm1460_vm1, %v1995_v18, 0.0  ;;  %v2009_v21 = vsel %vm1460_vm1, %v2008_v19, 0.0  ;;  %v7131_v18 = vld [vmem:[#allocation125_spill] sm:$0xff] }
 0x33c   : > { %1997 = vadd.xlane.f32.xlu1 %v1996_v20  ;;  %v7132_v20 = vld [vmem:[#allocation126_spill] sm:$0xff] }
 0x33e   : > { %2010 = vadd.xlane.f32.xlu0 %v2009_v21  ;;  %v7133_v21 = vld [vmem:[#allocation127_spill] sm:$0xff] }
 0x3a4   : > { %v1795_v22 = vpop.xlane.xlu1 %1794 }
 0x3a5   : > { %v1796_v23 = vmax.f32 %v1795_v22, 1e-12 }
 0x3a6   : > { %v1808_v24 = vpop.xlane.xlu0 %1807 }
 0x3a7   : > { %3883 = vrcp.f32 %v1796_v23  ;;  %v1809_v25 = vmax.f32 %v1808_v24, 1e-12  ;;  %v7134_v23 = vld [vmem:[#allocation128_spill] sm:$0xff]  ;;  %v7135_v24 = vld [vmem:[#allocation129_spill] sm:$0xff] }
 0x3a8   : > { %v1821_v26 = vpop.xlane.xlu1 %1820 }
 0x3a9   : > { %3885 = vrcp.f32 %v1809_v25  ;;  %v1822_v27 = vmax.f32 %v1821_v26, 1e-12  ;;  %v7136_v26 = vld [vmem:[#allocation130_spill] sm:$0xff] }
 0x3ab   : > { %3887 = vrcp.f32 %v1822_v27  ;;  %v7137_v27 = vld [vmem:[#allocation131_spill] sm:$0xff] }
 0x3b4   : > { %v3884_v28 = vpop.eup %3883 }
 0x3b5   : > { %v1798_v29 = vmul.f32 %v3884_v28, %v1788_v3 }
 0x3b6   : > { %v3886_v30 = vpop.eup %3885 }
 0x3b7   : > { %v3707_v31 = vmul.f32 -1.442695, %v1798_v29  ;;  %v1811_v32 = vmul.f32 %v3886_v30, %v1789_v9  ;;  %v5570_v9 = vrot.slane %v5532_v40, %v7125_v8  ;;  %v7138_v29 = vld [vmem:[#allocation132_spill] sm:$0xff]  ;;  %v7139_v30 = vld [vmem:[#allocation133_spill] sm:$0xff]  ;;  %v7157_v8 = vld [vmem:[#allocation151_spill] sm:$0xff] }
 0x3b8   : > { %v3888_v33 = vpop.eup %3887 }
 0x3b9   : > { %3889 = vpow2.f32 %v3707_v31  ;;  %v3708_v34 = vmul.f32 -1.442695, %v1811_v32  ;;  %v1824_v35 = vmul.f32 %v3888_v33, %v1791_v14  ;;  %v1784_v14 = vadd.f32 %v5538_v46, %v5527_v39  ;;  %v7140_v31 = vld [vmem:[#allocation134_spill] sm:$0xff]  ;;  %v7141_v32 = vld [vmem:[#allocation135_spill] sm:$0xff]  ;;  %v7142_v33 = vld [vmem:[#allocation136_spill] sm:$0xff] }
 0x3bb   : > { %3891 = vpow2.f32 %v3708_v34  ;;  %v3709_v36 = vmul.f32 -1.442695, %v1824_v35  ;;  %v1790_v56 = vadd.f32 %v1784_v14, %v5570_v9  ;;  %v7143_v34 = vld [vmem:[#allocation137_spill] sm:$0xff]  ;;  %v7158_v14 = vld [vmem:[#allocation152_spill] sm:$0xff] }
 0x3bd   : > { %3893 = vpow2.f32 %v3709_v36  ;;  %v7144_v36 = vld [vmem:[#allocation138_spill] sm:$0xff] }
 0x3c3   : > { %v1985_v37 = vpop.xlane.xlu0 %1984 }
 0x3c4   : > { %v1986_v38 = vmax.f32 %v1985_v37, 1e-12  ;;  %v7145_v37 = vld [vmem:[#allocation139_spill] sm:$0xff] }
 0x3c5   : > { %v1998_v41 = vpop.xlane.xlu1 %1997 }
 0x3c6   : > { %v3890_v42 = vpop.eup %3889  ;;  %3895 = vrcp.f32 %v1986_v38  ;;  %v1999_v43 = vmax.f32 %v1998_v41, 1e-12  ;;  %v7146_v38 = vld [vmem:[#allocation140_spill] sm:$0xff]  ;;  %v7147_v41 = vld [vmem:[#allocation141_spill] sm:$0xff] }
 0x3c7   : > { %v1802_v45 = vadd.f32 1.0, %v3890_v42  ;;  %v2011_v47 = vpop.xlane.xlu0 %2010  ;;  %v7148_v42 = vld [vmem:[#allocation142_spill] sm:$0xff] }
 0x3c8   : > { %v3892_v48 = vpop.eup %3891  ;;  %3897 = vrcp.f32 %v1999_v43  ;;  %v2012_v51 = vmax.f32 %v2011_v47, 1e-12  ;;  %v7149_v43 = vld [vmem:[#allocation143_spill] sm:$0xff]  ;;  %v7150_v47 = vld [vmem:[#allocation144_spill] sm:$0xff] }
 0x3c9   : > { %3899 = vrcp.f32 %v1802_v45  ;;  %v1815_v53 = vadd.f32 1.0, %v3892_v48  ;;  %v7151_v48 = vld [vmem:[#allocation145_spill] sm:$0xff] }
 0x3ca   : > { %v3894_v62 = vpop.eup %3893  ;;  %3901 = vrcp.f32 %v2012_v51  ;;  %v7152_v51 = vld [vmem:[#allocation146_spill] sm:$0xff] }
 0x3cb   : > { %3903 = vrcp.f32 %v1815_v53  ;;  %v1828_v3 = vadd.f32 1.0, %v3894_v62  ;;  %v7153_v53 = vld [vmem:[#allocation147_spill] sm:$0xff]  ;;  %v7154_v62 = vld [vmem:[#allocation148_spill] sm:$0xff] }
 0x3cd   : > { %3905 = vrcp.f32 %v1828_v3  ;;  %v7155_v3 = vld [vmem:[#allocation149_spill] sm:$0xff] }
 0x3d3   : > { %v3896_v4 = vpop.eup %3895 }
 0x3d4   : > { %v1988_v6 = vmul.f32 %v3896_v4, %v1978_v59  ;;  %v7156_v4 = vld [vmem:[#allocation150_spill] sm:$0xff] }
 0x3d5   : > { %v3898_v0 = vpop.eup %3897 }
 0x3d6   : > { %v3900_v13 = vpop.eup %3899  ;;  %v3710_v16 = vmul.f32 -1.442695, %v1988_v6  ;;  %v2001_v57 = vmul.f32 %v3898_v0, %v1979_v2  ;;  %v7126_v2 = vld [vmem:[#allocation120_spill] sm:$0xff]  ;;  %v7159_v6 = vld [vmem:[#allocation153_spill] sm:$0xff]  ;;  %v7160_v0 = vld [vmem:[#allocation154_spill] sm:$0xff] }
 0x3d7   : > { %v3902_v7 = vpop.eup %3901  ;;  %v1832_v40 = vmul.f32 %v3900_v13, %v1790_v56  ;;  %v7161_v13 = vld [vmem:[#allocation155_spill] sm:$0xff] }
 0x3d8   : > { %v3904_v1 = vpop.eup %3903  ;;  %3907 = vpow2.f32 %v3710_v16  ;;  %v3711_v58 = vmul.f32 -1.442695, %v2001_v57  ;;  %v2014_v50 = vmul.f32 %v3902_v7, %v5561_v12  ;;  %v7129_v12 = vld [vmem:[#allocation123_spill] sm:$0xff]  ;;  %v7162_v16 = vld [vmem:[#allocation156_spill] sm:$0xff]  ;;  %v7163_v57 = vld [vmem:[#allocation157_spill] sm:$0xff] }
 0x3d9   : > { %v1831_v60 = vmul.f32 %v3904_v1, %v1312_v54  ;;  %v7164_v7 = vld [vmem:[#allocation158_spill] sm:$0xff]  ;;  %v7165_v56 = vld [vmem:[#allocation159_spill] sm:$0xff]  ;;  %v7166_v1 = vld [vmem:[#allocation160_spill] sm:$0xff] }
 0x3da   : > { %3909 = vpow2.f32 %v3711_v58  ;;  %v3712_v61 = vmul.f32 -1.442695, %v2014_v50  ;;  %v3906_v46 = vpop.eup %3905  ;;  %v7167_v58 = vld [vmem:[#allocation161_spill] sm:$0xff] }
 0x3db   : > { %v5576_v63 = vadd.f32 %v1832_v40, %v1831_v60  ;;  %v7168_v60 = vld [vmem:[#allocation162_spill] sm:$0xff]  ;;  %v7169_v40 = vld [vmem:[#allocation163_spill] sm:$0xff] }
 0x3dc   : > { %3911 = vpow2.f32 %v3712_v61  ;;  %v7170_v61 = vld [vmem:[#allocation164_spill] sm:$0xff] }
 0x3dd   : > { %v1834_v39 = vmax.f32 %v5576_v63, 0.0 }
 0x3df   : > { %v1835_v59 = vmul.f32 %v3906_v46, %v1834_v39  ;;  %v7171_v39 = vld [vmem:[#allocation165_spill] sm:$0xff] }
 0x3e1   : > { %2091 = vmatmul.mubr.f32.vlgmr.msra.gmra.mxu0 %v1835_v59  ;;  %2162 = vmatmul.mubr.f32.vlgmr.msra.gmra.mxu1 %v1835_v59 }
 0x3e2   : > { %2169 = vmatpush1.msra.mxu0 %v7126_v2  ;;  %2240 = vmatpush1.msra.mxu1 %v7127_v55  ;;  %v7172_v2 = vld [vmem:[#allocation166_spill] sm:$0xff]  ;;  %v7173_v55 = vld [vmem:[#allocation167_spill] sm:$0xff] }
 0x3e3   : > { %2170 = vmatprep.subr.mxu0 %v7128_v15  ;;  %2241 = vmatprep.subr.mxu1 %v7129_v12  ;;  %v7174_v15 = vld [vmem:[#allocation168_spill] sm:$0xff]  ;;  %v7175_v12 = vld [vmem:[#allocation169_spill] sm:$0xff] }
 0x3e4   : > { %2171 = vmatpush1.msra.mxu0 %v7130_v17  ;;  %2242 = vmatpush1.msra.mxu1 %v7131_v18  ;;  %v7176_v18 = vld [vmem:[#allocation170_spill] sm:$0xff] }
 0x3e5   : > { %v3908_v19 = vpop.eup %3907  ;;  %2172 = vmatprep.subr.mxu0 %v7132_v20  ;;  %2243 = vmatprep.subr.mxu1 %v7133_v21  ;;  %v7178_v20 = vld [vmem:[#allocation172_spill] sm:$0xff]  ;;  %v7179_v21 = vld [vmem:[#allocation173_spill] sm:$0xff] }
 0x3e6   : > { %v1992_v22 = vadd.f32 1.0, %v3908_v19  ;;  %2173 = vmatpush1.msra.mxu0 %v7134_v23  ;;  %2244 = vmatpush1.msra.mxu1 %v7135_v24  ;;  %v7177_v19 = vld [vmem:[#allocation171_spill] sm:$0xff]  ;;  %v7182_v23 = vld [vmem:[#allocation176_spill] sm:$0xff]  ;;  %v7183_v24 = vld [vmem:[#allocation177_spill] sm:$0xff] }
 0x3e7   : > { %v3910_v25 = vpop.eup %3909  ;;  %2174 = vmatprep.subr.mxu0 %v7136_v26  ;;  %2245 = vmatprep.subr.mxu1 %v7137_v27  ;;  %v7184_v26 = vld [vmem:[#allocation178_spill] sm:$0xff]  ;;  %v7185_v27 = vld [vmem:[#allocation179_spill] sm:$0xff] }
 0x3e8   : > { %3913 = vrcp.f32 %v1992_v22  ;;  %v2005_v28 = vadd.f32 1.0, %v3910_v25  ;;  %2175 = vmatpush1.msra.mxu0 %v7138_v29  ;;  %2246 = vmatpush1.msra.mxu1 %v7139_v30  ;;  %v7181_v22 = vld [vmem:[#allocation175_spill] sm:$0xff]  ;;  %v7187_v30 = vld [vmem:[#allocation181_spill] sm:$0xff] }
 0x3e9   : > { %2176 = vmatprep.subr.mxu0 %v7140_v31  ;;  %2247 = vmatprep.subr.mxu1 %v7141_v32  ;;  %v3912_v35 = vpop.eup %3911  ;;  %v5652_v31 = vld [vmem:[#allocation13 + $0x1e8] sm:$0xff]  ;;  %v5655_v32 = vld [vmem:[#allocation13 + $0x1f8] sm:$0xff] }
 0x3ea   : > { %3915 = vrcp.f32 %v2005_v28  ;;  %2177 = vmatpush1.msra.mxu0 %v7142_v33  ;;  %2248 = vmatpush1.msra.mxu1 %v7143_v34  ;;  %v2018_v45 = vadd.f32 1.0, %v3912_v35  ;;  %v7186_v28 = vld [vmem:[#allocation180_spill] sm:$0xff]  ;;  %v5658_v33 = vld [vmem:[#allocation13 + $0x1e0] sm:$0xff]  ;;  %v5664_v35 = vld [vmem:[#allocation13 + $0x1c8] sm:$0xff] }
 0x3eb   : > { %2178 = vmatprep.subr.mxu0 %v7144_v36  ;;  %2249 = vmatprep.subr.mxu1 %v7145_v37  ;;  %v5661_v34 = vld [vmem:[#allocation13 + $0x1f0] sm:$0xff]  ;;  %v5667_v36 = vld [vmem:[#allocation13 + $0x1d8] sm:$0xff]  ;;  %v5670_v37 = vld [vmem:[#allocation13 + $0x1c0] sm:$0xff] }
 0x3ec   : > { %2179 = vmatpush1.msra.mxu0 %v7146_v38  ;;  %2250 = vmatpush1.msra.mxu1 %v7147_v41  ;;  %3917 = vrcp.f32 %v2018_v45  ;;  %v5673_v38 = vld [vmem:[#allocation13 + $0x1d0] sm:$0xff]  ;;  %v5676_v41 = vld [vmem:[#allocation13 + $0x1a8] sm:$0xff] }
 0x3ed   : > { %2180 = vmatprep.subr.mxu0 %v7148_v42  ;;  %2251 = vmatprep.subr.mxu1 %v7149_v43  ;;  %v5679_v42 = vld [vmem:[#allocation13 + $0x1b8] sm:$0xff]  ;;  %v5682_v43 = vld [vmem:[#allocation13 + $0x1a0] sm:$0xff]  ;;  %v5685_v45 = vld [vmem:[#allocation13 + $0x1b0] sm:$0xff] }
 0x3ee   : > { %2181 = vmatpush1.msra.mxu0 %v7150_v47  ;;  %2252 = vmatpush1.msra.mxu1 %v7151_v48  ;;  %v5688_v47 = vld [vmem:[#allocation13 + $0x188] sm:$0xff]  ;;  %v5691_v48 = vld [vmem:[#allocation13 + $0x198] sm:$0xff] }
 0x3ef   : > { %2182 = vmatprep.subr.mxu0 %v7152_v51  ;;  %2253 = vmatprep.subr.mxu1 %v7153_v53  ;;  %v5694_v51 = vld [vmem:[#allocation13 + $0x180] sm:$0xff]  ;;  %v5697_v53 = vld [vmem:[#allocation13 + $0x190] sm:$0xff] }
 0x3f0   : > { %2183 = vmatpush1.msra.mxu0 %v7154_v62  ;;  %2254 = vmatpush1.msra.mxu1 %v7155_v3  ;;  %v5700_v62 = vld [vmem:[#allocation13 + $0x168] sm:$0xff]  ;;  %v5703_v3 = vld [vmem:[#allocation13 + $0x178] sm:$0xff] }
 0x3f1   : > { %2184 = vmatprep.subr.mxu0 %v7156_v4  ;;  %2255 = vmatprep.subr.mxu1 %v7157_v8  ;;  %v5706_v4 = vld [vmem:[#allocation13 + $0x160] sm:$0xff]  ;;  %v5709_v8 = vld [vmem:[#allocation13 + $0x170] sm:$0xff] }
 0x3f2   : > { %2185 = vmatpush1.msra.mxu0 %v7158_v14  ;;  %2256 = vmatpush1.msra.mxu1 %v7159_v6  ;;  %v5712_v14 = vld [vmem:[#allocation13 + $0x148] sm:$0xff]  ;;  %v5715_v6 = vld [vmem:[#allocation13 + $0x158] sm:$0xff] }
 0x3f3   : > { %2186 = vmatprep.subr.mxu0 %v7160_v0  ;;  %2257 = vmatprep.subr.mxu1 %v7161_v13  ;;  %v5718_v0 = vld [vmem:[#allocation13 + $0x140] sm:$0xff]  ;;  %v5721_v13 = vld [vmem:[#allocation13 + $0x150] sm:$0xff] }
 0x3f4   : > { %2187 = vmatpush1.msra.mxu0 %v7162_v16  ;;  %2258 = vmatpush1.msra.mxu1 %v7163_v57  ;;  %v5724_v16 = vld [vmem:[#allocation13 + $0x128] sm:$0xff]  ;;  %v5727_v57 = vld [vmem:[#allocation13 + $0x138] sm:$0xff] }
 0x3f5   : > { %v3914_v54 = vpop.eup %3913  ;;  %2188 = vmatprep.subr.mxu0 %v7164_v7  ;;  %2259 = vmatprep.subr.mxu1 %v7165_v56  ;;  %v5733_v7 = vld [vmem:[#allocation13 + $0x130] sm:$0xff]  ;;  %v5736_v56 = vld [vmem:[#allocation13 + $0x108] sm:$0xff] }
 0x3f6   : > { %2189 = vmatpush1.msra.mxu0 %v7166_v1  ;;  %2260 = vmatpush1.msra.mxu1 %v7167_v58  ;;  %v2022_v59 = vmul.f32 %v3914_v54, %v5557_v11  ;;  %v7180_v11 = vld [vmem:[#allocation174_spill] sm:$0xff]  ;;  %v5739_v1 = vld [vmem:[#allocation13 + $0x118] sm:$0xff] }
 0x3f7   : > { %v3916_v50 = vpop.eup %3915  ;;  %2190 = vmatprep.subr.mxu0 %v7168_v60  ;;  %2261 = vmatprep.subr.mxu1 %v7169_v40  ;;  %v5730_v54 = vld [vmem:[#allocation13 + $0x120] sm:$0xff]  ;;  %v5748_v60 = vld [vmem:[#allocation13 + $0xe8] sm:$0xff]  ;;  %v5751_v40 = vld [vmem:[#allocation13 + $0xf8] sm:$0xff] }
 0x3f8   : > { %2191 = vmatpush1.msra.mxu0 %v7170_v61  ;;  %2262 = vmatpush1.msra.mxu1 %v7171_v39  ;;  %v2021_v46 = vmul.f32 %v3916_v50, %v5386_v10  ;;  %v5742_v58 = vld [vmem:[#allocation13 + $0x100] sm:$0xff]  ;;  %v5745_v50 = vld [vmem:[#allocation13 + $0x110] sm:$0xff] }
 0x3f9   : > { %2192 = vmatprep.subr.mxu0 %v7172_v2  ;;  %2263 = vmatprep.subr.mxu1 %v7173_v55  ;;  %v3918_v25 = vpop.eup %3917  ;;  %v5754_v61 = vld [vmem:[#allocation13 + $0xe0] sm:$0xff]  ;;  %v5757_v39 = vld [vmem:[#allocation13 + $0xf0] sm:$0xff] }
 0x3fa   : > { %2193 = vmatpush1.msra.mxu0 %v7174_v15  ;;  %2264 = vmatpush1.msra.mxu1 %v7175_v12  ;;  %v5631_v17 = vadd.f32 %v2022_v59, %v2021_v46  ;;  %7188 = vst [vmem:[#allocation25_spill] sm:$0xff] %v5757_v39  ;;  %v5760_v46 = vld [vmem:[#allocation13 + $0xc8] sm:$0xff]  ;;  %v5763_v59 = vld [vmem:[#allocation13 + $0xd8] sm:$0xff]  ;;  %v5766_v2 = vld [vmem:[#allocation13 + $0xc0] sm:$0xff] }
 0x3fb   : > { %2194 = vmatprep.subr.mxu0 %v7176_v18  ;;  %2265 = vmatprep.subr.mxu1 %v7177_v19  ;;  %7189 = vst [vmem:[#allocation26_spill] sm:$0xff] %v5760_v46  ;;  %7190 = vst [vmem:[#allocation27_spill] sm:$0xff] %v5763_v59  ;;  %v5769_v55 = vld [vmem:[#allocation13 + $0xd0] sm:$0xff]  ;;  %v5772_v15 = vld [vmem:[#allocation13 + $0xa8] sm:$0xff] }
 0x3fc   : > { %2195 = vmatpush1.msra.mxu0 %v7178_v20  ;;  %2266 = vmatpush1.msra.mxu1 %v7179_v21  ;;  %v2024_v10 = vmax.f32 %v5631_v17, 0.0  ;;  %7191 = vst [vmem:[#allocation28_spill] sm:$0xff] %v5766_v2  ;;  %7192 = vst [vmem:[#allocation29_spill] sm:$0xff] %v5769_v55  ;;  %v5775_v12 = vld [vmem:[#allocation13 + $0xb8] sm:$0xff]  ;;  %v5778_v18 = vld [vmem:[#allocation13 + $0xa0] sm:$0xff] }
 0x3fd   : > { %2196 = vmatprep.subr.mxu0 %v7180_v11  ;;  %2267 = vmatprep.subr.mxu1 %v7181_v22  ;;  %7193 = vst [vmem:[#allocation30_spill] sm:$0xff] %v5772_v15  ;;  %7194 = vst [vmem:[#allocation31_spill] sm:$0xff] %v5775_v12  ;;  %v5781_v19 = vld [vmem:[#allocation13 + $0xb0] sm:$0xff]  ;;  %v5784_v20 = vld [vmem:[#allocation13 + $0x88] sm:$0xff] }
 0x3fe   : > { %2197 = vmatpush1.msra.mxu0 %v7182_v23  ;;  %2268 = vmatpush1.msra.mxu1 %v7183_v24  ;;  %v5646_v29 = vmul.f32 %v3918_v25, %v2024_v10  ;;  %7195 = vst [vmem:[#allocation32_spill] sm:$0xff] %v5778_v18  ;;  %7196 = vst [vmem:[#allocation33_spill] sm:$0xff] %v5781_v19  ;;  %v5787_v21 = vld [vmem:[#allocation13 + $0x98] sm:$0xff]  ;;  %v5790_v10 = vld [vmem:[#allocation13 + $0x80] sm:$0xff] }
 0x3ff   : > { %2198 = vmatprep.subr.mxu0 %v7184_v26  ;;  %2269 = vmatprep.subr.mxu1 %v7185_v27  ;;  %7197 = vst [vmem:[#allocation34_spill] sm:$0xff] %v5784_v20  ;;  %7198 = vst [vmem:[#allocation35_spill] sm:$0xff] %v5787_v21  ;;  %v5793_v11 = vld [vmem:[#allocation13 + $0x90] sm:$0xff]  ;;  %v5796_v22 = vld [vmem:[#allocation13 + $0x68] sm:$0xff] }
 0x400   : > { %2199 = vmatpush1.msra.mxu0 %v7186_v28  ;;  %2232 = vmatprep.mubr.f32.mxu0 %v6895_v5  ;;  %7199 = vst [vmem:[#allocation36_spill] sm:$0xff] %v5790_v10  ;;  %7200 = vst [vmem:[#allocation37_spill] sm:$0xff] %v5793_v11  ;;  %v5799_v23 = vld [vmem:[#allocation13 + $0x78] sm:$0xff]  ;;  %v5802_v24 = vld [vmem:[#allocation13 + $0x60] sm:$0xff] }
 0x401   : > { %2270 = vmatpush1.msra.mxu1 %v7187_v30  ;;  %2303 = vmatprep.mubr.f32.mxu1 %v6895_v5  ;;  %7201 = vst [vmem:[#allocation38_spill] sm:$0xff] %v5796_v22  ;;  %7202 = vst [vmem:[#allocation39_spill] sm:$0xff] %v5799_v23  ;;  %v5805_v25 = vld [vmem:[#allocation13 + $0x70] sm:$0xff]  ;;  %v5808_v26 = vld [vmem:[#allocation13 + $0x48] sm:$0xff] }
 0x402   : > { %2233 = vmatmul.mubr.f32.vlgmr.msra.gmra.mxu0 %v5646_v29  ;;  %2304 = vmatmul.mubr.f32.vlgmr.msra.gmra.mxu1 %v5646_v29  ;;  %7203 = vst [vmem:[#allocation40_spill] sm:$0xff] %v5802_v24  ;;  %7204 = vst [vmem:[#allocation41_spill] sm:$0xff] %v5805_v25  ;;  %v5811_v27 = vld [vmem:[#allocation13 + $0x58] sm:$0xff]  ;;  %v5814_v28 = vld [vmem:[#allocation13 + $0x40] sm:$0xff] }
 0x403   : > { %2358 = vmatprep.subr.mxu0 %v5652_v31  ;;  %2429 = vmatprep.subr.mxu1 %v5655_v32  ;;  %7205 = vst [vmem:[#allocation42_spill] sm:$0xff] %v5808_v26  ;;  %7206 = vst [vmem:[#allocation43_spill] sm:$0xff] %v5811_v27  ;;  %v5817_v30 = vld [vmem:[#allocation13 + $0x50] sm:$0xff] }
 0x404   : > { %2359 = vmatpush1.msra.mxu0 %v5658_v33  ;;  %2430 = vmatpush1.msra.mxu1 %v5661_v34  ;;  %7207 = vst [vmem:[#allocation44_spill] sm:$0xff] %v5814_v28  ;;  %7208 = vst [vmem:[#allocation45_spill] sm:$0xff] %v5817_v30 }
 0x405   : > { %2360 = vmatprep.subr.mxu0 %v5664_v35  ;;  %2431 = vmatprep.subr.mxu1 %v5667_v36 }
 0x406   : > { %2361 = vmatpush1.msra.mxu0 %v5670_v37  ;;  %2432 = vmatpush1.msra.mxu1 %v5673_v38 }
 0x407   : > { %2362 = vmatprep.subr.mxu0 %v5676_v41  ;;  %2433 = vmatprep.subr.mxu1 %v5679_v42 }
 0x408   : > { %2363 = vmatpush1.msra.mxu0 %v5682_v43  ;;  %2434 = vmatpush1.msra.mxu1 %v5685_v45 }
 0x409   : > { %2364 = vmatprep.subr.mxu0 %v5688_v47  ;;  %2435 = vmatprep.subr.mxu1 %v5691_v48 }
 0x40a   : > { %2365 = vmatpush1.msra.mxu0 %v5694_v51  ;;  %2436 = vmatpush1.msra.mxu1 %v5697_v53 }
 0x40b   : > { %2366 = vmatprep.subr.mxu0 %v5700_v62  ;;  %2437 = vmatprep.subr.mxu1 %v5703_v3 }
 0x40c   : > { %2367 = vmatpush1.msra.mxu0 %v5706_v4  ;;  %2438 = vmatpush1.msra.mxu1 %v5709_v8 }
 0x40d   : > { %2368 = vmatprep.subr.mxu0 %v5712_v14  ;;  %2439 = vmatprep.subr.mxu1 %v5715_v6 }
 0x40e   : > { %2369 = vmatpush1.msra.mxu0 %v5718_v0  ;;  %2440 = vmatpush1.msra.mxu1 %v5721_v13 }
 0x40f   : > { %2370 = vmatprep.subr.mxu0 %v5724_v16  ;;  %2441 = vmatprep.subr.mxu1 %v5727_v57 }
 0x410   : > { %2371 = vmatpush1.msra.mxu0 %v5730_v54  ;;  %2442 = vmatpush1.msra.mxu1 %v5733_v7 }
 0x411   : > { %2372 = vmatprep.subr.mxu0 %v5736_v56  ;;  %2443 = vmatprep.subr.mxu1 %v5739_v1 }
 0x412   : > { %2373 = vmatpush1.msra.mxu0 %v5742_v58  ;;  %2444 = vmatpush1.msra.mxu1 %v5745_v50 }
 0x413   : > { %2374 = vmatprep.subr.mxu0 %v5748_v60  ;;  %2445 = vmatprep.subr.mxu1 %v5751_v40 }
 0x414   : > { %2375 = vmatpush1.msra.mxu0 %v5754_v61  ;;  %2446 = vmatpush1.msra.mxu1 %v5757_v39 }
 0x415   : > { %2376 = vmatprep.subr.mxu0 %v5760_v46  ;;  %2447 = vmatprep.subr.mxu1 %v5763_v59 }
 0x416   : > { %2377 = vmatpush1.msra.mxu0 %v5766_v2  ;;  %2448 = vmatpush1.msra.mxu1 %v5769_v55 }
 0x417   : > { %2378 = vmatprep.subr.mxu0 %v5772_v15  ;;  %2449 = vmatprep.subr.mxu1 %v5775_v12 }
 0x418   : > { %2379 = vmatpush1.msra.mxu0 %v5778_v18  ;;  %2450 = vmatpush1.msra.mxu1 %v5781_v19 }
 0x419   : > { %2380 = vmatprep.subr.mxu0 %v5784_v20  ;;  %2451 = vmatprep.subr.mxu1 %v5787_v21 }
 0x41a   : > { %2381 = vmatpush1.msra.mxu0 %v5790_v10  ;;  %2452 = vmatpush1.msra.mxu1 %v5793_v11 }
 0x41b   : > { %2382 = vmatprep.subr.mxu0 %v5796_v22  ;;  %2453 = vmatprep.subr.mxu1 %v5799_v23 }
 0x41c   : > { %2383 = vmatpush1.msra.mxu0 %v5802_v24  ;;  %2454 = vmatpush1.msra.mxu1 %v5805_v25  ;;  %v5820_v24 = vld [vmem:[#allocation13 + $0x28] sm:$0xff]  ;;  %v5823_v25 = vld [vmem:[#allocation13 + $0x38] sm:$0xff] }
 0x41d   : > { %2384 = vmatprep.subr.mxu0 %v5808_v26  ;;  %2455 = vmatprep.subr.mxu1 %v5811_v27  ;;  %7209 = vst [vmem:[#allocation46_spill] sm:$0xff] %v5820_v24  ;;  %7210 = vst [vmem:[#allocation47_spill] sm:$0xff] %v5823_v25  ;;  %v5826_v26 = vld [vmem:[#allocation13 + $0x20] sm:$0xff]  ;;  %v5829_v27 = vld [vmem:[#allocation13 + $0x30] sm:$0xff] }
 0x41e   : > { %2385 = vmatpush1.msra.mxu0 %v5814_v28  ;;  %2456 = vmatpush1.msra.mxu1 %v5817_v30  ;;  %7211 = vst [vmem:[#allocation48_spill] sm:$0xff] %v5826_v26  ;;  %7212 = vst [vmem:[#allocation49_spill] sm:$0xff] %v5829_v27  ;;  %v5832_v28 = vld [vmem:[#allocation13 + $0x8] sm:$0xff]  ;;  %v5835_v30 = vld [vmem:[#allocation13 + $0x18] sm:$0xff] }
 0x41f   : > { %2386 = vmatprep.subr.mxu0 %v5820_v24  ;;  %2457 = vmatprep.subr.mxu1 %v5823_v25  ;;  %7213 = vst [vmem:[#allocation50_spill] sm:$0xff] %v5832_v28  ;;  %7214 = vst [vmem:[#allocation51_spill] sm:$0xff] %v5835_v30  ;;  %v5838_v24 = vld [vmem:[#allocation13] sm:$0xff]  ;;  %v5842_v25 = vld [vmem:[#allocation13 + $0x10] sm:$0xff] }
 0x420   : > { %2387 = vmatpush1.msra.mxu0 %v5826_v26  ;;  %2458 = vmatpush1.msra.mxu1 %v5829_v27  ;;  %7215 = vst [vmem:[#allocation52_spill] sm:$0xff] %v5838_v24  ;;  %7216 = vst [vmem:[#allocation68_spill] sm:$0xff] %v5842_v25  ;;  %v5857_v27 = vld [vmem:[#allocation13 + $0x3f0] sm:$0xff] }
 0x421   : > { %2388 = vmatprep.subr.mxu0 %v5832_v28  ;;  %2459 = vmatprep.subr.mxu1 %v5835_v30  ;;  %v5848_v28 = vld [vmem:[#allocation13 + $0x3e8] sm:$0xff]  ;;  %v5851_v30 = vld [vmem:[#allocation13 + $0x3f8] sm:$0xff]  ;;  %7220 = vst [vmem:[#allocation72_spill] sm:$0xff] %v5857_v27 }
 0x422   : > { %2389 = vmatpush1.msra.mxu0 %v5838_v24  ;;  %2422 = vmatprep.mubr.f32.mxu0 %v6895_v5  ;;  %7217 = vst [vmem:[#allocation69_spill] sm:$0xff] %v5848_v28  ;;  %7218 = vst [vmem:[#allocation70_spill] sm:$0xff] %v5851_v30  ;;  %v5854_v24 = vld [vmem:[#allocation13 + $0x3e0] sm:$0xff] }
 0x423   : > { %2460 = vmatpush1.msra.mxu1 %v5842_v25  ;;  %2493 = vmatprep.mubr.f32.mxu1 %v6895_v5  ;;  %7219 = vst [vmem:[#allocation71_spill] sm:$0xff] %v5854_v24  ;;  %v5860_v25 = vld [vmem:[#allocation13 + $0x3c8] sm:$0xff] }
 0x424   : > { %2423 = vmatmul.mubr.f32.vlgmr.msra.gmra.mxu0 %v5646_v29  ;;  %2494 = vmatmul.mubr.f32.vlgmr.msra.gmra.mxu1 %v5646_v29  ;;  %7221 = vst [vmem:[#allocation73_spill] sm:$0xff] %v5860_v25  ;;  %v5863_v29 = vld [vmem:[#allocation13 + $0x3d8] sm:$0xff] }
 0x425   : > { %2548 = vmatprep.subr.mxu0 %v5848_v28  ;;  %2619 = vmatprep.subr.mxu1 %v5851_v30  ;;  %7222 = vst [vmem:[#allocation74_spill] sm:$0xff] %v5863_v29  ;;  %v5866_v28 = vld [vmem:[#allocation13 + $0x3c0] sm:$0xff]  ;;  %v5869_v30 = vld [vmem:[#allocation13 + $0x3d0] sm:$0xff] }
 0x426   : > { %2549 = vmatpush1.msra.mxu0 %v5854_v24  ;;  %2620 = vmatpush1.msra.mxu1 %v5857_v27  ;;  %7223 = vst [vmem:[#allocation75_spill] sm:$0xff] %v5866_v28  ;;  %7224 = vst [vmem:[#allocation76_spill] sm:$0xff] %v5869_v30  ;;  %v5872_v24 = vld [vmem:[#allocation13 + $0x3a8] sm:$0xff]  ;;  %v5875_v27 = vld [vmem:[#allocation13 + $0x3b8] sm:$0xff] }
 0x427   : > { %2550 = vmatprep.subr.mxu0 %v5860_v25  ;;  %2621 = vmatprep.subr.mxu1 %v5863_v29  ;;  %7225 = vst [vmem:[#allocation77_spill] sm:$0xff] %v5872_v24  ;;  %7226 = vst [vmem:[#allocation78_spill] sm:$0xff] %v5875_v27  ;;  %v5878_v25 = vld [vmem:[#allocation13 + $0x3a0] sm:$0xff]  ;;  %v5881_v29 = vld [vmem:[#allocation13 + $0x3b0] sm:$0xff] }
 0x428   : > { %2551 = vmatpush1.msra.mxu0 %v5866_v28  ;;  %2622 = vmatpush1.msra.mxu1 %v5869_v30  ;;  %7227 = vst [vmem:[#allocation79_spill] sm:$0xff] %v5878_v25  ;;  %7228 = vst [vmem:[#allocation80_spill] sm:$0xff] %v5881_v29  ;;  %v5884_v28 = vld [vmem:[#allocation13 + $0x388] sm:$0xff]  ;;  %v5887_v30 = vld [vmem:[#allocation13 + $0x398] sm:$0xff] }
 0x429   : > { %2552 = vmatprep.subr.mxu0 %v5872_v24  ;;  %2623 = vmatprep.subr.mxu1 %v5875_v27  ;;  %7229 = vst [vmem:[#allocation81_spill] sm:$0xff] %v5884_v28  ;;  %7230 = vst [vmem:[#allocation82_spill] sm:$0xff] %v5887_v30  ;;  %v5890_v24 = vld [vmem:[#allocation13 + $0x380] sm:$0xff]  ;;  %v5893_v27 = vld [vmem:[#allocation13 + $0x390] sm:$0xff] }
 0x42a   : > { %2553 = vmatpush1.msra.mxu0 %v5878_v25  ;;  %2624 = vmatpush1.msra.mxu1 %v5881_v29  ;;  %7231 = vst [vmem:[#allocation83_spill] sm:$0xff] %v5890_v24  ;;  %7232 = vst [vmem:[#allocation84_spill] sm:$0xff] %v5893_v27  ;;  %v5896_v25 = vld [vmem:[#allocation13 + $0x368] sm:$0xff]  ;;  %v5899_v29 = vld [vmem:[#allocation13 + $0x378] sm:$0xff] }
 0x42b   : > { %2554 = vmatprep.subr.mxu0 %v5884_v28  ;;  %2625 = vmatprep.subr.mxu1 %v5887_v30  ;;  %7233 = vst [vmem:[#allocation85_spill] sm:$0xff] %v5896_v25  ;;  %7234 = vst [vmem:[#allocation86_spill] sm:$0xff] %v5899_v29  ;;  %v5902_v28 = vld [vmem:[#allocation13 + $0x360] sm:$0xff]  ;;  %v5905_v30 = vld [vmem:[#allocation13 + $0x370] sm:$0xff] }
 0x42c   : > { %2555 = vmatpush1.msra.mxu0 %v5890_v24  ;;  %2626 = vmatpush1.msra.mxu1 %v5893_v27  ;;  %7235 = vst [vmem:[#allocation87_spill] sm:$0xff] %v5902_v28  ;;  %7236 = vst [vmem:[#allocation88_spill] sm:$0xff] %v5905_v30  ;;  %v5908_v24 = vld [vmem:[#allocation13 + $0x348] sm:$0xff]  ;;  %v5911_v27 = vld [vmem:[#allocation13 + $0x358] sm:$0xff] }
 0x42d   : > { %2556 = vmatprep.subr.mxu0 %v5896_v25  ;;  %2627 = vmatprep.subr.mxu1 %v5899_v29  ;;  %7237 = vst [vmem:[#allocation89_spill] sm:$0xff] %v5908_v24  ;;  %7238 = vst [vmem:[#allocation90_spill] sm:$0xff] %v5911_v27  ;;  %v5914_v25 = vld [vmem:[#allocation13 + $0x340] sm:$0xff]  ;;  %v5917_v29 = vld [vmem:[#allocation13 + $0x350] sm:$0xff] }
 0x42e   : > { %2557 = vmatpush1.msra.mxu0 %v5902_v28  ;;  %2628 = vmatpush1.msra.mxu1 %v5905_v30  ;;  %7239 = vst [vmem:[#allocation91_spill] sm:$0xff] %v5914_v25  ;;  %7240 = vst [vmem:[#allocation92_spill] sm:$0xff] %v5917_v29  ;;  %v5920_v28 = vld [vmem:[#allocation13 + $0x328] sm:$0xff]  ;;  %v5923_v30 = vld [vmem:[#allocation13 + $0x338] sm:$0xff] }
 0x42f   : > { %2558 = vmatprep.subr.mxu0 %v5908_v24  ;;  %2629 = vmatprep.subr.mxu1 %v5911_v27  ;;  %7241 = vst [vmem:[#allocation93_spill] sm:$0xff] %v5920_v28  ;;  %7242 = vst [vmem:[#allocation94_spill] sm:$0xff] %v5923_v30  ;;  %v5926_v24 = vld [vmem:[#allocation13 + $0x320] sm:$0xff]  ;;  %v5929_v27 = vld [vmem:[#allocation13 + $0x330] sm:$0xff] }
 0x430   : > { %2559 = vmatpush1.msra.mxu0 %v5914_v25  ;;  %2630 = vmatpush1.msra.mxu1 %v5917_v29  ;;  %7243 = vst [vmem:[#allocation95_spill] sm:$0xff] %v5926_v24  ;;  %7244 = vst [vmem:[#allocation96_spill] sm:$0xff] %v5929_v27  ;;  %v5932_v25 = vld [vmem:[#allocation13 + $0x308] sm:$0xff]  ;;  %v5935_v29 = vld [vmem:[#allocation13 + $0x318] sm:$0xff] }
 0x431   : > { %2560 = vmatprep.subr.mxu0 %v5920_v28  ;;  %2631 = vmatprep.subr.mxu1 %v5923_v30  ;;  %7245 = vst [vmem:[#allocation97_spill] sm:$0xff] %v5932_v25  ;;  %7246 = vst [vmem:[#allocation98_spill] sm:$0xff] %v5935_v29  ;;  %v5938_v28 = vld [vmem:[#allocation13 + $0x300] sm:$0xff]  ;;  %v5941_v30 = vld [vmem:[#allocation13 + $0x310] sm:$0xff] }
 0x432   : > { %2561 = vmatpush1.msra.mxu0 %v5926_v24  ;;  %2632 = vmatpush1.msra.mxu1 %v5929_v27  ;;  %7247 = vst [vmem:[#allocation99_spill] sm:$0xff] %v5938_v28  ;;  %7248 = vst [vmem:[#allocation100_spill] sm:$0xff] %v5941_v30  ;;  %v5944_v24 = vld [vmem:[#allocation13 + $0x2e8] sm:$0xff]  ;;  %v5947_v27 = vld [vmem:[#allocation13 + $0x2f8] sm:$0xff] }
 0x433   : > { %2562 = vmatprep.subr.mxu0 %v5932_v25  ;;  %2633 = vmatprep.subr.mxu1 %v5935_v29  ;;  %7249 = vst [vmem:[#allocation101_spill] sm:$0xff] %v5944_v24  ;;  %7250 = vst [vmem:[#allocation102_spill] sm:$0xff] %v5947_v27  ;;  %v5950_v25 = vld [vmem:[#allocation13 + $0x2e0] sm:$0xff]  ;;  %v5953_v29 = vld [vmem:[#allocation13 + $0x2f0] sm:$0xff] }
 0x434   : > { %2563 = vmatpush1.msra.mxu0 %v5938_v28  ;;  %2634 = vmatpush1.msra.mxu1 %v5941_v30  ;;  %7251 = vst [vmem:[#allocation103_spill] sm:$0xff] %v5950_v25  ;;  %7252 = vst [vmem:[#allocation104_spill] sm:$0xff] %v5953_v29  ;;  %v5956_v28 = vld [vmem:[#allocation13 + $0x2c8] sm:$0xff]  ;;  %v5959_v30 = vld [vmem:[#allocation13 + $0x2d8] sm:$0xff] }
 0x435   : > { %2564 = vmatprep.subr.mxu0 %v5944_v24  ;;  %2635 = vmatprep.subr.mxu1 %v5947_v27  ;;  %7253 = vst [vmem:[#allocation105_spill] sm:$0xff] %v5956_v28  ;;  %7254 = vst [vmem:[#allocation106_spill] sm:$0xff] %v5959_v30  ;;  %v5962_v24 = vld [vmem:[#allocation13 + $0x2c0] sm:$0xff]  ;;  %v5965_v27 = vld [vmem:[#allocation13 + $0x2d0] sm:$0xff] }
 0x436   : > { %2565 = vmatpush1.msra.mxu0 %v5950_v25  ;;  %2636 = vmatpush1.msra.mxu1 %v5953_v29  ;;  %7255 = vst [vmem:[#allocation107_spill] sm:$0xff] %v5962_v24  ;;  %7256 = vst [vmem:[#allocation108_spill] sm:$0xff] %v5965_v27  ;;  %v5968_v25 = vld [vmem:[#allocation13 + $0x2a8] sm:$0xff]  ;;  %v5971_v29 = vld [vmem:[#allocation13 + $0x2b8] sm:$0xff] }
 0x437   : > { %2566 = vmatprep.subr.mxu0 %v5956_v28  ;;  %2637 = vmatprep.subr.mxu1 %v5959_v30  ;;  %7257 = vst [vmem:[#allocation109_spill] sm:$0xff] %v5968_v25  ;;  %7258 = vst [vmem:[#allocation110_spill] sm:$0xff] %v5971_v29  ;;  %v5974_v28 = vld [vmem:[#allocation13 + $0x2a0] sm:$0xff]  ;;  %v5977_v30 = vld [vmem:[#allocation13 + $0x2b0] sm:$0xff] }
 0x438   : > { %2567 = vmatpush1.msra.mxu0 %v5962_v24  ;;  %2638 = vmatpush1.msra.mxu1 %v5965_v27  ;;  %7259 = vst [vmem:[#allocation111_spill] sm:$0xff] %v5974_v28  ;;  %7260 = vst [vmem:[#allocation112_spill] sm:$0xff] %v5977_v30  ;;  %v5980_v24 = vld [vmem:[#allocation13 + $0x288] sm:$0xff]  ;;  %v5983_v27 = vld [vmem:[#allocation13 + $0x298] sm:$0xff] }
 0x439   : > { %2568 = vmatprep.subr.mxu0 %v5968_v25  ;;  %2639 = vmatprep.subr.mxu1 %v5971_v29  ;;  %7261 = vst [vmem:[#allocation113_spill] sm:$0xff] %v5980_v24  ;;  %7262 = vst [vmem:[#allocation114_spill] sm:$0xff] %v5983_v27  ;;  %v5986_v25 = vld [vmem:[#allocation13 + $0x280] sm:$0xff]  ;;  %v5989_v29 = vld [vmem:[#allocation13 + $0x290] sm:$0xff] }
 0x43a   : > { %2569 = vmatpush1.msra.mxu0 %v5974_v28  ;;  %2640 = vmatpush1.msra.mxu1 %v5977_v30  ;;  %7263 = vst [vmem:[#allocation115_spill] sm:$0xff] %v5986_v25  ;;  %7264 = vst [vmem:[#allocation116_spill] sm:$0xff] %v5989_v29  ;;  %v5992_v28 = vld [vmem:[#allocation13 + $0x268] sm:$0xff]  ;;  %v5995_v30 = vld [vmem:[#allocation13 + $0x278] sm:$0xff] }
 0x43b   : > { %2570 = vmatprep.subr.mxu0 %v5980_v24  ;;  %2641 = vmatprep.subr.mxu1 %v5983_v27  ;;  %7265 = vst [vmem:[#allocation117_spill] sm:$0xff] %v5992_v28  ;;  %7266 = vst [vmem:[#allocation118_spill] sm:$0xff] %v5995_v30  ;;  %v5998_v24 = vld [vmem:[#allocation13 + $0x260] sm:$0xff]  ;;  %v6001_v27 = vld [vmem:[#allocation13 + $0x270] sm:$0xff] }
 0x43c   : > { %2571 = vmatpush1.msra.mxu0 %v5986_v25  ;;  %2642 = vmatpush1.msra.mxu1 %v5989_v29  ;;  %7267 = vst [vmem:[#allocation119_spill] sm:$0xff] %v5998_v24  ;;  %7268 = vst [vmem:[#allocation53_spill] sm:$0xff] %v6001_v27  ;;  %v6004_v25 = vld [vmem:[#allocation13 + $0x248] sm:$0xff]  ;;  %v6007_v29 = vld [vmem:[#allocation13 + $0x258] sm:$0xff] }
 0x43d   : > { %2572 = vmatprep.subr.mxu0 %v5992_v28  ;;  %2643 = vmatprep.subr.mxu1 %v5995_v30  ;;  %7269 = vst [vmem:[#allocation56_spill] sm:$0xff] %v6004_v25  ;;  %7270 = vst [vmem:[#allocation58_spill] sm:$0xff] %v6007_v29  ;;  %v6010_v28 = vld [vmem:[#allocation13 + $0x240] sm:$0xff]  ;;  %v6013_v30 = vld [vmem:[#allocation13 + $0x250] sm:$0xff] }
 0x43e   : > { %2573 = vmatpush1.msra.mxu0 %v5998_v24  ;;  %2644 = vmatpush1.msra.mxu1 %v6001_v27  ;;  %7271 = vst [vmem:[#allocation57_spill] sm:$0xff] %v6010_v28  ;;  %7272 = vst [vmem:[#allocation59_spill] sm:$0xff] %v6013_v30  ;;  %v6016_v24 = vld [vmem:[#allocation13 + $0x228] sm:$0xff]  ;;  %v6019_v27 = vld [vmem:[#allocation13 + $0x238] sm:$0xff] }
 0x43f   : > { %2574 = vmatprep.subr.mxu0 %v6004_v25  ;;  %2645 = vmatprep.subr.mxu1 %v6007_v29  ;;  %7273 = vst [vmem:[#allocation120_spill] sm:$0xff] %v6016_v24  ;;  %7274 = vst [vmem:[#allocation121_spill] sm:$0xff] %v6019_v27  ;;  %v6022_v25 = vld [vmem:[#allocation13 + $0x220] sm:$0xff]  ;;  %v6025_v29 = vld [vmem:[#allocation13 + $0x230] sm:$0xff] }
 0x440   : > { %2575 = vmatpush1.msra.mxu0 %v6010_v28  ;;  %2646 = vmatpush1.msra.mxu1 %v6013_v30  ;;  %7275 = vst [vmem:[#allocation122_spill] sm:$0xff] %v6022_v25  ;;  %7276 = vst [vmem:[#allocation123_spill] sm:$0xff] %v6025_v29  ;;  %v6028_v28 = vld [vmem:[#allocation13 + $0x208] sm:$0xff]  ;;  %v6031_v30 = vld [vmem:[#allocation13 + $0x218] sm:$0xff] }
 0x441   : > { %2576 = vmatprep.subr.mxu0 %v6016_v24  ;;  %2647 = vmatprep.subr.mxu1 %v6019_v27  ;;  %7277 = vst [vmem:[#allocation124_spill] sm:$0xff] %v6028_v28  ;;  %7278 = vst [vmem:[#allocation125_spill] sm:$0xff] %v6031_v30  ;;  %v6034_v24 = vld [vmem:[#allocation13 + $0x200] sm:$0xff]  ;;  %v6037_v27 = vld [vmem:[#allocation13 + $0x210] sm:$0xff] }
 0x442   : > { %2577 = vmatpush1.msra.mxu0 %v6022_v25  ;;  %2648 = vmatpush1.msra.mxu1 %v6025_v29  ;;  %7279 = vst [vmem:[#allocation126_spill] sm:$0xff] %v6034_v24  ;;  %7280 = vst [vmem:[#allocation127_spill] sm:$0xff] %v6037_v27  ;;  %v6042_v29 = vld [vmem:[#allocation12 + $0x1e8] sm:$0xff] }
 0x443   : > { %2578 = vmatprep.subr.mxu0 %v6028_v28  ;;  %2649 = vmatprep.subr.mxu1 %v6031_v30  ;;  %7281 = vst [vmem:[#allocation128_spill] sm:$0xff] %v6042_v29  ;;  %v6045_v28 = vld [vmem:[#allocation12 + $0x1f8] sm:$0xff] }
 0x444   : > { %2579 = vmatpush1.msra.mxu0 %v6034_v24  ;;  %2650 = vmatpush1.msra.mxu1 %v6037_v27  ;;  %7282 = vst [vmem:[#allocation129_spill] sm:$0xff] %v6045_v28 }
 0x445   : > { %2612 = vmatprep.mubr.f32.mxu0 %v6895_v5  ;;  %2683 = vmatprep.mubr.f32.mxu1 %v6895_v5 }
 0x446   : > { %2690 = vmatprep.subr.mxu0 %v6042_v29  ;;  %2761 = vmatprep.subr.mxu1 %v6045_v28 }
 0x4a1   : > { %v2092_v30 = vpop.f32.mrf.mxu0  ;;  %v2163_v25 = vpop.f32.mrf.mxu1 }
 0x4a3   : > { %v2094_v26 = vpop.f32.mrf.mxu0  ;;  %v2165_v24 = vpop.f32.mrf.mxu1 }
 0x4c2   : > { %v2234_v23 = vpop.f32.mrf.mxu0  ;;  %v2305_v22 = vpop.f32.mrf.mxu1 }
 0x4c3   : > { %v2235_v11 = vadd.f32 %v2234_v23, %v2092_v30  ;;  %v6048_v27 = vadd.f32 %v2305_v22, %v2163_v25  ;;  %v7285_v30 = vld [vmem:[#allocation61_spill] sm:$0xff] }
 0x4c4   : > { %v2236_v10 = vpop.f32.mrf.mxu0  ;;  %v2307_v21 = vpop.f32.mrf.mxu1 }
 0x4c5   : > { %v2310_v20 = vadd.f32 %v2235_v11, %v5536_v44  ;;  %v2237_v19 = vadd.f32 %v2236_v10, %v2094_v26  ;;  %v2308_v18 = vadd.f32 %v2307_v21, %v2165_v24  ;;  %v7283_v10 = vld [vmem:[#allocation60_spill] sm:$0xff]  ;;  %v7284_v24 = vld [vmem:[#allocation62_spill] sm:$0xff] }
 0x4c7   : > { %v2311_v29 = vadd.f32 %v2237_v19, %v5542_v49  ;;  %v2313_v12 = vadd.f32 %v2308_v18, %v5547_v52  ;;  %v2314_v28 = vand.u32 2147483647, %v2310_v20  ;;  %v7286_v52 = vld [vmem:[#allocation63_spill] sm:$0xff] }
 0x4c9   : > { %v2315_v15 = vsel %vm1460_vm1, %v2314_v28, 0.0  ;;  %v2327_v55 = vand.u32 2147483647, %v2311_v29  ;;  %v2340_v2 = vand.u32 2147483647, %v2313_v12 }
 0x4ca   : > { %2316 = vadd.xlane.f32.xlu1 %v2315_v15 }
 0x4cb   : > { %v2328_v23 = vsel %vm1460_vm1, %v2327_v55, 0.0  ;;  %v2341_v22 = vsel %vm1460_vm1, %v2340_v2, 0.0 }
 0x4cc   : > { %2329 = vadd.xlane.f32.xlu0 %v2328_v23 }
 0x4ce   : > { %2342 = vadd.xlane.f32.xlu1 %v2341_v22 }
 0x4e4   : > { %v2424_v25 = vpop.f32.mrf.mxu0  ;;  %v2495_v11 = vpop.f32.mrf.mxu1 }
 0x4e5   : > { %v2500_v21 = vadd.f32 %v2424_v25, %v7283_v10  ;;  %v6058_v19 = vadd.f32 %v2495_v11, %v7284_v24 }
 0x4e6   : > { %v2426_v18 = vpop.f32.mrf.mxu0  ;;  %v2497_v26 = vpop.f32.mrf.mxu1 }
 0x4e7   : > { %v2501_v28 = vadd.f32 %v2426_v18, %v7285_v30  ;;  %v2503_v49 = vadd.f32 %v2497_v26, %v7286_v52  ;;  %v2504_v15 = vand.u32 2147483647, %v2500_v21 }
 0x4e9   : > { %v2505_v55 = vsel %vm1460_vm1, %v2504_v15, 0.0  ;;  %v2517_v23 = vand.u32 2147483647, %v2501_v28  ;;  %v2530_v44 = vand.u32 2147483647, %v2503_v49 }
 0x4ea   : > { %2506 = vadd.xlane.f32.xlu0 %v2505_v55 }
 0x4eb   : > { %v2518_v2 = vsel %vm1460_vm1, %v2517_v23, 0.0  ;;  %v2531_v22 = vsel %vm1460_vm1, %v2530_v44, 0.0 }
 0x4ec   : > { %2519 = vadd.xlane.f32.xlu1 %v2518_v2 }
 0x4ee   : > { %2532 = vadd.xlane.f32.xlu0 %v2531_v22 }
 0x553   : > { %v2317_v25 = vpop.xlane.xlu1 %2316 }
 0x554   : > { %v2318_v11 = vmax.f32 %v2317_v25, 1e-12 }
 0x555   : > { %v2330_v10 = vpop.xlane.xlu0 %2329 }
 0x556   : > { %3919 = vrcp.f32 %v2318_v11  ;;  %v2331_v24 = vmax.f32 %v2330_v10, 1e-12 }
 0x557   : > { %v2343_v18 = vpop.xlane.xlu1 %2342 }
 0x558   : > { %3921 = vrcp.f32 %v2331_v24  ;;  %v2344_v52 = vmax.f32 %v2343_v18, 1e-12 }
 0x55a   : > { %3923 = vrcp.f32 %v2344_v52 }
 0x563   : > { %v3920_v26 = vpop.eup %3919 }
 0x564   : > { %v2320_v30 = vmul.f32 %v3920_v26, %v2310_v20 }
 0x565   : > { %v3922_v15 = vpop.eup %3921 }
 0x566   : > { %v3713_v59 = vmul.f32 -1.442695, %v2320_v30  ;;  %v2333_v55 = vmul.f32 %v3922_v15, %v2311_v29 }
 0x567   : > { %v3924_v46 = vpop.eup %3923 }
 0x568   : > { %3925 = vpow2.f32 %v3713_v59  ;;  %v3714_v23 = vmul.f32 -1.442695, %v2333_v55  ;;  %v2346_v2 = vmul.f32 %v3924_v46, %v2313_v12  ;;  %v2312_v55 = vadd.f32 %v6048_v27, %v5570_v9  ;;  %v6071_v27 = vld [vmem:[#allocation12 + $0x1e0] sm:$0xff] }
 0x56a   : > { %3927 = vpow2.f32 %v3714_v23  ;;  %v3715_v44 = vmul.f32 -1.442695, %v2346_v2 }
 0x56c   : > { %3929 = vpow2.f32 %v3715_v44 }
 0x573   : > { %v2507_v22 = vpop.xlane.xlu0 %2506 }
 0x574   : > { %v2508_v25 = vmax.f32 %v2507_v22, 1e-12 }
 0x575   : > { %v3926_v11 = vpop.eup %3925  ;;  %v2520_v10 = vpop.xlane.xlu1 %2519 }
 0x576   : > { %v2324_v39 = vadd.f32 1.0, %v3926_v11  ;;  %3931 = vrcp.f32 %v2508_v25  ;;  %v2521_v24 = vmax.f32 %v2520_v10, 1e-12 }
 0x577   : > { %v3928_v18 = vpop.eup %3927  ;;  %v2533_v52 = vpop.xlane.xlu0 %2532 }
 0x578   : > { %3933 = vrcp.f32 %v2324_v39  ;;  %v2337_v20 = vadd.f32 1.0, %v3928_v18  ;;  %v2534_v26 = vmax.f32 %v2533_v52, 1e-12 }
 0x579   : > { %v3930_v29 = vpop.eup %3929  ;;  %3935 = vrcp.f32 %v2521_v24 }
 0x57a   : > { %3937 = vrcp.f32 %v2337_v20  ;;  %v2350_v46 = vadd.f32 1.0, %v3930_v29  ;;  %v6086_v29 = vld [vmem:[#allocation12 + $0x1d0] sm:$0xff] }
 0x57b   : > { %3939 = vrcp.f32 %v2534_v26  ;;  %v6083_v26 = vld [vmem:[#allocation12 + $0x1c0] sm:$0xff] }
 0x57c   : > { %3941 = vrcp.f32 %v2350_v46  ;;  %v6089_v46 = vld [vmem:[#allocation12 + $0x1a8] sm:$0xff] }
 0x583   : > { %v3932_v59 = vpop.eup %3931 }
 0x584   : > { %v2510_v12 = vmul.f32 %v3932_v59, %v2500_v21  ;;  %v6092_v59 = vld [vmem:[#allocation12 + $0x1b8] sm:$0xff] }
 0x585   : > { %v3934_v30 = vpop.eup %3933 }
 0x586   : > { %v3936_v15 = vpop.eup %3935  ;;  %v3716_v23 = vmul.f32 -1.442695, %v2510_v12  ;;  %v2354_v25 = vmul.f32 %v3934_v30, %v2312_v55  ;;  %v6095_v30 = vld [vmem:[#allocation12 + $0x1a0] sm:$0xff] }
 0x587   : > { %v3938_v2 = vpop.eup %3937  ;;  %v2523_v44 = vmul.f32 %v3936_v15, %v2501_v28  ;;  %v6074_v28 = vld [vmem:[#allocation12 + $0x1f0] sm:$0xff] }
 0x588   : > { %v3940_v22 = vpop.eup %3939  ;;  %3943 = vpow2.f32 %v3716_v23  ;;  %v2353_v39 = vmul.f32 %v3938_v2, %v5576_v63  ;;  %v6080_v63 = vld [vmem:[#allocation12 + $0x1d8] sm:$0xff]  ;;  %v6098_v15 = vld [vmem:[#allocation12 + $0x1b0] sm:$0xff]  ;;  %v6101_v23 = vld [vmem:[#allocation12 + $0x188] sm:$0xff] }
 0x589   : > { %v3717_v11 = vmul.f32 -1.442695, %v2523_v44  ;;  %v2536_v10 = vmul.f32 %v3940_v22, %v2503_v49  ;;  %v3942_v52 = vpop.eup %3941  ;;  %v6077_v49 = vld [vmem:[#allocation12 + $0x1c8] sm:$0xff]  ;;  %v6104_v2 = vld [vmem:[#allocation12 + $0x198] sm:$0xff]  ;;  %v6107_v44 = vld [vmem:[#allocation12 + $0x180] sm:$0xff] }
 0x58a   : > { %v6068_v24 = vadd.f32 %v2354_v25, %v2353_v39  ;;  %v6110_v22 = vld [vmem:[#allocation12 + $0x190] sm:$0xff]  ;;  %v6113_v25 = vld [vmem:[#allocation12 + $0x168] sm:$0xff] }
 0x58b   : > { %3945 = vpow2.f32 %v3717_v11  ;;  %v3718_v18 = vmul.f32 -1.442695, %v2536_v10  ;;  %v6116_v11 = vld [vmem:[#allocation12 + $0x178] sm:$0xff] }
 0x58c   : > { %v2356_v21 = vmax.f32 %v6068_v24, 0.0  ;;  %7287 = vst [vmem:[#allocation130_spill] sm:$0xff] %v6116_v11 }
 0x58d   : > { %3947 = vpow2.f32 %v3718_v18  ;;  %v6119_v18 = vld [vmem:[#allocation12 + $0x160] sm:$0xff] }
 0x58e   : > { %v2357_v20 = vmul.f32 %v3942_v52, %v2356_v21  ;;  %7288 = vst [vmem:[#allocation131_spill] sm:$0xff] %v6119_v18  ;;  %v6122_v21 = vld [vmem:[#allocation12 + $0x170] sm:$0xff] }
 0x58f   : > { %7289 = vst [vmem:[#allocation132_spill] sm:$0xff] %v6122_v21 }
 0x590   : > { %2613 = vmatmul.mubr.f32.vlgmr.msra.gmra.mxu0 %v2357_v20  ;;  %2684 = vmatmul.mubr.f32.vlgmr.msra.gmra.mxu1 %v2357_v20  ;;  %v6125_v20 = vld [vmem:[#allocation12 + $0x148] sm:$0xff] }
 0x591   : > { %2691 = vmatpush1.msra.mxu0 %v6071_v27  ;;  %2762 = vmatpush1.msra.mxu1 %v6074_v28  ;;  %7290 = vst [vmem:[#allocation133_spill] sm:$0xff] %v6125_v20 }
 0x592   : > { %2692 = vmatprep.subr.mxu0 %v6077_v49  ;;  %2763 = vmatprep.subr.mxu1 %v6080_v63 }
 0x593   : > { %2693 = vmatpush1.msra.mxu0 %v6083_v26  ;;  %2764 = vmatpush1.msra.mxu1 %v6086_v29 }
 0x594   : > { %2694 = vmatprep.subr.mxu0 %v6089_v46  ;;  %2765 = vmatprep.subr.mxu1 %v6092_v59 }
 0x595   : > { %v3944_v12 = vpop.eup %3943  ;;  %2695 = vmatpush1.msra.mxu0 %v6095_v30  ;;  %2766 = vmatpush1.msra.mxu1 %v6098_v15 }
 0x596   : > { %v2514_v55 = vadd.f32 1.0, %v3944_v12  ;;  %2696 = vmatprep.subr.mxu0 %v6101_v23  ;;  %2767 = vmatprep.subr.mxu1 %v6104_v2  ;;  %v6128_v12 = vld [vmem:[#allocation12 + $0x158] sm:$0xff] }
 0x597   : > { %2697 = vmatpush1.msra.mxu0 %v6107_v44  ;;  %2768 = vmatpush1.msra.mxu1 %v6110_v22  ;;  %7291 = vst [vmem:[#allocation134_spill] sm:$0xff] %v6128_v12 }
 0x598   : > { %v3946_v39 = vpop.eup %3945  ;;  %2698 = vmatprep.subr.mxu0 %v6113_v25  ;;  %2769 = vmatprep.subr.mxu1 %v6116_v11  ;;  %3949 = vrcp.f32 %v2514_v55  ;;  %v6131_v55 = vld [vmem:[#allocation12 + $0x140] sm:$0xff] }
 0x599   : > { %v2527_v10 = vadd.f32 1.0, %v3946_v39  ;;  %2699 = vmatpush1.msra.mxu0 %v6119_v18  ;;  %2770 = vmatpush1.msra.mxu1 %v6122_v21  ;;  %7292 = vst [vmem:[#allocation135_spill] sm:$0xff] %v6131_v55  ;;  %v6134_v39 = vld [vmem:[#allocation12 + $0x150] sm:$0xff]  ;;  %v6137_v18 = vld [vmem:[#allocation12 + $0x128] sm:$0xff]  ;;  %v6140_v21 = vld [vmem:[#allocation12 + $0x138] sm:$0xff] }
 0x59a   : > { %v3948_v52 = vpop.eup %3947  ;;  %2700 = vmatprep.subr.mxu0 %v6125_v20  ;;  %2771 = vmatprep.subr.mxu1 %v6128_v12  ;;  %7293 = vst [vmem:[#allocation136_spill] sm:$0xff] %v6134_v39  ;;  %7294 = vst [vmem:[#allocation137_spill] sm:$0xff] %v6137_v18  ;;  %v6143_v11 = vld [vmem:[#allocation12 + $0x120] sm:$0xff]  ;;  %v6223_v12 = vld [vmem:[#allocation12 + $0x48] sm:$0xff] }
 0x59b   : > { %3951 = vrcp.f32 %v2527_v10  ;;  %2701 = vmatpush1.msra.mxu0 %v6131_v55  ;;  %2772 = vmatpush1.msra.mxu1 %v6134_v39  ;;  %7295 = vst [vmem:[#allocation138_spill] sm:$0xff] %v6140_v21  ;;  %v2540_v20 = vadd.f32 1.0, %v3948_v52  ;;  %7296 = vst [vmem:[#allocation139_spill] sm:$0xff] %v6143_v11  ;;  %v6146_v10 = vld [vmem:[#allocation12 + $0x130] sm:$0xff]  ;;  %v6149_v55 = vld [vmem:[#allocation12 + $0x108] sm:$0xff] }
 0x59c   : > { %2702 = vmatprep.subr.mxu0 %v6137_v18  ;;  %2773 = vmatprep.subr.mxu1 %v6140_v21  ;;  %7297 = vst [vmem:[#allocation140_spill] sm:$0xff] %v6146_v10  ;;  %7298 = vst [vmem:[#allocation141_spill] sm:$0xff] %v6149_v55  ;;  %v6152_v39 = vld [vmem:[#allocation12 + $0x118] sm:$0xff]  ;;  %v6155_v18 = vld [vmem:[#allocation12 + $0x100] sm:$0xff] }
 0x59d   : > { %2703 = vmatpush1.msra.mxu0 %v6143_v11  ;;  %2774 = vmatpush1.msra.mxu1 %v6146_v10  ;;  %7299 = vst [vmem:[#allocation142_spill] sm:$0xff] %v6152_v39  ;;  %7300 = vst [vmem:[#allocation143_spill] sm:$0xff] %v6155_v18  ;;  %v6158_v52 = vld [vmem:[#allocation12 + $0x110] sm:$0xff]  ;;  %v6161_v11 = vld [vmem:[#allocation12 + $0xe8] sm:$0xff]  ;;  %3953 = vrcp.f32 %v2540_v20 }
 0x59e   : > { %2704 = vmatprep.subr.mxu0 %v6149_v55  ;;  %2775 = vmatprep.subr.mxu1 %v6152_v39  ;;  %7301 = vst [vmem:[#allocation144_spill] sm:$0xff] %v6158_v52  ;;  %7302 = vst [vmem:[#allocation145_spill] sm:$0xff] %v6161_v11  ;;  %v6164_v10 = vld [vmem:[#allocation12 + $0xf8] sm:$0xff]  ;;  %v6167_v55 = vld [vmem:[#allocation12 + $0xe0] sm:$0xff] }
 0x59f   : > { %2705 = vmatpush1.msra.mxu0 %v6155_v18  ;;  %2776 = vmatpush1.msra.mxu1 %v6158_v52  ;;  %7303 = vst [vmem:[#allocation146_spill] sm:$0xff] %v6164_v10  ;;  %7304 = vst [vmem:[#allocation147_spill] sm:$0xff] %v6167_v55  ;;  %v6170_v39 = vld [vmem:[#allocation12 + $0xf0] sm:$0xff]  ;;  %v6173_v18 = vld [vmem:[#allocation12 + $0xc8] sm:$0xff] }
 0x5a0   : > { %2706 = vmatprep.subr.mxu0 %v6161_v11  ;;  %2777 = vmatprep.subr.mxu1 %v6164_v10  ;;  %7305 = vst [vmem:[#allocation148_spill] sm:$0xff] %v6170_v39  ;;  %7306 = vst [vmem:[#allocation149_spill] sm:$0xff] %v6173_v18  ;;  %v6176_v52 = vld [vmem:[#allocation12 + $0xd8] sm:$0xff]  ;;  %v6179_v11 = vld [vmem:[#allocation12 + $0xc0] sm:$0xff] }
 0x5a1   : > { %2707 = vmatpush1.msra.mxu0 %v6167_v55  ;;  %2778 = vmatpush1.msra.mxu1 %v6170_v39  ;;  %7307 = vst [vmem:[#allocation150_spill] sm:$0xff] %v6176_v52  ;;  %7308 = vst [vmem:[#allocation151_spill] sm:$0xff] %v6179_v11  ;;  %v6182_v20 = vld [vmem:[#allocation12 + $0xd0] sm:$0xff]  ;;  %v6185_v55 = vld [vmem:[#allocation12 + $0xa8] sm:$0xff] }
 0x5a2   : > { %2708 = vmatprep.subr.mxu0 %v6173_v18  ;;  %2779 = vmatprep.subr.mxu1 %v6176_v52  ;;  %7309 = vst [vmem:[#allocation152_spill] sm:$0xff] %v6182_v20  ;;  %7310 = vst [vmem:[#allocation153_spill] sm:$0xff] %v6185_v55  ;;  %v6188_v39 = vld [vmem:[#allocation12 + $0xb8] sm:$0xff]  ;;  %v6191_v18 = vld [vmem:[#allocation12 + $0xa0] sm:$0xff] }
 0x5a3   : > { %2709 = vmatpush1.msra.mxu0 %v6179_v11  ;;  %2780 = vmatpush1.msra.mxu1 %v6182_v20  ;;  %7311 = vst [vmem:[#allocation154_spill] sm:$0xff] %v6188_v39  ;;  %7312 = vst [vmem:[#allocation155_spill] sm:$0xff] %v6191_v18  ;;  %v6194_v52 = vld [vmem:[#allocation12 + $0xb0] sm:$0xff]  ;;  %v6197_v10 = vld [vmem:[#allocation12 + $0x88] sm:$0xff] }
 0x5a4   : > { %2710 = vmatprep.subr.mxu0 %v6185_v55  ;;  %2781 = vmatprep.subr.mxu1 %v6188_v39  ;;  %7313 = vst [vmem:[#allocation156_spill] sm:$0xff] %v6194_v52  ;;  %7314 = vst [vmem:[#allocation157_spill] sm:$0xff] %v6197_v10  ;;  %v6200_v20 = vld [vmem:[#allocation12 + $0x98] sm:$0xff]  ;;  %v6203_v55 = vld [vmem:[#allocation12 + $0x80] sm:$0xff] }
 0x5a5   : > { %2711 = vmatpush1.msra.mxu0 %v6191_v18  ;;  %2782 = vmatpush1.msra.mxu1 %v6194_v52  ;;  %v3950_v11 = vpop.eup %3949  ;;  %7315 = vst [vmem:[#allocation158_spill] sm:$0xff] %v6200_v20  ;;  %7316 = vst [vmem:[#allocation159_spill] sm:$0xff] %v6203_v55  ;;  %v6206_v39 = vld [vmem:[#allocation12 + $0x90] sm:$0xff]  ;;  %v6209_v21 = vld [vmem:[#allocation12 + $0x68] sm:$0xff] }
 0x5a6   : > { %2712 = vmatprep.subr.mxu0 %v6197_v10  ;;  %2783 = vmatprep.subr.mxu1 %v6200_v20  ;;  %7317 = vst [vmem:[#allocation160_spill] sm:$0xff] %v6206_v39  ;;  %7318 = vst [vmem:[#allocation161_spill] sm:$0xff] %v6209_v21  ;;  %v6212_v52 = vld [vmem:[#allocation12 + $0x78] sm:$0xff]  ;;  %v6215_v10 = vld [vmem:[#allocation12 + $0x60] sm:$0xff] }
 0x5a7   : > { %2713 = vmatpush1.msra.mxu0 %v6203_v55  ;;  %2784 = vmatpush1.msra.mxu1 %v6206_v39  ;;  %7319 = vst [vmem:[#allocation162_spill] sm:$0xff] %v6212_v52  ;;  %7320 = vst [vmem:[#allocation163_spill] sm:$0xff] %v6215_v10  ;;  %v6218_v20 = vld [vmem:[#allocation12 + $0x70] sm:$0xff]  ;;  %v2544_v39 = vmul.f32 %v3950_v11, %v6058_v19  ;;  %v6240_v19 = vld [vmem:[#allocation12 + $0x38] sm:$0xff] }
 0x5a8   : > { %v3952_v18 = vpop.eup %3951  ;;  %2714 = vmatprep.subr.mxu0 %v6209_v21  ;;  %2785 = vmatprep.subr.mxu1 %v6212_v52  ;;  %7321 = vst [vmem:[#allocation164_spill] sm:$0xff] %v6218_v20  ;;  %v6226_v21 = vld [vmem:[#allocation12 + $0x58] sm:$0xff]  ;;  %v6229_v52 = vld [vmem:[#allocation12 + $0x40] sm:$0xff]  ;;  %7324 = vst [vmem:[#allocation167_spill] sm:$0xff] %v6240_v19 }
 0x5a9   : > { %2715 = vmatpush1.msra.mxu0 %v6215_v10  ;;  %2786 = vmatpush1.msra.mxu1 %v6218_v20  ;;  %v2543_v55 = vmul.f32 %v3952_v18, %v5631_v17  ;;  %v6232_v10 = vld [vmem:[#allocation12 + $0x50] sm:$0xff]  ;;  %v6237_v17 = vld [vmem:[#allocation12 + $0x28] sm:$0xff]  ;;  %v6243_v11 = vld [vmem:[#allocation12 + $0x20] sm:$0xff] }
 0x5aa   : > { %2716 = vmatprep.subr.mxu0 %v6223_v12  ;;  %2787 = vmatprep.subr.mxu1 %v6226_v21  ;;  %7322 = vst [vmem:[#allocation165_spill] sm:$0xff] %v6232_v10  ;;  %7323 = vst [vmem:[#allocation166_spill] sm:$0xff] %v6237_v17  ;;  %v6246_v18 = vld [vmem:[#allocation12 + $0x30] sm:$0xff] }
 0x5ab   : > { %2717 = vmatpush1.msra.mxu0 %v6229_v52  ;;  %2788 = vmatpush1.msra.mxu1 %v6232_v10  ;;  %v6235_v20 = vadd.f32 %v2544_v39, %v2543_v55  ;;  %7325 = vst [vmem:[#allocation168_spill] sm:$0xff] %v6243_v11  ;;  %7326 = vst [vmem:[#allocation169_spill] sm:$0xff] %v6246_v18  ;;  %v3954_v55 = vpop.eup %3953  ;;  %v6250_v39 = vld [vmem:[#allocation12 + $0x8] sm:$0xff] }
 0x5ac   : > { %2718 = vmatprep.subr.mxu0 %v6237_v17  ;;  %2789 = vmatprep.subr.mxu1 %v6240_v19  ;;  %v6253_v17 = vld [vmem:[#allocation12 + $0x18] sm:$0xff]  ;;  %v6256_v19 = vld [vmem:[#allocation12] sm:$0xff] }
 0x5ad   : > { %2719 = vmatpush1.msra.mxu0 %v6243_v11  ;;  %2790 = vmatpush1.msra.mxu1 %v6246_v18  ;;  %v2546_v10 = vmax.f32 %v6235_v20, 0.0  ;;  %v6262_v18 = vld [vmem:[#allocation12 + $0x10] sm:$0xff] }
 0x5ae   : > { %2720 = vmatprep.subr.mxu0 %v6250_v39  ;;  %2791 = vmatprep.subr.mxu1 %v6253_v17 }
 0x5af   : > { %2721 = vmatpush1.msra.mxu0 %v6256_v19  ;;  %2754 = vmatprep.mubr.f32.mxu0 %v6895_v5  ;;  %v6260_v11 = vmul.f32 %v3954_v55, %v2546_v10  ;;  %v7362_v10 = vld [vmem:[#allocation75_spill] sm:$0xff]  ;;  %v7363_v55 = vld [vmem:[#allocation76_spill] sm:$0xff] }
 0x5b0   : > { %2792 = vmatpush1.msra.mxu1 %v6262_v18  ;;  %2825 = vmatprep.mubr.f32.mxu1 %v6895_v5 }
 0x5b1   : > { %2755 = vmatmul.mubr.f32.vlgmr.msra.gmra.mxu0 %v6260_v11  ;;  %2826 = vmatmul.mubr.f32.vlgmr.msra.gmra.mxu1 %v6260_v11 }
 0x5b2   : > { %2880 = vmatprep.subr.mxu0 %v5652_v31  ;;  %2951 = vmatprep.subr.mxu1 %v5655_v32  ;;  %v7327_v31 = vld [vmem:[#allocation25_spill] sm:$0xff]  ;;  %v7328_v32 = vld [vmem:[#allocation26_spill] sm:$0xff] }
 0x5b3   : > { %2881 = vmatpush1.msra.mxu0 %v5658_v33  ;;  %2952 = vmatpush1.msra.mxu1 %v5661_v34  ;;  %v7329_v33 = vld [vmem:[#allocation27_spill] sm:$0xff]  ;;  %v7330_v34 = vld [vmem:[#allocation28_spill] sm:$0xff] }
 0x5b4   : > { %2882 = vmatprep.subr.mxu0 %v5664_v35  ;;  %2953 = vmatprep.subr.mxu1 %v5667_v36  ;;  %v7331_v35 = vld [vmem:[#allocation29_spill] sm:$0xff]  ;;  %v7332_v36 = vld [vmem:[#allocation30_spill] sm:$0xff] }
 0x5b5   : > { %2883 = vmatpush1.msra.mxu0 %v5670_v37  ;;  %2954 = vmatpush1.msra.mxu1 %v5673_v38  ;;  %v7333_v37 = vld [vmem:[#allocation31_spill] sm:$0xff]  ;;  %v7334_v38 = vld [vmem:[#allocation32_spill] sm:$0xff] }
 0x5b6   : > { %2884 = vmatprep.subr.mxu0 %v5676_v41  ;;  %2955 = vmatprep.subr.mxu1 %v5679_v42  ;;  %v7335_v41 = vld [vmem:[#allocation33_spill] sm:$0xff]  ;;  %v7336_v42 = vld [vmem:[#allocation34_spill] sm:$0xff] }
 0x5b7   : > { %2885 = vmatpush1.msra.mxu0 %v5682_v43  ;;  %2956 = vmatpush1.msra.mxu1 %v5685_v45  ;;  %v7337_v43 = vld [vmem:[#allocation35_spill] sm:$0xff]  ;;  %v7338_v45 = vld [vmem:[#allocation36_spill] sm:$0xff] }
 0x5b8   : > { %2886 = vmatprep.subr.mxu0 %v5688_v47  ;;  %2957 = vmatprep.subr.mxu1 %v5691_v48  ;;  %v7339_v47 = vld [vmem:[#allocation37_spill] sm:$0xff]  ;;  %v7340_v48 = vld [vmem:[#allocation38_spill] sm:$0xff] }
 0x5b9   : > { %2887 = vmatpush1.msra.mxu0 %v5694_v51  ;;  %2958 = vmatpush1.msra.mxu1 %v5697_v53  ;;  %v7341_v51 = vld [vmem:[#allocation39_spill] sm:$0xff]  ;;  %v7342_v53 = vld [vmem:[#allocation40_spill] sm:$0xff] }
 0x5ba   : > { %2888 = vmatprep.subr.mxu0 %v5700_v62  ;;  %2959 = vmatprep.subr.mxu1 %v5703_v3  ;;  %v7343_v62 = vld [vmem:[#allocation41_spill] sm:$0xff]  ;;  %v7344_v3 = vld [vmem:[#allocation42_spill] sm:$0xff] }
 0x5bb   : > { %2889 = vmatpush1.msra.mxu0 %v5706_v4  ;;  %2960 = vmatpush1.msra.mxu1 %v5709_v8  ;;  %v7345_v4 = vld [vmem:[#allocation43_spill] sm:$0xff]  ;;  %v7346_v8 = vld [vmem:[#allocation44_spill] sm:$0xff] }
 0x5bc   : > { %2890 = vmatprep.subr.mxu0 %v5712_v14  ;;  %2961 = vmatprep.subr.mxu1 %v5715_v6  ;;  %v7347_v14 = vld [vmem:[#allocation45_spill] sm:$0xff]  ;;  %v7348_v6 = vld [vmem:[#allocation46_spill] sm:$0xff] }
 0x5bd   : > { %2891 = vmatpush1.msra.mxu0 %v5718_v0  ;;  %2962 = vmatpush1.msra.mxu1 %v5721_v13  ;;  %v7349_v0 = vld [vmem:[#allocation47_spill] sm:$0xff]  ;;  %v7350_v13 = vld [vmem:[#allocation48_spill] sm:$0xff] }
 0x5be   : > { %2892 = vmatprep.subr.mxu0 %v5724_v16  ;;  %2963 = vmatprep.subr.mxu1 %v5727_v57  ;;  %v7351_v16 = vld [vmem:[#allocation49_spill] sm:$0xff]  ;;  %v7352_v57 = vld [vmem:[#allocation50_spill] sm:$0xff] }
 0x5bf   : > { %2893 = vmatpush1.msra.mxu0 %v5730_v54  ;;  %2964 = vmatpush1.msra.mxu1 %v5733_v7  ;;  %v7353_v54 = vld [vmem:[#allocation51_spill] sm:$0xff]  ;;  %v7354_v7 = vld [vmem:[#allocation52_spill] sm:$0xff] }
 0x5c0   : > { %2894 = vmatprep.subr.mxu0 %v5736_v56  ;;  %2965 = vmatprep.subr.mxu1 %v5739_v1  ;;  %v7355_v56 = vld [vmem:[#allocation68_spill] sm:$0xff]  ;;  %v7356_v1 = vld [vmem:[#allocation69_spill] sm:$0xff] }
 0x5c1   : > { %2895 = vmatpush1.msra.mxu0 %v5742_v58  ;;  %2966 = vmatpush1.msra.mxu1 %v5745_v50  ;;  %v7357_v58 = vld [vmem:[#allocation70_spill] sm:$0xff]  ;;  %v7358_v50 = vld [vmem:[#allocation71_spill] sm:$0xff] }
 0x5c2   : > { %2896 = vmatprep.subr.mxu0 %v5748_v60  ;;  %2967 = vmatprep.subr.mxu1 %v5751_v40  ;;  %v7359_v60 = vld [vmem:[#allocation72_spill] sm:$0xff]  ;;  %v7360_v40 = vld [vmem:[#allocation73_spill] sm:$0xff] }
 0x5c3   : > { %2897 = vmatpush1.msra.mxu0 %v5754_v61  ;;  %2968 = vmatpush1.msra.mxu1 %v7327_v31  ;;  %v7361_v61 = vld [vmem:[#allocation74_spill] sm:$0xff]  ;;  %v7364_v31 = vld [vmem:[#allocation77_spill] sm:$0xff] }
 0x5c4   : > { %2898 = vmatprep.subr.mxu0 %v7328_v32  ;;  %2969 = vmatprep.subr.mxu1 %v7329_v33  ;;  %v7365_v32 = vld [vmem:[#allocation78_spill] sm:$0xff]  ;;  %v7367_v33 = vld [vmem:[#allocation80_spill] sm:$0xff] }
 0x5c5   : > { %2899 = vmatpush1.msra.mxu0 %v7330_v34  ;;  %2970 = vmatpush1.msra.mxu1 %v7331_v35  ;;  %v7368_v34 = vld [vmem:[#allocation81_spill] sm:$0xff]  ;;  %v7369_v35 = vld [vmem:[#allocation82_spill] sm:$0xff] }
 0x5c6   : > { %2900 = vmatprep.subr.mxu0 %v7332_v36  ;;  %2971 = vmatprep.subr.mxu1 %v7333_v37  ;;  %v7370_v36 = vld [vmem:[#allocation83_spill] sm:$0xff]  ;;  %v7371_v37 = vld [vmem:[#allocation84_spill] sm:$0xff] }
 0x5c7   : > { %2901 = vmatpush1.msra.mxu0 %v7334_v38  ;;  %2972 = vmatpush1.msra.mxu1 %v7335_v41  ;;  %v7372_v38 = vld [vmem:[#allocation85_spill] sm:$0xff]  ;;  %v7373_v41 = vld [vmem:[#allocation86_spill] sm:$0xff] }
 0x5c8   : > { %2902 = vmatprep.subr.mxu0 %v7336_v42  ;;  %2973 = vmatprep.subr.mxu1 %v7337_v43  ;;  %v7374_v42 = vld [vmem:[#allocation87_spill] sm:$0xff]  ;;  %v7375_v43 = vld [vmem:[#allocation88_spill] sm:$0xff] }
 0x5c9   : > { %2903 = vmatpush1.msra.mxu0 %v7338_v45  ;;  %2974 = vmatpush1.msra.mxu1 %v7339_v47  ;;  %v7376_v45 = vld [vmem:[#allocation89_spill] sm:$0xff]  ;;  %v7377_v47 = vld [vmem:[#allocation90_spill] sm:$0xff] }
 0x5ca   : > { %2904 = vmatprep.subr.mxu0 %v7340_v48  ;;  %2975 = vmatprep.subr.mxu1 %v7341_v51  ;;  %v7378_v48 = vld [vmem:[#allocation91_spill] sm:$0xff]  ;;  %v7379_v51 = vld [vmem:[#allocation92_spill] sm:$0xff] }
 0x5cb   : > { %2905 = vmatpush1.msra.mxu0 %v7342_v53  ;;  %2976 = vmatpush1.msra.mxu1 %v7343_v62  ;;  %v7380_v53 = vld [vmem:[#allocation93_spill] sm:$0xff]  ;;  %v7381_v62 = vld [vmem:[#allocation94_spill] sm:$0xff] }
 0x5cc   : > { %2906 = vmatprep.subr.mxu0 %v7344_v3  ;;  %2977 = vmatprep.subr.mxu1 %v7345_v4  ;;  %v7382_v3 = vld [vmem:[#allocation95_spill] sm:$0xff]  ;;  %v7383_v4 = vld [vmem:[#allocation96_spill] sm:$0xff] }
 0x5cd   : > { %2907 = vmatpush1.msra.mxu0 %v7346_v8  ;;  %2978 = vmatpush1.msra.mxu1 %v7347_v14  ;;  %v7384_v8 = vld [vmem:[#allocation97_spill] sm:$0xff]  ;;  %v7385_v14 = vld [vmem:[#allocation98_spill] sm:$0xff] }
 0x5ce   : > { %2908 = vmatprep.subr.mxu0 %v7348_v6  ;;  %2979 = vmatprep.subr.mxu1 %v7349_v0  ;;  %v7386_v6 = vld [vmem:[#allocation99_spill] sm:$0xff]  ;;  %v7387_v0 = vld [vmem:[#allocation100_spill] sm:$0xff] }
 0x5cf   : > { %2909 = vmatpush1.msra.mxu0 %v7350_v13  ;;  %2980 = vmatpush1.msra.mxu1 %v7351_v16  ;;  %v7388_v13 = vld [vmem:[#allocation101_spill] sm:$0xff]  ;;  %v7389_v16 = vld [vmem:[#allocation102_spill] sm:$0xff] }
 0x5d0   : > { %2910 = vmatprep.subr.mxu0 %v7352_v57  ;;  %2981 = vmatprep.subr.mxu1 %v7353_v54  ;;  %v7390_v57 = vld [vmem:[#allocation103_spill] sm:$0xff]  ;;  %v7391_v54 = vld [vmem:[#allocation104_spill] sm:$0xff] }
 0x5d1   : > { %2911 = vmatpush1.msra.mxu0 %v7354_v7  ;;  %2944 = vmatprep.mubr.f32.mxu0 %v6895_v5  ;;  %v7392_v7 = vld [vmem:[#allocation105_spill] sm:$0xff] }
 0x5d2   : > { %2982 = vmatpush1.msra.mxu1 %v7355_v56  ;;  %3015 = vmatprep.mubr.f32.mxu1 %v6895_v5  ;;  %v7393_v56 = vld [vmem:[#allocation106_spill] sm:$0xff] }
 0x5d3   : > { %2945 = vmatmul.mubr.f32.vlgmr.msra.gmra.mxu0 %v6260_v11  ;;  %3016 = vmatmul.mubr.f32.vlgmr.msra.gmra.mxu1 %v6260_v11  ;;  %v7366_v11 = vld [vmem:[#allocation79_spill] sm:$0xff] }
 0x5d4   : > { %3070 = vmatprep.subr.mxu0 %v7356_v1  ;;  %3141 = vmatprep.subr.mxu1 %v7357_v58  ;;  %v7394_v1 = vld [vmem:[#allocation107_spill] sm:$0xff]  ;;  %v7395_v58 = vld [vmem:[#allocation108_spill] sm:$0xff] }
 0x5d5   : > { %3071 = vmatpush1.msra.mxu0 %v7358_v50  ;;  %3142 = vmatpush1.msra.mxu1 %v7359_v60  ;;  %v7396_v50 = vld [vmem:[#allocation109_spill] sm:$0xff]  ;;  %v7397_v60 = vld [vmem:[#allocation110_spill] sm:$0xff] }
 0x5d6   : > { %3072 = vmatprep.subr.mxu0 %v7360_v40  ;;  %3143 = vmatprep.subr.mxu1 %v7361_v61  ;;  %v7398_v40 = vld [vmem:[#allocation111_spill] sm:$0xff]  ;;  %v7399_v61 = vld [vmem:[#allocation112_spill] sm:$0xff] }
 0x5d7   : > { %3073 = vmatpush1.msra.mxu0 %v7362_v10  ;;  %3144 = vmatpush1.msra.mxu1 %v7363_v55  ;;  %v7400_v10 = vld [vmem:[#allocation113_spill] sm:$0xff]  ;;  %v7401_v55 = vld [vmem:[#allocation114_spill] sm:$0xff] }
 0x5d8   : > { %3074 = vmatprep.subr.mxu0 %v7364_v31  ;;  %3145 = vmatprep.subr.mxu1 %v7365_v32  ;;  %v7402_v31 = vld [vmem:[#allocation115_spill] sm:$0xff]  ;;  %v7403_v32 = vld [vmem:[#allocation116_spill] sm:$0xff] }
 0x5d9   : > { %3075 = vmatpush1.msra.mxu0 %v7366_v11  ;;  %3146 = vmatpush1.msra.mxu1 %v7367_v33  ;;  %v7404_v11 = vld [vmem:[#allocation117_spill] sm:$0xff]  ;;  %v7405_v33 = vld [vmem:[#allocation118_spill] sm:$0xff] }
 0x5da   : > { %3076 = vmatprep.subr.mxu0 %v7368_v34  ;;  %3147 = vmatprep.subr.mxu1 %v7369_v35  ;;  %v7406_v34 = vld [vmem:[#allocation119_spill] sm:$0xff]  ;;  %v7407_v35 = vld [vmem:[#allocation53_spill] sm:$0xff] }
 0x5db   : > { %3077 = vmatpush1.msra.mxu0 %v7370_v36  ;;  %3148 = vmatpush1.msra.mxu1 %v7371_v37  ;;  %v7408_v36 = vld [vmem:[#allocation56_spill] sm:$0xff]  ;;  %v7409_v37 = vld [vmem:[#allocation58_spill] sm:$0xff] }
 0x5dc   : > { %3078 = vmatprep.subr.mxu0 %v7372_v38  ;;  %3149 = vmatprep.subr.mxu1 %v7373_v41  ;;  %v7410_v38 = vld [vmem:[#allocation57_spill] sm:$0xff]  ;;  %v7411_v41 = vld [vmem:[#allocation59_spill] sm:$0xff] }
 0x5dd   : > { %3079 = vmatpush1.msra.mxu0 %v7374_v42  ;;  %3150 = vmatpush1.msra.mxu1 %v7375_v43  ;;  %v7412_v42 = vld [vmem:[#allocation120_spill] sm:$0xff]  ;;  %v7413_v43 = vld [vmem:[#allocation121_spill] sm:$0xff] }
 0x5de   : > { %3080 = vmatprep.subr.mxu0 %v7376_v45  ;;  %3151 = vmatprep.subr.mxu1 %v7377_v47  ;;  %v7414_v45 = vld [vmem:[#allocation122_spill] sm:$0xff]  ;;  %v7415_v47 = vld [vmem:[#allocation123_spill] sm:$0xff] }
 0x5df   : > { %3081 = vmatpush1.msra.mxu0 %v7378_v48  ;;  %3152 = vmatpush1.msra.mxu1 %v7379_v51  ;;  %v7416_v48 = vld [vmem:[#allocation124_spill] sm:$0xff]  ;;  %v7417_v51 = vld [vmem:[#allocation125_spill] sm:$0xff] }
 0x5e0   : > { %3082 = vmatprep.subr.mxu0 %v7380_v53  ;;  %3153 = vmatprep.subr.mxu1 %v7381_v62  ;;  %v7418_v53 = vld [vmem:[#allocation126_spill] sm:$0xff]  ;;  %v7419_v62 = vld [vmem:[#allocation127_spill] sm:$0xff] }
 0x5e1   : > { %3083 = vmatpush1.msra.mxu0 %v7382_v3  ;;  %3154 = vmatpush1.msra.mxu1 %v7383_v4  ;;  %v7420_v3 = vld [vmem:[#allocation128_spill] sm:$0xff]  ;;  %v7421_v4 = vld [vmem:[#allocation129_spill] sm:$0xff] }
 0x5e2   : > { %3084 = vmatprep.subr.mxu0 %v7384_v8  ;;  %3155 = vmatprep.subr.mxu1 %v7385_v14 }
 0x5e3   : > { %3085 = vmatpush1.msra.mxu0 %v7386_v6  ;;  %3156 = vmatpush1.msra.mxu1 %v7387_v0 }
 0x5e4   : > { %3086 = vmatprep.subr.mxu0 %v7388_v13  ;;  %3157 = vmatprep.subr.mxu1 %v7389_v16 }
 0x5e5   : > { %3087 = vmatpush1.msra.mxu0 %v7390_v57  ;;  %3158 = vmatpush1.msra.mxu1 %v7391_v54 }
 0x5e6   : > { %3088 = vmatprep.subr.mxu0 %v7392_v7  ;;  %3159 = vmatprep.subr.mxu1 %v7393_v56 }
 0x5e7   : > { %3089 = vmatpush1.msra.mxu0 %v7394_v1  ;;  %3160 = vmatpush1.msra.mxu1 %v7395_v58  ;;  %v7422_v1 = vld [vmem:[#allocation22_spill] sm:$0xff] }
 0x5e8   : > { %3090 = vmatprep.subr.mxu0 %v7396_v50  ;;  %3161 = vmatprep.subr.mxu1 %v7397_v60 }
 0x5e9   : > { %3091 = vmatpush1.msra.mxu0 %v7398_v40  ;;  %3162 = vmatpush1.msra.mxu1 %v7399_v61  ;;  %v7423_v40 = vld [vmem:[#allocation23_spill] sm:$0xff] }
 0x5ea   : > { %3092 = vmatprep.subr.mxu0 %v7400_v10  ;;  %3163 = vmatprep.subr.mxu1 %v7401_v55  ;;  %v7424_v10 = vld [vmem:[#allocation24_spill] sm:$0xff] }
 0x5eb   : > { %3093 = vmatpush1.msra.mxu0 %v7402_v31  ;;  %3164 = vmatpush1.msra.mxu1 %v7403_v32 }
 0x5ec   : > { %3094 = vmatprep.subr.mxu0 %v7404_v11  ;;  %3165 = vmatprep.subr.mxu1 %v7405_v33 }
 0x5ed   : > { %3095 = vmatpush1.msra.mxu0 %v7406_v34  ;;  %3166 = vmatpush1.msra.mxu1 %v7407_v35 }
 0x5ee   : > { %3096 = vmatprep.subr.mxu0 %v7408_v36  ;;  %3167 = vmatprep.subr.mxu1 %v7409_v37 }
 0x5ef   : > { %3097 = vmatpush1.msra.mxu0 %v7410_v38  ;;  %3168 = vmatpush1.msra.mxu1 %v7411_v41  ;;  %v7425_v38 = vld [vmem:[#allocation64_spill] sm:$0xff] }
 0x5f0   : > { %3098 = vmatprep.subr.mxu0 %v7412_v42  ;;  %3169 = vmatprep.subr.mxu1 %v7413_v43  ;;  %v7426_v42 = vld [vmem:[#allocation66_spill] sm:$0xff] }
 0x5f1   : > { %3099 = vmatpush1.msra.mxu0 %v7414_v45  ;;  %3170 = vmatpush1.msra.mxu1 %v7415_v47 }
 0x5f2   : > { %3100 = vmatprep.subr.mxu0 %v7416_v48  ;;  %3171 = vmatprep.subr.mxu1 %v7417_v51  ;;  %v7427_v48 = vld [vmem:[#allocation65_spill] sm:$0xff] }
 0x5f3   : > { %3101 = vmatpush1.msra.mxu0 %v7418_v53  ;;  %3172 = vmatpush1.msra.mxu1 %v7419_v62  ;;  %v7428_v53 = vld [vmem:[#allocation67_spill] sm:$0xff] }
 0x5f4   : > { %3134 = vmatprep.mubr.f32.mxu0 %v6895_v5  ;;  %3205 = vmatprep.mubr.f32.mxu1 %v6895_v5 }
 0x5f5   : > { %3212 = vmatprep.subr.mxu0 %v7420_v3  ;;  %3283 = vmatprep.subr.mxu1 %v7421_v4 }
 0x650   : > { %v2614_v8 = vpop.f32.mrf.mxu0  ;;  %v2685_v14 = vpop.f32.mrf.mxu1 }
 0x652   : > { %v2616_v6 = vpop.f32.mrf.mxu0  ;;  %v2687_v0 = vpop.f32.mrf.mxu1 }
 0x671   : > { %v2756_v13 = vpop.f32.mrf.mxu0  ;;  %v2827_v16 = vpop.f32.mrf.mxu1 }
 0x672   : > { %v2757_v57 = vadd.f32 %v2756_v13, %v2614_v8  ;;  %v6404_v54 = vadd.f32 %v2827_v16, %v2685_v14 }
 0x673   : > { %v2758_v7 = vpop.f32.mrf.mxu0  ;;  %v2829_v56 = vpop.f32.mrf.mxu1 }
 0x674   : > { %v2832_v58 = vadd.f32 %v2757_v57, %v7422_v1  ;;  %v2759_v50 = vadd.f32 %v2758_v7, %v2616_v6  ;;  %v2830_v60 = vadd.f32 %v2829_v56, %v2687_v0 }
 0x676   : > { %v2833_v61 = vadd.f32 %v2759_v50, %v7423_v40  ;;  %v2835_v55 = vadd.f32 %v2830_v60, %v7424_v10  ;;  %v2836_v31 = vand.u32 2147483647, %v2832_v58 }
 0x678   : > { %v2837_v32 = vsel %vm1460_vm1, %v2836_v31, 0.0  ;;  %v2849_v11 = vand.u32 2147483647, %v2833_v61  ;;  %v2862_v33 = vand.u32 2147483647, %v2835_v55 }
 0x679   : > { %2838 = vadd.xlane.f32.xlu1 %v2837_v32 }
 0x67a   : > { %v2850_v34 = vsel %vm1460_vm1, %v2849_v11, 0.0  ;;  %v2863_v35 = vsel %vm1460_vm1, %v2862_v33, 0.0 }
 0x67b   : > { %2851 = vadd.xlane.f32.xlu0 %v2850_v34 }
 0x67d   : > { %2864 = vadd.xlane.f32.xlu1 %v2863_v35 }
 0x693   : > { %v2946_v36 = vpop.f32.mrf.mxu0  ;;  %v3017_v37 = vpop.f32.mrf.mxu1 }
 0x694   : > { %v3022_v41 = vadd.f32 %v2946_v36, %v7425_v38  ;;  %v6414_v43 = vadd.f32 %v3017_v37, %v7426_v42 }
 0x695   : > { %v2948_v45 = vpop.f32.mrf.mxu0  ;;  %v3019_v47 = vpop.f32.mrf.mxu1 }
 0x696   : > { %v3023_v51 = vadd.f32 %v2948_v45, %v7427_v48  ;;  %v3025_v62 = vadd.f32 %v3019_v47, %v7428_v53  ;;  %v3026_v3 = vand.u32 2147483647, %v3022_v41 }
 0x698   : > { %v3027_v4 = vsel %vm1460_vm1, %v3026_v3, 0.0  ;;  %v3039_v8 = vand.u32 2147483647, %v3023_v51  ;;  %v3052_v14 = vand.u32 2147483647, %v3025_v62 }
 0x699   : > { %3028 = vadd.xlane.f32.xlu0 %v3027_v4 }
 0x69a   : > { %v3040_v6 = vsel %vm1460_vm1, %v3039_v8, 0.0  ;;  %v3053_v0 = vsel %vm1460_vm1, %v3052_v14, 0.0 }
 0x69b   : > { %3041 = vadd.xlane.f32.xlu1 %v3040_v6 }
 0x69d   : > { %3054 = vadd.xlane.f32.xlu0 %v3053_v0 }
 0x702   : > { %v2839_v13 = vpop.xlane.xlu1 %2838 }
 0x703   : > { %v2840_v16 = vmax.f32 %v2839_v13, 1e-12 }
 0x704   : > { %v2852_v57 = vpop.xlane.xlu0 %2851 }
 0x705   : > { %3955 = vrcp.f32 %v2840_v16  ;;  %v2853_v7 = vmax.f32 %v2852_v57, 1e-12  ;;  %v2834_v16 = vadd.f32 %v6404_v54, %v5570_v9  ;;  %v7439_v54 = vld [vmem:[#allocation140_spill] sm:$0xff] }
 0x706   : > { %v2865_v56 = vpop.xlane.xlu1 %2864 }
 0x707   : > { %3957 = vrcp.f32 %v2853_v7  ;;  %v2866_v50 = vmax.f32 %v2865_v56, 1e-12 }
 0x709   : > { %3959 = vrcp.f32 %v2866_v50 }
 0x712   : > { %v3956_v60 = vpop.eup %3955 }
 0x713   : > { %v2842_v31 = vmul.f32 %v3956_v60, %v2832_v58 }
 0x714   : > { %v3958_v32 = vpop.eup %3957 }
 0x715   : > { %v3719_v11 = vmul.f32 -1.442695, %v2842_v31  ;;  %v2855_v33 = vmul.f32 %v3958_v32, %v2833_v61 }
 0x716   : > { %v3960_v34 = vpop.eup %3959 }
 0x717   : > { %3961 = vpow2.f32 %v3719_v11  ;;  %v3720_v35 = vmul.f32 -1.442695, %v2855_v33  ;;  %v2868_v36 = vmul.f32 %v3960_v34, %v2835_v55 }
 0x719   : > { %3963 = vpow2.f32 %v3720_v35  ;;  %v3721_v37 = vmul.f32 -1.442695, %v2868_v36 }
 0x71b   : > { %3965 = vpow2.f32 %v3721_v37  ;;  %v7442_v37 = vld [vmem:[#allocation143_spill] sm:$0xff] }
 0x722   : > { %v3029_v38 = vpop.xlane.xlu0 %3028 }
 0x723   : > { %v3030_v42 = vmax.f32 %v3029_v38, 1e-12  ;;  %v7443_v38 = vld [vmem:[#allocation144_spill] sm:$0xff] }
 0x724   : > { %v3962_v45 = vpop.eup %3961  ;;  %v3042_v47 = vpop.xlane.xlu1 %3041 }
 0x725   : > { %v2846_v48 = vadd.f32 1.0, %v3962_v45  ;;  %3967 = vrcp.f32 %v3030_v42  ;;  %v3043_v53 = vmax.f32 %v3042_v47, 1e-12  ;;  %v7444_v42 = vld [vmem:[#allocation145_spill] sm:$0xff]  ;;  %v7445_v45 = vld [vmem:[#allocation146_spill] sm:$0xff]  ;;  %v7446_v47 = vld [vmem:[#allocation147_spill] sm:$0xff] }
 0x726   : > { %v3964_v3 = vpop.eup %3963  ;;  %v3055_v4 = vpop.xlane.xlu0 %3054 }
 0x727   : > { %3969 = vrcp.f32 %v2846_v48  ;;  %v2859_v58 = vadd.f32 1.0, %v3964_v3  ;;  %v3056_v8 = vmax.f32 %v3055_v4, 1e-12  ;;  %v7447_v48 = vld [vmem:[#allocation148_spill] sm:$0xff]  ;;  %v7449_v3 = vld [vmem:[#allocation150_spill] sm:$0xff]  ;;  %v7450_v4 = vld [vmem:[#allocation151_spill] sm:$0xff] }
 0x728   : > { %v3966_v61 = vpop.eup %3965  ;;  %3971 = vrcp.f32 %v3043_v53  ;;  %v7448_v53 = vld [vmem:[#allocation149_spill] sm:$0xff] }
 0x729   : > { %3973 = vrcp.f32 %v2859_v58  ;;  %v2872_v55 = vadd.f32 1.0, %v3966_v61  ;;  %v7451_v58 = vld [vmem:[#allocation152_spill] sm:$0xff]  ;;  %v7453_v61 = vld [vmem:[#allocation154_spill] sm:$0xff] }
 0x72a   : > { %3975 = vrcp.f32 %v3056_v8  ;;  %v7452_v8 = vld [vmem:[#allocation153_spill] sm:$0xff] }
 0x72b   : > { %3977 = vrcp.f32 %v2872_v55  ;;  %v7454_v55 = vld [vmem:[#allocation155_spill] sm:$0xff] }
 0x732   : > { %v3968_v14 = vpop.eup %3967 }
 0x733   : > { %v3032_v6 = vmul.f32 %v3968_v14, %v3022_v41  ;;  %v7455_v14 = vld [vmem:[#allocation156_spill] sm:$0xff] }
 0x734   : > { %v3970_v0 = vpop.eup %3969 }
 0x735   : > { %v3972_v13 = vpop.eup %3971  ;;  %v3722_v57 = vmul.f32 -1.442695, %v3032_v6  ;;  %v2876_v31 = vmul.f32 %v3970_v0, %v2834_v16  ;;  %v7456_v0 = vld [vmem:[#allocation157_spill] sm:$0xff]  ;;  %v7458_v16 = vld [vmem:[#allocation159_spill] sm:$0xff] }
 0x736   : > { %v3974_v7 = vpop.eup %3973  ;;  %v3045_v56 = vmul.f32 %v3972_v13, %v3023_v51  ;;  %v7440_v51 = vld [vmem:[#allocation141_spill] sm:$0xff]  ;;  %v7457_v13 = vld [vmem:[#allocation158_spill] sm:$0xff] }
 0x737   : > { %v3976_v50 = vpop.eup %3975  ;;  %3979 = vpow2.f32 %v3722_v57  ;;  %v2875_v60 = vmul.f32 %v3974_v7, %v6068_v24  ;;  %v7459_v57 = vld [vmem:[#allocation160_spill] sm:$0xff] }
 0x738   : > { %v3723_v32 = vmul.f32 -1.442695, %v3045_v56  ;;  %v3058_v11 = vmul.f32 %v3976_v50, %v3025_v62  ;;  %v3978_v35 = vpop.eup %3977  ;;  %v7441_v62 = vld [vmem:[#allocation142_spill] sm:$0xff]  ;;  %v7460_v56 = vld [vmem:[#allocation161_spill] sm:$0xff] }
 0x739   : > { %v6424_v33 = vadd.f32 %v2876_v31, %v2875_v60  ;;  %v7461_v50 = vld [vmem:[#allocation162_spill] sm:$0xff]  ;;  %v7462_v60 = vld [vmem:[#allocation163_spill] sm:$0xff]  ;;  %v7463_v31 = vld [vmem:[#allocation164_spill] sm:$0xff] }
 0x73a   : > { %3981 = vpow2.f32 %v3723_v32  ;;  %v3724_v34 = vmul.f32 -1.442695, %v3058_v11 }
 0x73b   : > { %v2878_v41 = vmax.f32 %v6424_v33, 0.0 }
 0x73c   : > { %3983 = vpow2.f32 %v3724_v34  ;;  %v7464_v34 = vld [vmem:[#allocation165_spill] sm:$0xff] }
 0x73d   : > { %v2879_v36 = vmul.f32 %v3978_v35, %v2878_v41  ;;  %v7465_v35 = vld [vmem:[#allocation166_spill] sm:$0xff] }
 0x73f   : > { %3135 = vmatmul.mubr.f32.vlgmr.msra.gmra.mxu0 %v2879_v36  ;;  %3206 = vmatmul.mubr.f32.vlgmr.msra.gmra.mxu1 %v2879_v36  ;;  %v7466_v36 = vld [vmem:[#allocation167_spill] sm:$0xff] }
 0x740   : > { %3213 = vmatpush1.msra.mxu0 %v6071_v27  ;;  %3284 = vmatpush1.msra.mxu1 %v6074_v28 }
 0x741   : > { %3214 = vmatprep.subr.mxu0 %v6077_v49  ;;  %3285 = vmatprep.subr.mxu1 %v6080_v63  ;;  %v7429_v49 = vld [vmem:[#allocation130_spill] sm:$0xff] }
 0x742   : > { %3215 = vmatpush1.msra.mxu0 %v6083_v26  ;;  %3286 = vmatpush1.msra.mxu1 %v6086_v29  ;;  %v7430_v26 = vld [vmem:[#allocation131_spill] sm:$0xff]  ;;  %v7431_v29 = vld [vmem:[#allocation132_spill] sm:$0xff] }
 0x743   : > { %3216 = vmatprep.subr.mxu0 %v6089_v46  ;;  %3287 = vmatprep.subr.mxu1 %v6092_v59  ;;  %v7432_v59 = vld [vmem:[#allocation133_spill] sm:$0xff] }
 0x744   : > { %v3980_v24 = vpop.eup %3979  ;;  %3217 = vmatpush1.msra.mxu0 %v6095_v30  ;;  %3288 = vmatpush1.msra.mxu1 %v6098_v15  ;;  %v7433_v30 = vld [vmem:[#allocation134_spill] sm:$0xff]  ;;  %v7434_v15 = vld [vmem:[#allocation135_spill] sm:$0xff] }
 0x745   : > { %v3036_v27 = vadd.f32 1.0, %v3980_v24  ;;  %3218 = vmatprep.subr.mxu0 %v6101_v23  ;;  %3289 = vmatprep.subr.mxu1 %v6104_v2  ;;  %v7435_v23 = vld [vmem:[#allocation136_spill] sm:$0xff]  ;;  %v7436_v2 = vld [vmem:[#allocation137_spill] sm:$0xff] }
 0x746   : > { %3219 = vmatpush1.msra.mxu0 %v6107_v44  ;;  %3290 = vmatpush1.msra.mxu1 %v6110_v22  ;;  %v7437_v44 = vld [vmem:[#allocation138_spill] sm:$0xff]  ;;  %v7467_v24 = vld [vmem:[#allocation168_spill] sm:$0xff] }
 0x747   : > { %v3982_v28 = vpop.eup %3981  ;;  %3220 = vmatprep.subr.mxu0 %v6113_v25  ;;  %3291 = vmatprep.subr.mxu1 %v7429_v49  ;;  %3985 = vrcp.f32 %v3036_v27  ;;  %v7438_v25 = vld [vmem:[#allocation139_spill] sm:$0xff]  ;;  %v7468_v27 = vld [vmem:[#allocation169_spill] sm:$0xff] }
 0x748   : > { %v3049_v63 = vadd.f32 1.0, %v3982_v28  ;;  %3221 = vmatpush1.msra.mxu0 %v7430_v26  ;;  %3292 = vmatpush1.msra.mxu1 %v7431_v29 }
 0x749   : > { %v3984_v46 = vpop.eup %3983  ;;  %3222 = vmatprep.subr.mxu0 %v7432_v59  ;;  %3293 = vmatprep.subr.mxu1 %v7433_v30 }
 0x74a   : > { %3987 = vrcp.f32 %v3049_v63  ;;  %3223 = vmatpush1.msra.mxu0 %v7434_v15  ;;  %3294 = vmatpush1.msra.mxu1 %v7435_v23  ;;  %v3062_v22 = vadd.f32 1.0, %v3984_v46 }
 0x74b   : > { %3224 = vmatprep.subr.mxu0 %v7436_v2  ;;  %3295 = vmatprep.subr.mxu1 %v7437_v44 }
 0x74c   : > { %3225 = vmatpush1.msra.mxu0 %v7438_v25  ;;  %3296 = vmatpush1.msra.mxu1 %v7439_v54  ;;  %3989 = vrcp.f32 %v3062_v22 }
 0x74d   : > { %3226 = vmatprep.subr.mxu0 %v7440_v51  ;;  %3297 = vmatprep.subr.mxu1 %v7441_v62 }
 0x74e   : > { %3227 = vmatpush1.msra.mxu0 %v7442_v37  ;;  %3298 = vmatpush1.msra.mxu1 %v7443_v38 }
 0x74f   : > { %3228 = vmatprep.subr.mxu0 %v7444_v42  ;;  %3299 = vmatprep.subr.mxu1 %v7445_v45 }
 0x750   : > { %3229 = vmatpush1.msra.mxu0 %v7446_v47  ;;  %3300 = vmatpush1.msra.mxu1 %v7447_v48 }
 0x751   : > { %3230 = vmatprep.subr.mxu0 %v7448_v53  ;;  %3301 = vmatprep.subr.mxu1 %v7449_v3 }
 0x752   : > { %3231 = vmatpush1.msra.mxu0 %v7450_v4  ;;  %3302 = vmatpush1.msra.mxu1 %v7451_v58 }
 0x753   : > { %3232 = vmatprep.subr.mxu0 %v7452_v8  ;;  %3303 = vmatprep.subr.mxu1 %v7453_v61 }
 0x754   : > { %3233 = vmatpush1.msra.mxu0 %v7454_v55  ;;  %3304 = vmatpush1.msra.mxu1 %v7455_v14  ;;  %v3986_v6 = vpop.eup %3985 }
 0x755   : > { %3234 = vmatprep.subr.mxu0 %v7456_v0  ;;  %3305 = vmatprep.subr.mxu1 %v7457_v13  ;;  %v3066_v11 = vmul.f32 %v3986_v6, %v6414_v43 }
 0x756   : > { %3235 = vmatpush1.msra.mxu0 %v7458_v16  ;;  %3306 = vmatpush1.msra.mxu1 %v7459_v57 }
 0x757   : > { %v3988_v7 = vpop.eup %3987  ;;  %3236 = vmatprep.subr.mxu0 %v7460_v56  ;;  %3307 = vmatprep.subr.mxu1 %v7461_v50 }
 0x758   : > { %3237 = vmatpush1.msra.mxu0 %v7462_v60  ;;  %3308 = vmatpush1.msra.mxu1 %v7463_v31  ;;  %v3065_v32 = vmul.f32 %v3988_v7, %v6235_v20 }
 0x759   : > { %3238 = vmatprep.subr.mxu0 %v6223_v12  ;;  %3309 = vmatprep.subr.mxu1 %v6226_v21  ;;  %v3990_v43 = vpop.eup %3989 }
 0x75a   : > { %3239 = vmatpush1.msra.mxu0 %v6229_v52  ;;  %3310 = vmatpush1.msra.mxu1 %v7464_v34  ;;  %v3067_v41 = vadd.f32 %v3066_v11, %v3065_v32 }
 0x75b   : > { %3240 = vmatprep.subr.mxu0 %v7465_v35  ;;  %3311 = vmatprep.subr.mxu1 %v7466_v36 }
 0x75c   : > { %3241 = vmatpush1.msra.mxu0 %v7467_v24  ;;  %3312 = vmatpush1.msra.mxu1 %v7468_v27  ;;  %v3068_v20 = vmax.f32 %v3067_v41, 0.0  ;;  %3403 = vst [vmem:[#allocation3] sm:$0x3] %v3067_v41 }
 0x75d   : > { %3242 = vmatprep.subr.mxu0 %v6250_v39  ;;  %3313 = vmatprep.subr.mxu1 %v6253_v17 }
 0x75e   : > { %3243 = vmatpush1.msra.mxu0 %v6256_v19  ;;  %3276 = vmatprep.mubr.f32.mxu0 %v6895_v5  ;;  %v3069_v21 = vmul.f32 %v3990_v43, %v3068_v20 }
 0x75f   : > { %3314 = vmatpush1.msra.mxu1 %v6262_v18  ;;  %3347 = vmatprep.mubr.f32.mxu1 %v6895_v5 }
 0x760   : > { %3277 = vmatmul.mubr.f32.vlgmr.msra.gmra.mxu0 %v3069_v21  ;;  %3402 = vst [vmem:[#allocation2] sm:$0x3] %v3069_v21  ;;  %3348 = vmatmul.mubr.f32.vlgmr.msra.gmra.mxu1 %v3069_v21 }
 0x7ff   : > { %v3136_v12 = vpop.f32.mrf.mxu0  ;;  %v3207_v52 = vpop.f32.mrf.mxu1 }
 0x801   : > { %v3138_v28 = vpop.f32.mrf.mxu0  ;;  %v3209_v49 = vpop.f32.mrf.mxu1 }
 0x820   : > { %v3278_v63 = vpop.f32.mrf.mxu0  ;;  %v3349_v39 = vpop.f32.mrf.mxu1 }
 0x821   : > { %v3279_v26 = vadd.f32 %v3278_v63, %v3136_v12  ;;  %v3350_v17 = vadd.f32 %v3349_v39, %v3207_v52 }
 0x822   : > { %v3280_v29 = vpop.f32.mrf.mxu0  ;;  %v3351_v19 = vpop.f32.mrf.mxu1 }
 0x823   : > { %v3354_v46 = vadd.f32 %v3279_v26, %v7422_v1  ;;  %v3281_v59 = vadd.f32 %v3280_v29, %v3138_v28  ;;  %v3352_v30 = vadd.f32 %v3351_v19, %v3209_v49  ;;  %v3356_v13 = vadd.f32 %v3350_v17, %v5570_v9 }
 0x825   : > { %v3355_v18 = vadd.f32 %v3281_v59, %v7423_v40  ;;  %v3357_v5 = vadd.f32 %v3352_v30, %v7424_v10  ;;  %v3358_v15 = vand.u32 2147483647, %v3354_v46 }
 0x827   : > { %v3359_v23 = vsel %vm1460_vm1, %v3358_v15, 0.0  ;;  %v3371_v2 = vand.u32 2147483647, %v3355_v18  ;;  %v3384_v44 = vand.u32 2147483647, %v3357_v5 }
 0x828   : > { %3360 = vadd.xlane.f32.xlu1 %v3359_v23 }
 0x829   : > { %v3372_v22 = vsel %vm1460_vm1, %v3371_v2, 0.0  ;;  %v3385_v25 = vsel %vm1460_vm1, %v3384_v44, 0.0 }
 0x82a   : > { %3373 = vadd.xlane.f32.xlu0 %v3372_v22 }
 0x82c   : > { %3386 = vadd.xlane.f32.xlu1 %v3385_v25 }
 0x8b1   : > { %v3361_v54 = vpop.xlane.xlu1 %3360 }
 0x8b2   : > { %v3362_v1 = vmax.f32 %v3361_v54, 1e-12 }
 0x8b3   : > { %v3374_v51 = vpop.xlane.xlu0 %3373 }
 0x8b4   : > { %3991 = vrcp.f32 %v3362_v1  ;;  %v3375_v62 = vmax.f32 %v3374_v51, 1e-12 }
 0x8b5   : > { %v3387_v40 = vpop.xlane.xlu1 %3386 }
 0x8b6   : > { %3993 = vrcp.f32 %v3375_v62  ;;  %v3388_v10 = vmax.f32 %v3387_v40, 1e-12 }
 0x8b8   : > { %3995 = vrcp.f32 %v3388_v10 }
 0x8c1   : > { %v3992_v37 = vpop.eup %3991 }
 0x8c2   : > { %v3364_v38 = vmul.f32 %v3992_v37, %v3354_v46 }
 0x8c3   : > { %v3994_v42 = vpop.eup %3993 }
 0x8c4   : > { %v3725_v45 = vmul.f32 -1.442695, %v3364_v38  ;;  %v3377_v47 = vmul.f32 %v3994_v42, %v3355_v18 }
 0x8c5   : > { %v3996_v48 = vpop.eup %3995 }
 0x8c6   : > { %3997 = vpow2.f32 %v3725_v45  ;;  %v3726_v53 = vmul.f32 -1.442695, %v3377_v47  ;;  %v3390_v3 = vmul.f32 %v3996_v48, %v3357_v5 }
 0x8c8   : > { %3999 = vpow2.f32 %v3726_v53  ;;  %v3727_v4 = vmul.f32 -1.442695, %v3390_v3 }
 0x8ca   : > { %4001 = vpow2.f32 %v3727_v4 }
 0x8d3   : > { %v3998_v58 = vpop.eup %3997 }
 0x8d4   : > { %v3368_v8 = vadd.f32 1.0, %v3998_v58 }
 0x8d5   : > { %v4000_v61 = vpop.eup %3999 }
 0x8d6   : > { %4003 = vrcp.f32 %v3368_v8  ;;  %v3381_v55 = vadd.f32 1.0, %v4000_v61 }
 0x8d7   : > { %v4002_v14 = vpop.eup %4001 }
 0x8d8   : > { %4005 = vrcp.f32 %v3381_v55  ;;  %v3394_v6 = vadd.f32 1.0, %v4002_v14 }
 0x8da   : > { %4007 = vrcp.f32 %v3394_v6 }
 0x8e3   : > { %v4004_v0 = vpop.eup %4003 }
 0x8e4   : > { %v3398_v57 = vmul.f32 %v4004_v0, %v3356_v13 }
 0x8e5   : > { %v4006_v16 = vpop.eup %4005 }
 0x8e6   : > { %v3397_v7 = vmul.f32 %v4006_v16, %v6424_v33 }
 0x8e7   : > { %v4008_v60 = vpop.eup %4007 }
 0x8e8   : > { %v3399_v56 = vadd.f32 %v3398_v57, %v3397_v7 }
 0x8ea   : > { %3405 = vst [vmem:[#allocation3 + $0x2] sm:$0x3] %v3399_v56  ;;  %v3400_v50 = vmax.f32 %v3399_v56, 0.0  ;;  %3409 = sbr.rel (%p3728_p1) target bundleno = 2520 (0x9d8), region = 92 }
 0x8ec   : > { %v6501_v31 = vmul.f32 %v4008_v60, %v3400_v50 }
 0x8ee   : > { %3404 = vst [vmem:[#allocation2 + $0x2] sm:$0x3] %v6501_v31 }
 0x8ef   : > { %v3441_v32 = vld [vmem:[#allocation15 + $0xf8] sm:$0xff]  ;;  %v3440_v11 = vld [vmem:[#allocation15 + $0xf0] sm:$0xff]  ;;  %v3439_v34 = vld [vmem:[#allocation15 + $0xe8] sm:$0xff]  ;;  %v4490_v41 = vmov 0.0  }
 0x8f0   : > { %3454 = vmatprep.subr.mxu0 %v3441_v32  ;;  %v3438_v9 = vld [vmem:[#allocation15 + $0xe0] sm:$0xff]  ;;  %3518 = vmatprep.mubr.f32.mxu0 %v4490_v41  ;;  %v3437_v33 = vld [vmem:[#allocation15 + $0xd8] sm:$0xff]  ;;  %v3436_v35 = vld [vmem:[#allocation15 + $0xd0] sm:$0xff] }
 0x8f1   : > { %3455 = vmatpush1.msra.mxu0 %v3440_v11  ;;  %v3435_v36 = vld [vmem:[#allocation15 + $0xc8] sm:$0xff]  ;;  %v3434_v24 = vld [vmem:[#allocation15 + $0xc0] sm:$0xff]  ;;  %v3433_v27 = vld [vmem:[#allocation15 + $0xb8] sm:$0xff] }
 0x8f2   : > { %3456 = vmatprep.subr.mxu0 %v3439_v34  ;;  %v3432_v20 = vld [vmem:[#allocation15 + $0xb0] sm:$0xff]  ;;  %v3431_v43 = vld [vmem:[#allocation15 + $0xa8] sm:$0xff]  ;;  %v3430_v21 = vld [vmem:[#allocation15 + $0xa0] sm:$0xff] }
 0x8f3   : > { %3457 = vmatpush1.msra.mxu0 %v3438_v9  ;;  %v3429_v12 = vld [vmem:[#allocation15 + $0x98] sm:$0xff]  ;;  %v3428_v52 = vld [vmem:[#allocation15 + $0x90] sm:$0xff]  ;;  %v3427_v28 = vld [vmem:[#allocation15 + $0x88] sm:$0xff] }
 0x8f4   : > { %3458 = vmatprep.subr.mxu0 %v3437_v33  ;;  %v3426_v49 = vld [vmem:[#allocation15 + $0x80] sm:$0xff]  ;;  %v3425_v63 = vld [vmem:[#allocation15 + $0x78] sm:$0xff]  ;;  %v3424_v39 = vld [vmem:[#allocation15 + $0x70] sm:$0xff] }
 0x8f5   : > { %3459 = vmatpush1.msra.mxu0 %v3436_v35  ;;  %v3423_v26 = vld [vmem:[#allocation15 + $0x68] sm:$0xff]  ;;  %v3422_v17 = vld [vmem:[#allocation15 + $0x60] sm:$0xff]  ;;  %v3421_v29 = vld [vmem:[#allocation15 + $0x58] sm:$0xff] }
 0x8f6   : > { %3460 = vmatprep.subr.mxu0 %v3435_v36  ;;  %v3420_v19 = vld [vmem:[#allocation15 + $0x50] sm:$0xff]  ;;  %v3419_v46 = vld [vmem:[#allocation15 + $0x48] sm:$0xff]  ;;  %v3418_v59 = vld [vmem:[#allocation15 + $0x40] sm:$0xff] }
 0x8f7   : > { %3461 = vmatpush1.msra.mxu0 %v3434_v24  ;;  %v3417_v30 = vld [vmem:[#allocation15 + $0x38] sm:$0xff]  ;;  %v3416_v18 = vld [vmem:[#allocation15 + $0x30] sm:$0xff]  ;;  %v3415_v5 = vld [vmem:[#allocation15 + $0x28] sm:$0xff] }
 0x8f8   : > { %3462 = vmatprep.subr.mxu0 %v3433_v27  ;;  %v3414_v15 = vld [vmem:[#allocation15 + $0x20] sm:$0xff]  ;;  %v3413_v23 = vld [vmem:[#allocation15 + $0x18] sm:$0xff]  ;;  %v3412_v2 = vld [vmem:[#allocation15 + $0x10] sm:$0xff] }
 0x8f9   : > { %3463 = vmatpush1.msra.mxu0 %v3432_v20  ;;  %v3411_v44 = vld [vmem:[#allocation15 + $0x8] sm:$0xff]  ;;  %v3410_v22 = vld [vmem:[#allocation15] sm:$0xff] }
 0x8fa   : > { %3464 = vmatprep.subr.mxu0 %v3431_v43  ;;  %v3442_v25 = vld [vmem:[%s6554_s8] sm:$0x3]  ;;  %v7469_v54 = vld [vmem:[#allocation54_spill] sm:$0xff]  ;;  %v7470_v51 = vld [vmem:[#allocation55_spill] sm:$0xff] }
 0x8fb   : > { %3465 = vmatpush1.msra.mxu0 %v3430_v21  ;;  %v3447_v1 = vrot.slane %v3442_v25, %v7469_v54  ;;  %v3451_v62 = vrot.slane %v3442_v25, %v7470_v51 }
 0x8fc   : > { %3466 = vmatprep.subr.mxu0 %v3429_v12 }
 0x8fd   : > { %3467 = vmatpush1.msra.mxu0 %v3428_v52 }
 0x8fe   : > { %3468 = vmatprep.subr.mxu0 %v3427_v28 }
 0x8ff   : > { %3469 = vmatpush1.msra.mxu0 %v3426_v49 }
 0x900   : > { %3470 = vmatprep.subr.mxu0 %v3425_v63 }
 0x901   : > { %3471 = vmatpush1.msra.mxu0 %v3424_v39 }
 0x902   : > { %3472 = vmatprep.subr.mxu0 %v3423_v26 }
 0x903   : > { %3473 = vmatpush1.msra.mxu0 %v3422_v17 }
 0x904   : > { %3474 = vmatprep.subr.mxu0 %v3421_v29 }
 0x905   : > { %3475 = vmatpush1.msra.mxu0 %v3420_v19 }
 0x906   : > { %3476 = vmatprep.subr.mxu0 %v3419_v46 }
 0x907   : > { %3477 = vmatpush1.msra.mxu0 %v3418_v59 }
 0x908   : > { %3478 = vmatprep.subr.mxu0 %v3417_v30 }
 0x909   : > { %3479 = vmatpush1.msra.mxu0 %v3416_v18 }
 0x90a   : > { %3480 = vmatprep.subr.mxu0 %v3415_v5 }
 0x90b   : > { %3481 = vmatpush1.msra.mxu0 %v3414_v15 }
 0x90c   : > { %3482 = vmatprep.subr.mxu0 %v3413_v23 }
 0x90d   : > { %3483 = vmatpush1.msra.mxu0 %v3412_v2 }
 0x90e   : > { %3484 = vmatprep.subr.mxu0 %v3411_v44 }
 0x90f   : > { %3485 = vmatpush1.msra.mxu0 %v3410_v22 }
 0x910   : > { %3519 = vmatmul.mubr.f32.vlgmr.msra.gmra.mxu0 %v6501_v31 }
 0x9d0   : > { %v3520_v40 = vpop.f32.mrf.mxu0 }
 0x9d1   : > { %v3521_v37 = vadd.f32 %v3520_v40, %v3447_v1 }
 0x9d2   : > { %v3522_v10 = vpop.f32.mrf.mxu0 }
 0x9d3   : > { %v3523_v38 = vadd.f32 %v3522_v10, %v3451_v62 }
 0x9d5   : > { %v3527_v42 = vcombine.low %v3521_v37, %v3523_v38 }
 0x9d7   : > { %3729 = vst.sshfl [vmem:[#allocation16] sm:$0x33 pattern:$0x76325410] %v3527_v42 }
 0x9d8 PF: > { %s7471_s25 = sadd.s32 4294967295, %s4475_s14   ;;  %s4491_s30 = smov [#allocation16]  }
 0x9d9   : > { %p6513_p13 = scmp.eq.s32.totalorder %s7471_s25, 1  ;;  %s3547_s20 = sshll.u32 %s4491_s30, 4  ;;  %s3548_s20 = int_to_ptr.vmem [resolvable:$true] %s3547_s20 }
 0x9da   : > { %s4385_s24 = scalar_lea.vmem %s3548_s20, 64  ;;  %p4392_p4 = scmp.lt.s32.totalorder %s3548_s20, %s3548_s20 }
 0x9db   : > { %p4386_p0 = scmp.ne.s32.totalorder %s3548_s20, %s4385_s24  ;;  %p4393_p7 = scmp.lt.s32.totalorder %s4385_s24, %s4385_s24 }
 0x9dd   : > { %p4387_p2 = pnand %p4386_p0, %p6513_p13  ;;  %p4394_p8 = por %p4393_p7, %p4392_p4 }
 0x9df   : > { %p4388_p5 = pneg %p4387_p2 }
 0x9e1   : > { %p4395_p6 = pnand %p4394_p8, %p4388_p5 }
 0x9e3   : > { %4398 = shalt.err (!%p4395_p6)
}
 0x9e4   : > { %3762 = dma.vmem_to_hbm [thread:$0]  (%p6513_p13), %s3548_s20, 64, %s6555_s9, [#allocation6]  }
 0x9e5   : > { %4450 = dma.done.wait (%p6513_p13), [#allocation6], 64  }
 0x9e6   : > { %4452 = vsyncadd (%p6513_p13), [#allocation6], 4294967232 }
 0x9e7 PF: > { %s26_s14 = sadd.s32 1, %s4475_s14   ;;  %s7473_s30 = smov %s4459_s10 }
 0x9e8   : > { %p23_p9 = scmp.ge.s32.totalorder %s26_s14, 4   ;;  %s7474_s10 = smov %s4463_s11 }
 0x9e9   : > { %s7475_s11 = smov %s4681_s18  ;;  %s7476_s12 = smov %s4471_s13 }
 0x9ea   : > { %s7477_s13 = smov %s7479_s22  ;;  %25 = sbr.rel (!%p23_p9) target bundleno = 12 (0xc), region = 135 }
 0x9ef   :  { %3560 = vsyncpa [#allocation5], 1 }
 0x9f0   :  { %3562 = vsyncpa [#allocation5 + $0x1], 1 }
 0x9f1   :  { %3563 = vsyncpa [#allocation8], 1 }
 0x9f2   :  { %3564 = vsyncpa [#allocation11], 1 }
 0x9f3   :  { %3565 = vsyncpa [#allocation14], 1 }
 0x9f4   :  { %3566 = vsyncpa [#allocation6], 1 }
 0x9f5   :  { %3568 = vsyncpa [#allocation6 + $0x1], 1 }

</bundles_post_ra>
